<compile_context>
chip_gen: v7x
topology: tpu7x:2x2x1
jax: 0.10.0
libtpu: 0.0.40
codegen_flags: <defaults>
</compile_context>

<pallas_src>
import jax
import jax.numpy as jnp
from jax.experimental import pallas as pl
from jax.experimental.pallas import tpu as pltpu

BN_EPS = 1e-5
LANE = 128


def _rpad(c, m=LANE):
    return ((c + m - 1) // m) * m


def _vmem_capacity_bytes():
    try:
        return int(pltpu.get_tpu_info().vmem_capacity_bytes)
    except Exception:
        return 64 * 1024 * 1024            # conservative fallback (v7x per-core VMEM)


_VMEM_CAP = _vmem_capacity_bytes()
VMEM_LIMIT = int(min((_VMEM_CAP * 3) // 4, 96 * 1024 * 1024))   # ~96 MiB v5e/v6e, ~48 MiB v7x
TILE_BUDGET = VMEM_LIMIT // 6                                   # per-tile working-set target


def _pick_conv_tile(N, H, W, cin, tn):
    """Largest row-tile TH (divisor of H, (TH*W)%8==0) whose working set fits TILE_BUDGET."""
    valid = [d for d in range(1, H + 1) if H % d == 0 and (d * W) % 8 == 0]
    assert valid, (H, W)
    # Keep >=2 grid iterations available for megacore sharding when the batch alone cannot.
    capped = [d for d in valid if N * (H // d) >= 2] or valid
    k_pad = max(3 * cin, LANE)              # lane-padded width of the patch scratch
    w_bytes = 2 * 2 * 9 * cin * tn          # bf16 weight block, double-buffered
    for d in sorted(capped, reverse=True):
        tm = d * W
        tile_bytes = tm * (8 * cin          # x row block, f32, double-buffered
                           + 6 * k_pad      # (3, TM, 3*cin) bf16 patch scratch
                           + 8 * cin        # in-kernel slab temporaries (rough)
                           + 8 * tn)        # y output block, f32, double-buffered
        if tile_bytes + w_bytes <= TILE_BUDGET:
            return d
    return min(capped)


def _pick_pool_tile(N, Ho, Wo, C):
    valid = [d for d in range(1, Ho + 1) if Ho % d == 0]
    capped = [d for d in valid if N * (Ho // d) >= 2] or valid
    for d in sorted(capped, reverse=True):
        if 90 * d * Wo * C <= TILE_BUDGET:
            return d
    return min(capped)


# --------------------------------------------------------------------------------------
# Conv3x3 kernel (optionally with the previous layer's BN+ReLU fused into its input path)
# --------------------------------------------------------------------------------------
def _conv3x3(x, w3, in_scale=None, in_shift=None):
    """3x3 conv, stride 1, zero padding 1, no bias, NHWC.

    If in_scale/in_shift are given, applies max(x*scale + shift, 0) (folded BN + ReLU of the
    previous layer) to the input *inside* the kernel; the spatial zero padding is applied after
    the activation, so the semantics match conv(pad(relu(bn(x)))) exactly.

    Returns:
      y:     (N, H, W, Cpad) f32 raw conv output (pre-BN).
      stats: (G, 2, Cpad) f32 per-row-tile partial (sum, sum-of-squares) for the batch norm.
    """
    N, H, W, Cin = x.shape
    assert w3.shape[0] == 3 and w3.shape[1] == 3 * Cin
    Cpad = w3.shape[2]
    fused = in_scale is not None

    TN = 256 if (Cpad % 256 == 0) else LANE
    CT = Cpad // TN
    TH = _pick_conv_tile(N, H, W, Cin, TN)
    RT = H // TH
    TM = TH * W
    M = N * H * W
    G = N * RT

    def kernel(*refs):
        if fused:
            xc_ref, xt_ref, xb_ref, sc_ref, sh_ref, w_ref, y_ref, st_ref, p_ref = refs
        else:
            xc_ref, xt_ref, xb_ref, w_ref, y_ref, st_ref, p_ref = refs
            sc_ref = sh_ref = None
        r = pl.program_id(1)

        # Build the (3, TM, 3*Cin) bf16 dy-folded patches once per row tile; they are reused
        # by every Cout tile j of the innermost ("arbitrary") grid axis.
        @pl.when(pl.program_id(2) == 0)
        def _build_patches():
            def act(v):
                if fused:
                    v = jnp.maximum(v * sc_ref[...] + sh_ref[...], 0.0)
                return v
            # Row halos come from clamped index maps; zero them when they fall outside the
            # image -- this is exactly the conv's zero padding along H.
            top = act(xt_ref[0]) * (r > 0).astype(jnp.float32)
            bot = act(xb_ref[0]) * (r < RT - 1).astype(jnp.float32)
            core = act(xc_ref[0])
            slab = jnp.concatenate([top, core, bot], axis=0).astype(jnp.bfloat16)
            zcol = jnp.zeros((TH + 2, 1, Cin), jnp.bfloat16)
            slab = jnp.concatenate([zcol, slab, zcol], axis=1)            # (TH+2, W+2, Cin)
            for dx in range(3):
                cols = slab[:, dx:dx + W, :]                              # (TH+2, W, Cin)
                pk = jnp.concatenate(
                    [cols[0:TH], cols[1:TH + 1], cols[2:TH + 2]], axis=-1)  # dy folded into K
                p_ref[dx] = pk.reshape(TM, 3 * Cin)

        # 3 MXU matmuls with K = 3*Cin, accumulated in the f32 output block.
        y_ref[...] = jnp.dot(p_ref[0], w_ref[0], preferred_element_type=jnp.float32)
        y_ref[...] += jnp.dot(p_ref[1], w_ref[1], preferred_element_type=jnp.float32)
        y_ref[...] += jnp.dot(p_ref[2], w_ref[2], preferred_element_type=jnp.float32)

        acc = y_ref[...]
        st_ref[0, 0:1, :] = jnp.sum(acc, axis=0, keepdims=True)
        st_ref[0, 1:2, :] = jnp.sum(acc * acc, axis=0, keepdims=True)

    x_specs = [
        pl.BlockSpec((1, TH, W, Cin), lambda n, r, j: (n, r, 0, 0)),
        pl.BlockSpec((1, 1, W, Cin),
                     lambda n, r, j: (n, jnp.maximum(r * TH - 1, 0), 0, 0)),
        pl.BlockSpec((1, 1, W, Cin),
                     lambda n, r, j: (n, jnp.minimum(r * TH + TH, H - 1), 0, 0)),
    ]
    sc_specs = ([pl.BlockSpec((1, Cin), lambda n, r, j: (0, 0)),
                 pl.BlockSpec((1, Cin), lambda n, r, j: (0, 0))] if fused else [])
    w_spec = pl.BlockSpec((3, 3 * Cin, TN), lambda n, r, j: (0, 0, j))

    cost = pl.CostEstimate(
        flops=2 * M * 9 * Cin * Cpad,
        transcendentals=0,
        bytes_accessed=4 * M * (Cin + Cpad) + 2 * 9 * Cin * Cpad + 8 * G * Cpad)

    args = (x, x, x) + ((in_scale, in_shift) if fused else ()) + (w3,)
    y2d, stats = pl.pallas_call(
        kernel,
        out_shape=(jax.ShapeDtypeStruct((M, Cpad), jnp.float32),
                   jax.ShapeDtypeStruct((G, 2, Cpad), jnp.float32)),
        grid=(N, RT, CT),
        in_specs=x_specs + sc_specs + [w_spec],
        out_specs=(pl.BlockSpec((TM, TN), lambda n, r, j: (n * RT + r, j)),
                   pl.BlockSpec((1, 2, TN), lambda n, r, j: (n * RT + r, 0, j))),
        scratch_shapes=[pltpu.VMEM((3, TM, 3 * Cin), jnp.bfloat16)],
        compiler_params=pltpu.CompilerParams(
            dimension_semantics=("parallel", "parallel", "arbitrary"),
            vmem_limit_bytes=VMEM_LIMIT),
        cost_estimate=cost,
    )(*args)
    return y2d.reshape(N, H, W, Cpad), stats


# --------------------------------------------------------------------------------------
# Fused BN-apply + ReLU + MaxPool2d(2) (also emits the full-resolution skip feature)
# --------------------------------------------------------------------------------------
def _bn_relu_pool(y, scale, shift):
    N, H, W, C = y.shape
    # TODO(synk): odd H/W (PyTorch MaxPool2d floors the output size) are not supported.
    assert H % 2 == 0 and W % 2 == 0 and C % LANE == 0
    Ho, Wo = H // 2, W // 2

    yr = y.reshape(N, H, Wo, 2 * C)       # fold the horizontal pixel pair into lanes (free)
    sc2 = jnp.concatenate([scale, scale], axis=-1)
    sh2 = jnp.concatenate([shift, shift], axis=-1)
    THp = _pick_pool_tile(N, Ho, Wo, C)

    def kernel(y_ref, sc_ref, sh_ref, f_ref, p_ref):
        a = jnp.maximum(y_ref[0] * sc_ref[...] + sh_ref[...], 0.0)     # (2*THp, Wo, 2C)
        f_ref[0] = a                                                   # skip feature
        m = jnp.max(a.reshape(THp, 2, Wo, 2 * C), axis=1)              # vertical pair max
        p_ref[0] = jnp.maximum(m[:, :, :C], m[:, :, C:])               # horizontal pair max

    feat_r, pooled = pl.pallas_call(
        kernel,
        out_shape=(jax.ShapeDtypeStruct((N, H, Wo, 2 * C), jnp.float32),
                   jax.ShapeDtypeStruct((N, Ho, Wo, C), jnp.float32)),
        grid=(N, Ho // THp),
        in_specs=[pl.BlockSpec((1, 2 * THp, Wo, 2 * C), lambda n, t: (n, t, 0, 0)),
                  pl.BlockSpec((1, 2 * C), lambda n, t: (0, 0)),
                  pl.BlockSpec((1, 2 * C), lambda n, t: (0, 0))],
        out_specs=(pl.BlockSpec((1, 2 * THp, Wo, 2 * C), lambda n, t: (n, t, 0, 0)),
                   pl.BlockSpec((1, THp, Wo, C), lambda n, t: (n, t, 0, 0))),
        compiler_params=pltpu.CompilerParams(
            dimension_semantics=("parallel", "parallel"),
            vmem_limit_bytes=VMEM_LIMIT),
    )(yr, sc2, sh2)
    return feat_r.reshape(N, H, W, C), pooled


def _bn_finalize(stats, gamma, beta, m_count):
    """Finalize batch statistics (training-mode BN) and fold gamma/beta into scale/shift."""
    # TODO(synk): E[x^2]-E[x]^2 in f32 can lose digits for very large spatial extents; switch
    # to per-tile centered partials if tighter accuracy is ever needed.
    s = jnp.sum(stats, axis=0)                                   # (2, Cpad)
    mean = s[0:1] / m_count
    var = jnp.maximum(s[1:2] / m_count - mean * mean, 0.0)       # biased variance
    inv = jax.lax.rsqrt(var + BN_EPS)
    scale = gamma * inv
    shift = beta - mean * scale
    return scale, shift


# --------------------------------------------------------------------------------------
# Parameters: PyTorch-layout init + one-time packing (hoisted out of the forward path)
# --------------------------------------------------------------------------------------
def init_params(key, chs):
    """Per block: two (conv weight HWIO (3,3,Cin,Cout), gamma (1,Cout), beta (1,Cout))."""
    params = []
    for i in range(len(chs) - 1):
        cin, cout = chs[i], chs[i + 1]
        block = []
        for ci in (cin, cout):          # conv1: cin->cout, conv2: cout->cout
            key, k1, k2, k3 = jax.random.split(key, 4)
            w = jax.random.normal(k1, (3, 3, ci, cout), jnp.float32) / jnp.sqrt(9.0 * ci)
            w = w.astype(jnp.bfloat16).astype(jnp.float32)   # bf16-representable weights
            gamma = jax.random.uniform(k2, (1, cout), jnp.float32, 0.5, 1.5)
            beta = 0.1 * jax.random.normal(k3, (1, cout), jnp.float32)
            block.append((w, gamma, beta))
        params.append(tuple(block))
    return params


def prepare_params(params):
    """Pad Cout (and carried Cin) to a lane multiple, pack weights as (dx, dy*Cin, Cpad) bf16."""
    prepared = []
    for b, block in enumerate(params):
        pblock = []
        for c, (w, gamma, beta) in enumerate(block):
            cin, cout = w.shape[2], w.shape[3]
            cin_eff = cin if (b == 0 and c == 0) else _rpad(cin)   # upstream acts are padded
            cpad = _rpad(cout)
            wp = jnp.zeros((3, 3, cin_eff, cpad), jnp.float32).at[:, :, :cin, :cout].set(w)
            # (ky, kx, ci, co) -> (kx, ky*ci, co): dx-major groups with dy folded into K.
            wp = jnp.transpose(wp, (1, 0, 2, 3)).reshape(3, 3 * cin_eff, cpad)
            wp = wp.astype(jnp.bfloat16)
            gp = jnp.zeros((1, cpad), jnp.float32).at[:, :cout].set(gamma)
            bp = jnp.zeros((1, cpad), jnp.float32).at[:, :cout].set(beta)
            pblock.append((wp, gp, bp, cout))
        prepared.append(tuple(pblock))
    return prepared


# --------------------------------------------------------------------------------------
# Encoder forward
# --------------------------------------------------------------------------------------
def encoder_forward(x_nchw, prepared_params):
    """Pallas Encoder.forward: returns the per-level features (NCHW f32, PyTorch order).

    TODO(synk): BatchNorm running_mean/running_var buffer updates (training-mode side effect)
    are not modeled; they do not affect the returned activations.
    """
    x = jnp.transpose(x_nchw, (0, 2, 3, 1))                     # NCHW -> NHWC
    ftrs = []
    for block in prepared_params:
        (w1, g1, b1, _), (w2, g2, b2, cout) = block
        N, H, W, _ = x.shape
        m = N * H * W
        y1, st1 = _conv3x3(x, w1)                               # conv1 (input already activated)
        s1, h1 = _bn_finalize(st1, g1, b1, m)
        y2, st2 = _conv3x3(y1, w2, in_scale=s1, in_shift=h1)    # BN1+ReLU fused into conv2 input
        s2, h2 = _bn_finalize(st2, g2, b2, m)
        feat, x = _bn_relu_pool(y2, s2, h2)                     # BN2+ReLU+pool fused; emits skip
        ftrs.append(jnp.transpose(feat[..., :cout], (0, 3, 1, 2)))   # strip padding, back to NCHW
    return ftrs


# --------------------------------------------------------------------------------------
# Pure-JAX reference (faithful PyTorch semantics) for the correctness check
# --------------------------------------------------------------------------------------
def _ref_cbr(x, w, gamma, beta):
    y = jax.lax.conv_general_dilated(
        x, w, (1, 1), "SAME",
        dimension_numbers=("NHWC", "HWIO", "NHWC"),
        precision=jax.lax.Precision.HIGHEST)
    mean = jnp.mean(y, axis=(0, 1, 2), keepdims=True)
    var = jnp.mean((y - mean) ** 2, axis=(0, 1, 2), keepdims=True)
    y = (y - mean) * jax.lax.rsqrt(var + BN_EPS) * gamma.reshape(1, 1, 1, -1) \
        + beta.reshape(1, 1, 1, -1)
    return jnp.maximum(y, 0.0)


def ref_encoder(x_nchw, params):
    x = jnp.transpose(x_nchw, (0, 2, 3, 1))
    ftrs = []
    for block in params:
        for (w, g, b) in block:
            x = _ref_cbr(x, w, g, b)
        ftrs.append(jnp.transpose(x, (0, 3, 1, 2)))
        N, H, W, C = x.shape
        x = jnp.max(x.reshape(N, H // 2, 2, W // 2, 2, C), axis=(2, 4))
    return ftrs


# --------------------------------------------------------------------------------------
if __name__ == "__main__":
    key = jax.random.PRNGKey(0)
    chs = (3, 8, 16, 32)          # small stand-in for the real (3, 64, 128, 256, 512, 1024)
    N, H, W = 2, 32, 32
    kx, kp = jax.random.split(key)
    x = jax.random.normal(kx, (N, chs[0], H, W), jnp.float32)   # NCHW like PyTorch
    params = init_params(kp, chs)
    prepared = prepare_params(params)

    ftrs = encoder_forward(x, prepared)
    ftrs = [jax.block_until_ready(f) for f in ftrs]

    refs = ref_encoder(x, params)
    # Tolerance covers bf16 MXU inputs (f32 accumulation) vs. the all-f32 HIGHEST reference
    # accumulated over a chain of up to 6 conv+BN+ReLU layers.
    for lvl, (f, r) in enumerate(zip(ftrs, refs)):
        assert f.shape == r.shape, (lvl, f.shape, r.shape)
        assert f.dtype == r.dtype == jnp.float32
        if not bool(jnp.allclose(f, r, rtol=1e-1, atol=1e-1)):
            raise AssertionError(f"level {lvl} mismatch, max err "
                                 f"{float(jnp.max(jnp.abs(f - r)))}")
    print("KERNEL_OK")
</pallas_src>

<mosaic_0001>
module attributes {stable_mosaic.version = 11 : i64} {
  func.func @kernel(%arg0: i32, %arg1: i32, %arg2: i32, %arg3: memref<1x32x32x3xf32, #tpu.memory_space<vmem>>, %arg4: memref<1x1x32x3xf32, #tpu.memory_space<vmem>>, %arg5: memref<1x1x32x3xf32, #tpu.memory_space<vmem>>, %arg6: memref<3x9x128xbf16, #tpu.memory_space<vmem>>, %arg7: memref<1024x128xf32, #tpu.memory_space<vmem>>, %arg8: memref<1x2x128xf32, #tpu.memory_space<vmem>>, %arg9: memref<3x1024x9xbf16, #tpu.memory_space<vmem>>) attributes {dimension_semantics = [#tpu.dimension_semantics<parallel>, #tpu.dimension_semantics<parallel>, #tpu.dimension_semantics<arbitrary>], iteration_bounds = array<i64: 2, 1, 1>, scalar_prefetch = 0 : i64, scratch_operands = 1 : i64, tpu.core_type = #tpu.core_type<tc>, window_params = [{transform_indices = @transform_0, window_bounds = array<i64: 1, 32, 32, 3>}, {transform_indices = @transform_1, window_bounds = array<i64: 1, 1, 32, 3>}, {transform_indices = @transform_2, window_bounds = array<i64: 1, 1, 32, 3>}, {transform_indices = @transform_3, window_bounds = array<i64: 3, 9, 128>}, {transform_indices = @transform_4, window_bounds = array<i64: 1024, 128>}, {transform_indices = @transform_5, window_bounds = array<i64: 1, 2, 128>}]} {
    %c0_i32 = arith.constant 0 : i32
    %0 = arith.cmpi eq, %arg2, %c0_i32 : i32
    %1 = arith.extui %0 : i1 to i32
    %c0_i32_0 = arith.constant 0 : i32
    %2 = arith.cmpi ne, %1, %c0_i32_0 : i32
    scf.if %2 {
      %c0_38 = arith.constant 0 : index
      %c0_39 = arith.constant 0 : index
      %c0_40 = arith.constant 0 : index
      %c0_41 = arith.constant 0 : index
      %37 = vector.load %arg4[%c0_38, %c0_39, %c0_40, %c0_41] : memref<1x1x32x3xf32, #tpu.memory_space<vmem>>, vector<1x1x32x3xf32>
      %38 = vector.shape_cast %37 : vector<1x1x32x3xf32> to vector<1x32x3xf32>
      %c0_i32_42 = arith.constant 0 : i32
      %39 = arith.cmpi sgt, %arg1, %c0_i32_42 : i32
      %40 = arith.extui %39 : i1 to i32
      %41 = arith.sitofp %40 : i32 to f32
      %42 = vector.broadcast %41 : f32 to vector<1x32x3xf32>
      %43 = arith.mulf %38, %42 : vector<1x32x3xf32>
      %c0_43 = arith.constant 0 : index
      %c0_44 = arith.constant 0 : index
      %c0_45 = arith.constant 0 : index
      %c0_46 = arith.constant 0 : index
      %44 = vector.load %arg5[%c0_43, %c0_44, %c0_45, %c0_46] : memref<1x1x32x3xf32, #tpu.memory_space<vmem>>, vector<1x1x32x3xf32>
      %45 = vector.shape_cast %44 : vector<1x1x32x3xf32> to vector<1x32x3xf32>
      %c0_i32_47 = arith.constant 0 : i32
      %46 = arith.cmpi slt, %arg1, %c0_i32_47 : i32
      %47 = arith.extui %46 : i1 to i32
      %48 = arith.sitofp %47 : i32 to f32
      %49 = vector.broadcast %48 : f32 to vector<1x32x3xf32>
      %50 = arith.mulf %45, %49 : vector<1x32x3xf32>
      %c0_48 = arith.constant 0 : index
      %c0_49 = arith.constant 0 : index
      %c0_50 = arith.constant 0 : index
      %c0_51 = arith.constant 0 : index
      %51 = vector.load %arg3[%c0_48, %c0_49, %c0_50, %c0_51] : memref<1x32x32x3xf32, #tpu.memory_space<vmem>>, vector<1x32x32x3xf32>
      %52 = vector.shape_cast %51 : vector<1x32x32x3xf32> to vector<32x32x3xf32>
      %53 = tpu.concatenate %43, %52, %50 in 0 : vector<1x32x3xf32>, vector<32x32x3xf32>, vector<1x32x3xf32> -> vector<34x32x3xf32>
      %54 = arith.truncf %53 : vector<34x32x3xf32> to vector<34x32x3xbf16>
      %cst_52 = arith.constant 0.000000e+00 : bf16
      %55 = vector.broadcast %cst_52 : bf16 to vector<34x1x3xbf16>
      %56 = tpu.concatenate %55, %54, %55 in 1 : vector<34x1x3xbf16>, vector<34x32x3xbf16>, vector<34x1x3xbf16> -> vector<34x34x3xbf16>
      %57 = vector.extract_strided_slice %56 {offsets = [0, 0, 0], sizes = [34, 32, 3], strides = [1, 1, 1]} : vector<34x34x3xbf16> to vector<34x32x3xbf16>
      %58 = vector.extract_strided_slice %57 {offsets = [0, 0, 0], sizes = [32, 32, 3], strides = [1, 1, 1]} : vector<34x32x3xbf16> to vector<32x32x3xbf16>
      %59 = vector.extract_strided_slice %57 {offsets = [1, 0, 0], sizes = [32, 32, 3], strides = [1, 1, 1]} : vector<34x32x3xbf16> to vector<32x32x3xbf16>
      %60 = vector.extract_strided_slice %57 {offsets = [2, 0, 0], sizes = [32, 32, 3], strides = [1, 1, 1]} : vector<34x32x3xbf16> to vector<32x32x3xbf16>
      %61 = tpu.concatenate %58, %59, %60 in 2 : vector<32x32x3xbf16>, vector<32x32x3xbf16>, vector<32x32x3xbf16> -> vector<32x32x9xbf16>
      %62 = vector.shape_cast %61 : vector<32x32x9xbf16> to vector<1024x9xbf16>
      %c0_53 = arith.constant 0 : index
      %c0_54 = arith.constant 0 : index
      %c0_55 = arith.constant 0 : index
      %63 = vector.load %arg9[%c0_53, %c0_54, %c0_55] : memref<3x1024x9xbf16, #tpu.memory_space<vmem>>, vector<1x1024x9xbf16>
      %64 = vector.shape_cast %63 : vector<1x1024x9xbf16> to vector<1024x9xbf16>
      %65 = vector.shape_cast %62 : vector<1024x9xbf16> to vector<1x1024x9xbf16>
      tpu.vector_store %arg9[%c0_53, %c0_54, %c0_55], %65 {strides = array<i32>} : memref<3x1024x9xbf16, #tpu.memory_space<vmem>>, vector<1x1024x9xbf16>,
      %66 = vector.extract_strided_slice %56 {offsets = [0, 1, 0], sizes = [34, 32, 3], strides = [1, 1, 1]} : vector<34x34x3xbf16> to vector<34x32x3xbf16>
      %67 = vector.extract_strided_slice %66 {offsets = [0, 0, 0], sizes = [32, 32, 3], strides = [1, 1, 1]} : vector<34x32x3xbf16> to vector<32x32x3xbf16>
      %68 = vector.extract_strided_slice %66 {offsets = [1, 0, 0], sizes = [32, 32, 3], strides = [1, 1, 1]} : vector<34x32x3xbf16> to vector<32x32x3xbf16>
      %69 = vector.extract_strided_slice %66 {offsets = [2, 0, 0], sizes = [32, 32, 3], strides = [1, 1, 1]} : vector<34x32x3xbf16> to vector<32x32x3xbf16>
      %70 = tpu.concatenate %67, %68, %69 in 2 : vector<32x32x3xbf16>, vector<32x32x3xbf16>, vector<32x32x3xbf16> -> vector<32x32x9xbf16>
      %71 = vector.shape_cast %70 : vector<32x32x9xbf16> to vector<1024x9xbf16>
      %c1_56 = arith.constant 1 : index
      %c0_57 = arith.constant 0 : index
      %c0_58 = arith.constant 0 : index
      %72 = vector.load %arg9[%c1_56, %c0_57, %c0_58] : memref<3x1024x9xbf16, #tpu.memory_space<vmem>>, vector<1x1024x9xbf16>
      %73 = vector.shape_cast %72 : vector<1x1024x9xbf16> to vector<1024x9xbf16>
      %74 = vector.shape_cast %71 : vector<1024x9xbf16> to vector<1x1024x9xbf16>
      tpu.vector_store %arg9[%c1_56, %c0_57, %c0_58], %74 {strides = array<i32>} : memref<3x1024x9xbf16, #tpu.memory_space<vmem>>, vector<1x1024x9xbf16>,
      %75 = vector.extract_strided_slice %56 {offsets = [0, 2, 0], sizes = [34, 32, 3], strides = [1, 1, 1]} : vector<34x34x3xbf16> to vector<34x32x3xbf16>
      %76 = vector.extract_strided_slice %75 {offsets = [0, 0, 0], sizes = [32, 32, 3], strides = [1, 1, 1]} : vector<34x32x3xbf16> to vector<32x32x3xbf16>
      %77 = vector.extract_strided_slice %75 {offsets = [1, 0, 0], sizes = [32, 32, 3], strides = [1, 1, 1]} : vector<34x32x3xbf16> to vector<32x32x3xbf16>
      %78 = vector.extract_strided_slice %75 {offsets = [2, 0, 0], sizes = [32, 32, 3], strides = [1, 1, 1]} : vector<34x32x3xbf16> to vector<32x32x3xbf16>
      %79 = tpu.concatenate %76, %77, %78 in 2 : vector<32x32x3xbf16>, vector<32x32x3xbf16>, vector<32x32x3xbf16> -> vector<32x32x9xbf16>
      %80 = vector.shape_cast %79 : vector<32x32x9xbf16> to vector<1024x9xbf16>
      %c2_59 = arith.constant 2 : index
      %c0_60 = arith.constant 0 : index
      %c0_61 = arith.constant 0 : index
      %81 = vector.load %arg9[%c2_59, %c0_60, %c0_61] : memref<3x1024x9xbf16, #tpu.memory_space<vmem>>, vector<1x1024x9xbf16>
      %82 = vector.shape_cast %81 : vector<1x1024x9xbf16> to vector<1024x9xbf16>
      %83 = vector.shape_cast %80 : vector<1024x9xbf16> to vector<1x1024x9xbf16>
      tpu.vector_store %arg9[%c2_59, %c0_60, %c0_61], %83 {strides = array<i32>} : memref<3x1024x9xbf16, #tpu.memory_space<vmem>>, vector<1x1024x9xbf16>,
    } else {
    }
    %c0 = arith.constant 0 : index
    %c0_1 = arith.constant 0 : index
    %c0_2 = arith.constant 0 : index
    %3 = vector.load %arg9[%c0, %c0_1, %c0_2] : memref<3x1024x9xbf16, #tpu.memory_space<vmem>>, vector<1x1024x9xbf16>
    %4 = vector.shape_cast %3 : vector<1x1024x9xbf16> to vector<1024x9xbf16>
    %c0_3 = arith.constant 0 : index
    %c0_4 = arith.constant 0 : index
    %c0_5 = arith.constant 0 : index
    %5 = vector.load %arg6[%c0_3, %c0_4, %c0_5] : memref<3x9x128xbf16, #tpu.memory_space<vmem>>, vector<1x9x128xbf16>
    %6 = vector.shape_cast %5 : vector<1x9x128xbf16> to vector<9x128xbf16>
    %cst = arith.constant dense<0.000000e+00> : vector<1024x128xf32>
    %7 = tpu.matmul %4, %6, %cst {dimension_numbers = #tpu.dot_dimension_numbers<[1], [0], [0], [1], [0, 0, 1, 1], [], []>} : vector<1024x9xbf16>, vector<9x128xbf16>, vector<1024x128xf32> -> vector<1024x128xf32>
    %c0_6 = arith.constant 0 : index
    %c0_7 = arith.constant 0 : index
    %8 = vector.load %arg7[%c0_6, %c0_7] : memref<1024x128xf32, #tpu.memory_space<vmem>>, vector<1024x128xf32>
    tpu.vector_store %arg7[%c0_6, %c0_7], %7 {strides = array<i32>} : memref<1024x128xf32, #tpu.memory_space<vmem>>, vector<1024x128xf32>,
    %c0_8 = arith.constant 0 : index
    %c0_9 = arith.constant 0 : index
    %9 = vector.load %arg7[%c0_8, %c0_9] : memref<1024x128xf32, #tpu.memory_space<vmem>>, vector<1024x128xf32>
    %c1 = arith.constant 1 : index
    %c0_10 = arith.constant 0 : index
    %c0_11 = arith.constant 0 : index
    %10 = vector.load %arg9[%c1, %c0_10, %c0_11] : memref<3x1024x9xbf16, #tpu.memory_space<vmem>>, vector<1x1024x9xbf16>
    %11 = vector.shape_cast %10 : vector<1x1024x9xbf16> to vector<1024x9xbf16>
    %c1_12 = arith.constant 1 : index
    %c0_13 = arith.constant 0 : index
    %c0_14 = arith.constant 0 : index
    %12 = vector.load %arg6[%c1_12, %c0_13, %c0_14] : memref<3x9x128xbf16, #tpu.memory_space<vmem>>, vector<1x9x128xbf16>
    %13 = vector.shape_cast %12 : vector<1x9x128xbf16> to vector<9x128xbf16>
    %cst_15 = arith.constant dense<0.000000e+00> : vector<1024x128xf32>
    %14 = tpu.matmul %11, %13, %cst_15 {dimension_numbers = #tpu.dot_dimension_numbers<[1], [0], [0], [1], [0, 0, 1, 1], [], []>} : vector<1024x9xbf16>, vector<9x128xbf16>, vector<1024x128xf32> -> vector<1024x128xf32>
    %15 = arith.addf %9, %14 : vector<1024x128xf32>
    %c0_16 = arith.constant 0 : index
    %c0_17 = arith.constant 0 : index
    %16 = vector.load %arg7[%c0_16, %c0_17] : memref<1024x128xf32, #tpu.memory_space<vmem>>, vector<1024x128xf32>
    tpu.vector_store %arg7[%c0_16, %c0_17], %15 {strides = array<i32>} : memref<1024x128xf32, #tpu.memory_space<vmem>>, vector<1024x128xf32>,
    %c0_18 = arith.constant 0 : index
    %c0_19 = arith.constant 0 : index
    %17 = vector.load %arg7[%c0_18, %c0_19] : memref<1024x128xf32, #tpu.memory_space<vmem>>, vector<1024x128xf32>
    %c2 = arith.constant 2 : index
    %c0_20 = arith.constant 0 : index
    %c0_21 = arith.constant 0 : index
    %18 = vector.load %arg9[%c2, %c0_20, %c0_21] : memref<3x1024x9xbf16, #tpu.memory_space<vmem>>, vector<1x1024x9xbf16>
    %19 = vector.shape_cast %18 : vector<1x1024x9xbf16> to vector<1024x9xbf16>
    %c2_22 = arith.constant 2 : index
    %c0_23 = arith.constant 0 : index
    %c0_24 = arith.constant 0 : index
    %20 = vector.load %arg6[%c2_22, %c0_23, %c0_24] : memref<3x9x128xbf16, #tpu.memory_space<vmem>>, vector<1x9x128xbf16>
    %21 = vector.shape_cast %20 : vector<1x9x128xbf16> to vector<9x128xbf16>
    %cst_25 = arith.constant dense<0.000000e+00> : vector<1024x128xf32>
    %22 = tpu.matmul %19, %21, %cst_25 {dimension_numbers = #tpu.dot_dimension_numbers<[1], [0], [0], [1], [0, 0, 1, 1], [], []>} : vector<1024x9xbf16>, vector<9x128xbf16>, vector<1024x128xf32> -> vector<1024x128xf32>
    %23 = arith.addf %17, %22 : vector<1024x128xf32>
    %c0_26 = arith.constant 0 : index
    %c0_27 = arith.constant 0 : index
    %24 = vector.load %arg7[%c0_26, %c0_27] : memref<1024x128xf32, #tpu.memory_space<vmem>>, vector<1024x128xf32>
    tpu.vector_store %arg7[%c0_26, %c0_27], %23 {strides = array<i32>} : memref<1024x128xf32, #tpu.memory_space<vmem>>, vector<1024x128xf32>,
    %c0_28 = arith.constant 0 : index
    %c0_29 = arith.constant 0 : index
    %25 = vector.load %arg7[%c0_28, %c0_29] : memref<1024x128xf32, #tpu.memory_space<vmem>>, vector<1024x128xf32>
    %cst_30 = arith.constant dense<0.000000e+00> : vector<128xf32>
    %26 = vector.multi_reduction <add>, %25, %cst_30 [0] : vector<1024x128xf32> to vector<128xf32>
    %27 = vector.shape_cast %26 : vector<128xf32> to vector<1x128xf32>
    %c0_31 = arith.constant 0 : index
    %c0_32 = arith.constant 0 : index
    %c0_33 = arith.constant 0 : index
    %28 = vector.load %arg8[%c0_31, %c0_32, %c0_33] : memref<1x2x128xf32, #tpu.memory_space<vmem>>, vector<1x1x128xf32>
    %29 = vector.shape_cast %28 : vector<1x1x128xf32> to vector<1x128xf32>
    %30 = vector.shape_cast %27 : vector<1x128xf32> to vector<1x1x128xf32>
    tpu.vector_store %arg8[%c0_31, %c0_32, %c0_33], %30 {strides = array<i32>} : memref<1x2x128xf32, #tpu.memory_space<vmem>>, vector<1x1x128xf32>,
    %31 = arith.mulf %25, %25 : vector<1024x128xf32>
    %cst_34 = arith.constant dense<0.000000e+00> : vector<128xf32>
    %32 = vector.multi_reduction <add>, %31, %cst_34 [0] : vector<1024x128xf32> to vector<128xf32>
    %33 = vector.shape_cast %32 : vector<128xf32> to vector<1x128xf32>
    %c0_35 = arith.constant 0 : index
    %c1_36 = arith.constant 1 : index
    %c0_37 = arith.constant 0 : index
    %34 = vector.load %arg8[%c0_35, %c1_36, %c0_37] : memref<1x2x128xf32, #tpu.memory_space<vmem>>, vector<1x1x128xf32>
    %35 = vector.shape_cast %34 : vector<1x1x128xf32> to vector<1x128xf32>
    %36 = vector.shape_cast %33 : vector<1x128xf32> to vector<1x1x128xf32>
    tpu.vector_store %arg8[%c0_35, %c1_36, %c0_37], %36 {strides = array<i32>} : memref<1x2x128xf32, #tpu.memory_space<vmem>>, vector<1x1x128xf32>,
    return
  }
  func.func @transform_0(%arg0: i32, %arg1: i32, %arg2: i32) -> (i32, i32, i32, i32) {
    %c0_i32 = arith.constant 0 : i32
    %c0_i32_0 = arith.constant 0 : i32
    %c0_i32_1 = arith.constant 0 : i32
    return %arg0, %arg1, %c0_i32, %c0_i32_0 : i32, i32, i32, i32
  }
  func.func @transform_1(%arg0: i32, %arg1: i32, %arg2: i32) -> (i32, i32, i32, i32) {
    %c32_i32 = arith.constant 32 : i32
    %0 = arith.muli %arg1, %c32_i32 : i32
    %c1_i32 = arith.constant 1 : i32
    %1 = arith.subi %0, %c1_i32 : i32
    %c0_i32 = arith.constant 0 : i32
    %2 = arith.maxsi %1, %c0_i32 : i32
    %c0_i32_0 = arith.constant 0 : i32
    %c0_i32_1 = arith.constant 0 : i32
    %c0_i32_2 = arith.constant 0 : i32
    return %arg0, %2, %c0_i32_0, %c0_i32_1 : i32, i32, i32, i32
  }
  func.func @transform_2(%arg0: i32, %arg1: i32, %arg2: i32) -> (i32, i32, i32, i32) {
    %c32_i32 = arith.constant 32 : i32
    %0 = arith.muli %arg1, %c32_i32 : i32
    %c32_i32_0 = arith.constant 32 : i32
    %1 = arith.addi %0, %c32_i32_0 : i32
    %c31_i32 = arith.constant 31 : i32
    %2 = arith.minsi %1, %c31_i32 : i32
    %c0_i32 = arith.constant 0 : i32
    %c0_i32_1 = arith.constant 0 : i32
    %c0_i32_2 = arith.constant 0 : i32
    return %arg0, %2, %c0_i32, %c0_i32_1 : i32, i32, i32, i32
  }
  func.func @transform_3(%arg0: i32, %arg1: i32, %arg2: i32) -> (i32, i32, i32) {
    %c0_i32 = arith.constant 0 : i32
    %c0_i32_0 = arith.constant 0 : i32
    %c0_i32_1 = arith.constant 0 : i32
    return %c0_i32, %c0_i32_0, %arg2 : i32, i32, i32
  }
  func.func @transform_4(%arg0: i32, %arg1: i32, %arg2: i32) -> (i32, i32) {
    %c1_i32 = arith.constant 1 : i32
    %0 = arith.muli %arg0, %c1_i32 : i32
    %1 = arith.addi %0, %arg1 : i32
    %c0_i32 = arith.constant 0 : i32
    return %1, %arg2 : i32, i32
  }
  func.func @transform_5(%arg0: i32, %arg1: i32, %arg2: i32) -> (i32, i32, i32) {
    %c1_i32 = arith.constant 1 : i32
    %0 = arith.muli %arg0, %c1_i32 : i32
    %1 = arith.addi %0, %arg1 : i32
    %c0_i32 = arith.constant 0 : i32
    %c0_i32_0 = arith.constant 0 : i32
    return %1, %c0_i32, %arg2 : i32, i32, i32
  }
}

</mosaic_0001>

<bundles_post_ra>
// kernel: tpu_custom_call.1
= control target key start
LH: loop header
LB: loop body
LE: loop exit
PB: predicated region body
PF: predicated region fallthrough
CT: control target
= control target key end

     0   :  { %11 = vsyncpa [#allocation4], 0  ;;  %s11637_s0 = inlined_call_operand.vmem [shape: f32[2,32,32,3], index: 0, kind: input, shape index: {}]   ;;  %s11638_s1 = inlined_call_operand.vmem [shape: f32[2,32,32,3], index: 1, kind: input, shape index: {}]   ;;  %s11639_s2 = inlined_call_operand.vmem [shape: f32[2,32,32,3], index: 2, kind: input, shape index: {}]   ;;  %s11640_s3 = inlined_call_operand.vmem [shape: bf16[3,9,128], index: 3, kind: input, shape index: {}]   ;;  %s11641_s4 = inlined_call_operand.hbm [shape: f32[2048,128], index: 4, kind: output, shape index: {0}]   ;;  %s11642_s5 = inlined_call_operand.hbm [shape: f32[2,2,128], index: 5, kind: output, shape index: {1}]  }
   0x1   :  { %13 = vsyncpa [#allocation4 + $0x1], 0 }
   0x2   :  { %14 = vsyncpa [#allocation6], 0 }
   0x3   :  { %16 = vsyncpa [#allocation6 + $0x1], 0  ;;  %s9035_s18 = smov 0   ;;  %s9037_s19 = smov 0  }
   0x4   :  { %s9039_s20 = smov 0   ;;  %s9041_s21 = smov 0  }
   0x5   :  { %s9043_s22 = smov 0   ;;  %s9045_s23 = smov 0  }
   0x6 LB: > { %s7493_s24 = sadd.s32 4294967295, %s8996_s23   ;;  %s7494_s25 = sadd.s32 4294967294, %s8996_s23   ;;  %s8996_s23 = sphi %s9045_s23, %s22_s23   ;;  %s8992_s22 = sphi %s9043_s22, %s11734_s22   ;;  %s8988_s21 = sphi %s9041_s21, %s11733_s21   ;;  %s8984_s20 = sphi %s9039_s20, %s11732_s20   ;;  %s8980_s19 = sphi %s9037_s19, %s11731_s19   ;;  %s8976_s18 = sphi %s9035_s18, %s11730_s18  }
   0x7   : > { %s41_s26 = sadd.s32 1, %s8992_s22  ;;  %s178_s27 = sadd.s32 1, %s8984_s20 }
   0x8   : > { %p43_p0 = scmp.ge.s32.totalorder %s41_s26, 2  ;;  %p188_p1 = scmp.ne.s32.totalorder %s8984_s20, %s8980_s19 }
   0x9   : > { %p189_p2 = scmp.eq.s32.totalorder %s7493_s24, 1  ;;  %p194_p3 = scmp.ne.s32.totalorder %s8980_s19, %s8976_s18 }
   0xa   : > { %s11736_s26 = smov (%p43_p0, %s41_s26), 0  ;;  %p195_p5 = scmp.eq.s32.totalorder %s7494_s25, 1 }
   0xb   : > { %p9075_p4 = por %p189_p2, %p188_p1  ;;  %s173_s29 = ssub.s32 %s8992_s22, %s11736_s26 }
   0xc   : > { %p7498_p6 = scmp.ge.s32.totalorder %s8996_s23, 1  ;;  %p176_p7 = scmp.eq.s32.totalorder %s173_s29, 0 }
   0xd   : > { %p9082_p8 = por %p195_p5, %p194_p3  ;;  %p304_p9 = scmp.lt.s32.totalorder %s8996_s23, 3 }
   0xe   : > { %s9088_s6 = scalar_select %p176_p7, %s8984_s20, %s178_s27  }
   0xf   : > { %p305_p10 = pnand %p7498_p6, %p304_p9 }
  0x11   : > { %308 = sbr.rel (%p305_p10) target bundleno = 883 (0x373), region = 36 }
  0x18   : > { %p373_p11 = scmp.lt.s32.totalorder %s8988_s21, 1  ;;  %vm649_vm0 = vsmask.f32 256  ;;  %vm1228_vm1 = vcmask 1040384   ;;  %s8998_s12 = smov 6   ;;  %vm3683_vm3 = vcmask 1043456  }
  0x19   : > { %vm9114_vm2 = vmand %vm1228_vm1, %vm649_vm0  ;;  %s8999_s13 = smov 3   ;;  %vm3684_vm4 = vcmask 1044480   ;;  %vm1587_vm5 = vcmask 23552   ;;  %vm1780_vm6 = vcmask 48128   ;;  %vm1973_vm7 = vcmask 72704  }
  0x1a   : > { %s374_s7 = scalar_select %p373_p11, %s8988_s21, 1  ;;  %vm3129_vm8 = vcmask 1046528   ;;  %vm2359_vm9 = vsmask.f32 7424 }
  0x1c   : > { %s9092_s8 = sshll.u32 %s374_s7, 10 }
  0x1d   : > { %s9098_s11 = scalar_lea.vmem %s11637_s0, %s9092_s8  ;;  %s395_s7 = scalar_lea.vmem %s11638_s1, %s9092_s8 }
  0x1e   : > { %v459_v0 = vld [vmem:[%s9098_s11 + $0x30] sm:$0xff]  ;;  %v460_v1 = vld [vmem:[%s9098_s11 + $0x38] sm:$0xff]  ;;  %v457_v5 = vld [vmem:[%s9098_s11 + $0x20] sm:$0xff]  ;;  %s7716_s9 = sadd.s32 992, %s9092_s8 }
  0x1f   : > { %v455_v2 = vld [vmem:[%s9098_s11 + $0x10] sm:$0xff]  ;;  %v586_v3 = vpack.c.bf16 %v460_v1, %v459_v0  ;;  %v456_v4 = vld [vmem:[%s9098_s11 + $0x18] sm:$0xff]  ;;  %v458_v6 = vld [vmem:[%s9098_s11 + $0x28] sm:$0xff]  ;;  %s412_s14 = scalar_lea.vmem %s11639_s2, %s7716_s9 }
  0x20   : > { %v584_v7 = vpack.c.bf16 %v456_v4, %v455_v2  ;;  %v585_v8 = vpack.c.bf16 %v458_v6, %v457_v5  ;;  %v453_v9 = vld [vmem:[%s9098_s11] sm:$0xff]  ;;  %v454_v10 = vld [vmem:[%s9098_s11 + $0x8] sm:$0xff]  ;;  %v463_v15 = vld [vmem:[%s9098_s11 + $0x50] sm:$0xff] }
  0x21   : > { %v461_v11 = vld [vmem:[%s9098_s11 + $0x40] sm:$0xff]  ;;  %v688_v12 = vshrl.u32 %v586_v3, 16  ;;  %v583_v13 = vpack.c.bf16 %v454_v10, %v453_v9  ;;  %v462_v14 = vld [vmem:[%s9098_s11 + $0x48] sm:$0xff]  ;;  %v464_v16 = vld [vmem:[%s9098_s11 + $0x58] sm:$0xff]  ;;  %v691_v17 = vshll.u32 %v586_v3, 16 }
  0x22   : > { %v673_v19 = vshrl.u32 %v584_v7, 16  ;;  %v681_v20 = vshrl.u32 %v585_v8, 16  ;;  %v684_v21 = vshll.u32 %v585_v8, 16  ;;  %v676_v23 = vshll.u32 %v584_v7, 16  ;;  %v467_v47 = vld [vmem:[%s9098_s11 + $0x70] sm:$0xff]  ;;  %v468_v48 = vld [vmem:[%s9098_s11 + $0x78] sm:$0xff] }
  0x23   : > { %v690_v22 = vrot.slane %v688_v12, 7  ;;  %v666_v24 = vshrl.u32 %v583_v13, 16  ;;  %v669_v25 = vshll.u32 %v583_v13, 16  ;;  %v587_v28 = vpack.c.bf16 %v462_v14, %v461_v11  ;;  %v465_v49 = vld [vmem:[%s9098_s11 + $0x60] sm:$0xff]  ;;  %v466_v50 = vld [vmem:[%s9098_s11 + $0x68] sm:$0xff]  ;;  %v471_v0 = vld [vmem:[%s9098_s11 + $0x90] sm:$0xff] }
  0x24   : > { %v675_v26 = vrot.slane %v673_v19, 7  ;;  %v683_v27 = vrot.slane %v681_v20, 7  ;;  %v588_v29 = vpack.c.bf16 %v464_v16, %v463_v15  ;;  %v590_v52 = vpack.c.bf16 %v468_v48, %v467_v47  ;;  %v472_v1 = vld [vmem:[%s9098_s11 + $0x98] sm:$0xff]  ;;  %v469_v2 = vld [vmem:[%s9098_s11 + $0x80] sm:$0xff]  ;;  %v470_v3 = vld [vmem:[%s9098_s11 + $0x88] sm:$0xff] }
  0x25   : > { %v9120_v30 = vsel %vm9114_vm2, %v690_v22, 0  ;;  %v668_v31 = vrot.slane %v666_v24, 7  ;;  %v693_v34 = vor.u32 %v691_v17, %v690_v22  ;;  %v696_v39 = vshrl.u32 %v587_v28, 16  ;;  %v475_v17 = vld [vmem:[%s9098_s11 + $0xb0] sm:$0xff]  ;;  %v476_v19 = vld [vmem:[%s9098_s11 + $0xb8] sm:$0xff]  ;;  %v473_v20 = vld [vmem:[%s9098_s11 + $0xa0] sm:$0xff] }
  0x26   : > { %2135 = vrot.lane.b32.xlu1 %v9120_v30, %s8998_s12  ;;  %v9126_v32 = vsel %vm9114_vm2, %v675_v26, 0  ;;  %v686_v33 = vor.u32 %v684_v21, %v683_v27  ;;  %v703_v36 = vshrl.u32 %v588_v29, 16  ;;  %v678_v37 = vor.u32 %v676_v23, %v675_v26  ;;  %v474_v21 = vld [vmem:[%s9098_s11 + $0xa8] sm:$0xff]  ;;  %v8883_v26 = vld [vmem:[%s11640_s3] sm:$0x1f]   ;;  %v479_v48 = vld [vmem:[%s9098_s11 + $0xd0] sm:$0xff] }
  0x27   : > { %2070 = vrot.lane.b32.xlu0 %v9126_v32, %s8999_s13  ;;  %v671_v35 = vor.u32 %v669_v25, %v668_v31  ;;  %v9143_v41 = vsel %vm649_vm0, %v683_v27, %v693_v34  ;;  %v706_v43 = vshll.u32 %v588_v29, 16  ;;  %v698_v45 = vrot.slane %v696_v39, 7  ;;  %v8884_v29 = vld [vmem:[%s11640_s3 + $0x8] sm:$0x1f]  }
  0x28   : > { %v9132_v38 = vsel %vm9114_vm2, 0, %v686_v33  ;;  %v705_v42 = vrot.slane %v703_v36, 7  ;;  %v9146_v44 = vsel %vm649_vm0, %v668_v31, %v678_v37  ;;  %v699_v46 = vshll.u32 %v587_v28, 16 }
  0x29   : > { %v9136_v40 = vsel %vm9114_vm2, 0, %v671_v35  ;;  %v589_v54 = vpack.c.bf16 %v466_v50, %v465_v49  ;;  %v718_v56 = vshrl.u32 %v590_v52, 16  ;;  %v721_v61 = vshll.u32 %v590_v52, 16  ;;  %v480_v49 = vld [vmem:[%s9098_s11 + $0xd8] sm:$0xff]  ;;  %v477_v50 = vld [vmem:[%s9098_s11 + $0xc0] sm:$0xff] }
  0x2a   : > { %1459 = vrot.lane.b32.xlu1 %v9132_v38, %s8998_s12  ;;  %v708_v51 = vor.u32 %v706_v43, %v705_v42  ;;  %v701_v53 = vor.u32 %v699_v46, %v698_v45  ;;  %v9173_v59 = vsel %vm9114_vm2, %v705_v42, 0  ;;  %v592_v5 = vpack.c.bf16 %v472_v1, %v471_v0 }
  0x2b   : > { %1330 = vrot.lane.b32.xlu0 %v9136_v40, %s8999_s13  ;;  %v711_v58 = vshrl.u32 %v589_v54, 16  ;;  %v720_v60 = vrot.slane %v718_v56, 7  ;;  %v714_v63 = vshll.u32 %v589_v54, 16  ;;  %v591_v7 = vpack.c.bf16 %v470_v3, %v469_v2 }
  0x2c   : > { %v9161_v55 = vsel %vm649_vm0, %v698_v45, %v708_v51  ;;  %v9165_v57 = vsel %vm9114_vm2, 0, %v701_v53  ;;  %v733_v9 = vshrl.u32 %v592_v5, 16  ;;  %v736_v14 = vshll.u32 %v592_v5, 16  ;;  %v478_v51 = vld [vmem:[%s9098_s11 + $0xc8] sm:$0xff]  ;;  %v484_v5 = vld [vmem:[%s9098_s11 + $0xf8] sm:$0xff] }
  0x2d   : > { %v713_v62 = vrot.slane %v711_v58, 7  ;;  %v723_v4 = vor.u32 %v721_v61, %v720_v60  ;;  %v726_v11 = vshrl.u32 %v591_v7, 16  ;;  %v9200_v12 = vsel %vm9114_vm2, %v720_v60, 0 }
  0x2e   : > { %1461 = vrot.lane.b32.xlu1 %v9143_v41, %s8998_s12  ;;  %v735_v13 = vrot.slane %v733_v9, 7  ;;  %v729_v16 = vshll.u32 %v591_v7, 16  ;;  %v594_v23 = vpack.c.bf16 %v476_v19, %v475_v17  ;;  %v593_v25 = vpack.c.bf16 %v474_v21, %v473_v20  ;;  %v482_v7 = vld [vmem:[%s9098_s11 + $0xe8] sm:$0xff] }
  0x2f   : > { %1332 = vrot.lane.b32.xlu0 %v9146_v44, %s8999_s13  ;;  %v716_v6 = vor.u32 %v714_v63, %v713_v62  ;;  %v9188_v8 = vsel %vm649_vm0, %v713_v62, %v723_v4  ;;  %v728_v15 = vrot.slane %v726_v11, 7  ;;  %v9000_v27 = vmov 65535   ;;  %v483_v4 = vld [vmem:[%s9098_s11 + $0xf0] sm:$0xff] }
  0x30   : > { %v738_v22 = vor.u32 %v736_v14, %v735_v13  ;;  %v3685_v28 = vsel %vm3683_vm3, 4294967295, %v9000_v27  ;;  %v748_v33 = vshrl.u32 %v594_v23, 16  ;;  %v741_v36 = vshrl.u32 %v593_v25, 16  ;;  %v485_v27 = vld [vmem:[%s9098_s11 + $0x100] sm:$0xff] }
  0x31   : > { %v9192_v10 = vsel %vm9114_vm2, 0, %v716_v6  ;;  %v731_v24 = vor.u32 %v729_v16, %v728_v15  ;;  %v9223_v34 = vsel %vm3684_vm4, %v3685_v28, 0  ;;  %v9239_v42 = vsel %vm9114_vm2, %v735_v13, 0  ;;  %v481_v6 = vld [vmem:[%s9098_s11 + $0xe0] sm:$0xff]  ;;  %v486_v28 = vld [vmem:[%s9098_s11 + $0x108] sm:$0xff] }
  0x32   : > { %1336 = vrot.lane.b32.xlu1 %v9143_v41, %s8999_s13  ;;  %v9221_v31 = vsel %vm649_vm0, %v728_v15, %v738_v22  ;;  %v3688_v37 = vand.u32 %v8883_v26, %v9223_v34  ;;  %v9231_v39 = vand.u32 %v8884_v29, %v9223_v34  ;;  %v750_v43 = vrot.slane %v748_v33, 7  ;;  %v488_v26 = vld [vmem:[%s9098_s11 + $0x118] sm:$0xff] }
  0x33   : > { %1334 = vrot.lane.b32.xlu0 %v9132_v38, %s8999_s13  ;;  %v9227_v35 = vsel %vm9114_vm2, 0, %v731_v24  ;;  %v751_v45 = vshll.u32 %v594_v23, 16  ;;  %v743_v46 = vrot.slane %v741_v36, 7  ;;  %v744_v47 = vshll.u32 %v593_v25, 16  ;;  %v487_v25 = vld [vmem:[%s9098_s11 + $0x110] sm:$0xff] }
  0x34   : > { %7914 = vmatprep.subr.bf16.mxu1 %v3688_v37  ;;  %8044 = vmatprep.subr.bf16.mxu0 %v9231_v39  ;;  %v596_v53 = vpack.c.bf16 %v480_v49, %v479_v48  ;;  %v595_v56 = vpack.c.bf16 %v478_v51, %v477_v50  ;;  %v9269_v63 = vsel %vm9114_vm2, %v750_v43, 0  ;;  %v598_v11 = vpack.c.bf16 %v484_v5, %v483_v4  ;;  %v8885_v48 = vld [vmem:[%s11640_s3 + $0x10] sm:$0x1f]  }
  0x35   : > { %7915 = vmatpush3.bf16.msra.mxu1 %v3688_v37  ;;  %8045 = vmatpush3.bf16.msra.mxu0 %v9231_v39  ;;  %v753_v52 = vor.u32 %v751_v45, %v750_v43  ;;  %v746_v54 = vor.u32 %v744_v47, %v743_v46  ;;  %v597_v14 = vpack.c.bf16 %v482_v7, %v481_v6 }
  0x36   : > { %1465 = vrot.lane.b32.xlu1 %v9161_v55, %s8998_s12  ;;  %8304 = vmatprep.subr.bf16.mxu1 %v9231_v39  ;;  %v763_v60 = vshrl.u32 %v596_v53, 16  ;;  %v756_v62 = vshrl.u32 %v595_v56, 16  ;;  %v766_v1 = vshll.u32 %v596_v53, 16  ;;  %v759_v3 = vshll.u32 %v595_v56, 16  ;;  %v491_v56 = vld [vmem:[%s9098_s11 + $0x130] sm:$0xff] }
  0x37   : > { %1463 = vrot.lane.b32.xlu0 %v9165_v57, %s8998_s12  ;;  %v9257_v58 = vsel %vm649_vm0, %v743_v46, %v753_v52  ;;  %v9261_v61 = vsel %vm9114_vm2, 0, %v746_v54  ;;  %v778_v16 = vshrl.u32 %v598_v11, 16  ;;  %v771_v19 = vshrl.u32 %v597_v14, 16 }
  0x38   : > { %v765_v0 = vrot.slane %v763_v60, 7  ;;  %v758_v2 = vrot.slane %v756_v62, 7  ;;  %v781_v22 = vshll.u32 %v598_v11, 16  ;;  %v774_v24 = vshll.u32 %v597_v14, 16  ;;  %v492_v60 = vld [vmem:[%s9098_s11 + $0x138] sm:$0xff]  ;;  %v489_v62 = vld [vmem:[%s9098_s11 + $0x120] sm:$0xff] }
  0x39   : > { %v780_v21 = vrot.slane %v778_v16, 7  ;;  %v773_v23 = vrot.slane %v771_v19, 7  ;;  %v600_v33 = vpack.c.bf16 %v488_v26, %v487_v25  ;;  %v599_v37 = vpack.c.bf16 %v486_v28, %v485_v27  ;;  %v495_v19 = vld [vmem:[%s9098_s11 + $0x150] sm:$0xff]  ;;  %v429_v28 = vld [vmem:[%s395_s7] sm:$0xff] }
  0x3a   : > { %2137 = vrot.lane.b32.xlu1 %v9173_v59, %s8998_s12  ;;  %v768_v9 = vor.u32 %v766_v1, %v765_v0  ;;  %v761_v13 = vor.u32 %v759_v3, %v758_v2  ;;  %v9296_v20 = vsel %vm9114_vm2, %v765_v0, 0  ;;  %v9329_v52 = vand.u32 %v8885_v48, %v9223_v34  ;;  %v490_v0 = vld [vmem:[%s9098_s11 + $0x128] sm:$0xff] }
  0x3b   : > { %2072 = vrot.lane.b32.xlu0 %v9120_v30, %s8999_s13  ;;  %v783_v29 = vor.u32 %v781_v22, %v780_v21  ;;  %v776_v36 = vor.u32 %v774_v24, %v773_v23  ;;  %v793_v45 = vshrl.u32 %v600_v33, 16  ;;  %v786_v47 = vshrl.u32 %v599_v37, 16  ;;  %v493_v22 = vld [vmem:[%s9098_s11 + $0x140] sm:$0xff] }
  0x3c   : > { %v9284_v15 = vsel %vm649_vm0, %v758_v2, %v768_v9  ;;  %v9288_v17 = vsel %vm9114_vm2, 0, %v761_v13  ;;  %v9326_v49 = vsel %vm9114_vm2, %v780_v21, 0  ;;  %v796_v51 = vshll.u32 %v600_v33, 16  ;;  %8174 = vmatprep.subr.bf16.mxu0 %v9329_v52  ;;  %v496_v21 = vld [vmem:[%s9098_s11 + $0x158] sm:$0xff] }
  0x3d   : > { %v9311_v43 = vsel %vm649_vm0, %v773_v23, %v783_v29  ;;  %v9315_v46 = vsel %vm9114_vm2, 0, %v776_v36  ;;  %v795_v50 = vrot.slane %v793_v45, 7  ;;  %v788_v53 = vrot.slane %v786_v47, 7  ;;  %v494_v23 = vld [vmem:[%s9098_s11 + $0x148] sm:$0xff]  ;;  %v432_v45 = vld [vmem:[%s395_s7 + $0x18] sm:$0xff] }
  0x3e   : > { %1340 = vrot.lane.b32.xlu1 %v9161_v55, %s8999_s13  ;;  %v789_v54 = vshll.u32 %v599_v37, 16  ;;  %v602_v2 = vpack.c.bf16 %v492_v60, %v491_v56  ;;  %v601_v34 = vpack.c.bf16 %v490_v0, %v489_v62  ;;  %v604_v25 = vpack.c.bf16 %v496_v21, %v495_v19  ;;  %v430_v29 = vld [vmem:[%s395_s7 + $0x8] sm:$0xff]  ;;  %v431_v37 = vld [vmem:[%s395_s7 + $0x10] sm:$0xff]  ;;  %s9001_s7 = smov [#allocation3]  }
  0x3f   : > { %1338 = vrot.lane.b32.xlu0 %v9165_v57, %s8999_s13  ;;  %v798_v1 = vor.u32 %v796_v51, %v795_v50  ;;  %v9357_v9 = vsel %vm9114_vm2, %v795_v50, 0  ;;  %v603_v27 = vpack.c.bf16 %v494_v23, %v493_v22  ;;  %v437_v47 = vmul.f32 0.0, %v429_v28  ;;  %s8890_s9 = sshll.u32 %s9001_s7, 4  ;;  %s8891_s9 = int_to_ptr.vmem [resolvable:$false] %s8890_s9 }
  0x40   : > { %v791_v3 = vor.u32 %v789_v54, %v788_v53  ;;  %v808_v5 = vshrl.u32 %v602_v2, 16  ;;  %v801_v7 = vshrl.u32 %v601_v34, 16  ;;  %v811_v13 = vshll.u32 %v602_v2, 16  ;;  %s8892_s8 = scalar_lea.vmem %s8891_s9, 32768 }
  0x41   : > { %v9345_v4 = vsel %vm649_vm0, %v788_v53, %v798_v1  ;;  %v804_v16 = vshll.u32 %v601_v34, 16  ;;  %v823_v36 = vshrl.u32 %v604_v25, 16  ;;  %v438_v48 = vmul.f32 0.0, %v430_v29  ;;  %v500_v34 = vld [vmem:[%s9098_s11 + $0x178] sm:$0xff] }
  0x42   : > { %1469 = vrot.lane.b32.xlu1 %v9188_v8, %s8998_s12  ;;  %v9349_v6 = vsel %vm9114_vm2, 0, %v791_v3  ;;  %v810_v11 = vrot.slane %v808_v5, 7  ;;  %v803_v14 = vrot.slane %v801_v7, 7  ;;  %v816_v51 = vshrl.u32 %v603_v27, 16  ;;  %v499_v3 = vld [vmem:[%s9098_s11 + $0x170] sm:$0xff]  ;;  %v497_v5 = vld [vmem:[%s9098_s11 + $0x160] sm:$0xff] }
  0x43   : > { %1467 = vrot.lane.b32.xlu0 %v9192_v10, %s8998_s12  ;;  %v439_v53 = vmul.f32 0.0, %v431_v37  ;;  %v440_v54 = vmul.f32 0.0, %v432_v45  ;;  %v825_v60 = vrot.slane %v823_v36, 7  ;;  %v826_v62 = vshll.u32 %v604_v25, 16  ;;  %v498_v7 = vld [vmem:[%s9098_s11 + $0x168] sm:$0xff] }
  0x44   : > { %v813_v24 = vor.u32 %v811_v13, %v810_v11  ;;  %v806_v26 = vor.u32 %v804_v16, %v803_v14  ;;  %v9388_v56 = vsel %vm9114_vm2, %v810_v11, 0  ;;  %v581_v0 = vpack.c.bf16 %v438_v48, %v437_v47 }
  0x45   : > { %v818_v1 = vrot.slane %v816_v51, 7  ;;  %v819_v2 = vshll.u32 %v603_v27, 16  ;;  %v582_v13 = vpack.c.bf16 %v440_v54, %v439_v53  ;;  %v606_v11 = vpack.c.bf16 %v500_v34, %v499_v3  ;;  %v501_v51 = vld [vmem:[%s9098_s11 + $0x180] sm:$0xff]  ;;  %v502_v53 = vld [vmem:[%s9098_s11 + $0x188] sm:$0xff] }
  0x46   : > { %2139 = vrot.lane.b32.xlu1 %v9200_v12, %s8998_s12  ;;  %v9376_v33 = vsel %vm649_vm0, %v803_v14, %v813_v24  ;;  %v9380_v50 = vsel %vm9114_vm2, 0, %v806_v26  ;;  %v828_v14 = vor.u32 %v826_v62, %v825_v60  ;;  %v651_v16 = vshrl.u32 %v581_v0, 16 }
  0x47   : > { %2074 = vrot.lane.b32.xlu0 %v9173_v59, %s8999_s13  ;;  %v821_v19 = vor.u32 %v819_v2, %v818_v1  ;;  %v605_v21 = vpack.c.bf16 %v498_v7, %v497_v5  ;;  %v658_v22 = vshrl.u32 %v582_v13, 16  ;;  %v654_v25 = vshll.u32 %v581_v0, 16  ;;  %v504_v2 = vld [vmem:[%s9098_s11 + $0x198] sm:$0xff] }
  0x48   : > { %v9403_v23 = vsel %vm649_vm0, %v818_v1, %v828_v14  ;;  %v653_v24 = vrot.slane %v651_v16, 7  ;;  %v838_v26 = vshrl.u32 %v606_v11, 16  ;;  %v9413_v36 = vsel %vm9114_vm2, %v825_v60, 0  ;;  %v503_v1 = vld [vmem:[%s9098_s11 + $0x190] sm:$0xff] }
  0x49   : > { %v9407_v27 = vsel %vm9114_vm2, 0, %v821_v19  ;;  %v831_v28 = vshrl.u32 %v605_v21, 16  ;;  %v660_v29 = vrot.slane %v658_v22, 7  ;;  %v661_v37 = vshll.u32 %v582_v13, 16 }
  0x4a   : > { %1344 = vrot.lane.b32.xlu1 %v9188_v8, %s8999_s13  ;;  %v656_v45 = vor.u32 %v654_v25, %v653_v24  ;;  %v840_v47 = vrot.slane %v838_v26, 7  ;;  %v841_v48 = vshll.u32 %v606_v11, 16  ;;  %v834_v0 = vshll.u32 %v605_v21, 16 }
  0x4b   : > { %1342 = vrot.lane.b32.xlu0 %v9192_v10, %s8999_s13  ;;  %v833_v62 = vrot.slane %v831_v28, 7  ;;  %v1264_v34 = vsel %vm9114_vm2, %v660_v29, 0  ;;  %v9425_v60 = vpack.c.bf16 %v502_v53, %v501_v51  ;;  %v663_v5 = vor.u32 %v661_v37, %v660_v29 }
  0x4c   : > { %v1230_v7 = vsel %vm9114_vm2, 0, %v656_v45  ;;  %v843_v13 = vor.u32 %v841_v48, %v840_v47  ;;  %v608_v14 = vpack.c.bf16 %v504_v2, %v503_v1 }
  0x4d   : > { %v836_v11 = vor.u32 %v834_v0, %v833_v62  ;;  %v846_v25 = vshrl.u32 %v9425_v60, 16  ;;  %v664_v28 = vsel %vm649_vm0, %v653_v24, %v663_v5  ;;  %v9451_v24 = vsel %vm9114_vm2, %v840_v47, 0 }
  0x4e   : > { %1473 = vrot.lane.b32.xlu1 %v9221_v31, %s8998_s12  ;;  %v9441_v29 = vsel %vm649_vm0, %v833_v62, %v843_v13  ;;  %v853_v37 = vshrl.u32 %v608_v14, 16  ;;  %v856_v62 = vshll.u32 %v608_v14, 16  ;;  %v505_v13 = vld [vmem:[%s9098_s11 + $0x1a0] sm:$0xff]  ;;  %v506_v14 = vld [vmem:[%s9098_s11 + $0x1a8] sm:$0xff] }
  0x4f   : > { %1471 = vrot.lane.b32.xlu0 %v9227_v35, %s8998_s12  ;;  %v9447_v53 = vsel %vm9114_vm2, 0, %v836_v11  ;;  %v848_v2 = vrot.slane %v846_v25, 7  ;;  %v507_v25 = vld [vmem:[%s9098_s11 + $0x1b0] sm:$0xff] }
  0x50   : > { %v855_v47 = vrot.slane %v853_v37, 7 }
  0x52   : > { %2141 = vrot.lane.b32.xlu1 %v9239_v42, %s8998_s12 }
  0x53   : > { %2076 = vrot.lane.b32.xlu0 %v9200_v12, %s8999_s13 }
  0x56   : > { %1348 = vrot.lane.b32.xlu1 %v9221_v31, %s8999_s13 }
  0x57   : > { %1346 = vrot.lane.b32.xlu0 %v9227_v35, %s8999_s13 }
  0x5a   : > { %1477 = vrot.lane.b32.xlu1 %v9257_v58, %s8998_s12 }
  0x5b   : > { %1475 = vrot.lane.b32.xlu0 %v9261_v61, %s8998_s12 }
  0x5e   : > { %2143 = vrot.lane.b32.xlu1 %v9269_v63, %s8998_s12 }
  0x5f   : > { %2078 = vrot.lane.b32.xlu0 %v9239_v42, %s8999_s13 }
  0x62   : > { %1352 = vrot.lane.b32.xlu1 %v9257_v58, %s8999_s13 }
  0x63   : > { %1350 = vrot.lane.b32.xlu0 %v9261_v61, %s8999_s13 }
  0x66   : > { %1481 = vrot.lane.b32.xlu1 %v9284_v15, %s8998_s12 }
  0x67   : > { %1479 = vrot.lane.b32.xlu0 %v9288_v17, %s8998_s12 }
  0x6a   : > { %2145 = vrot.lane.b32.xlu1 %v9296_v20, %s8998_s12 }
  0x6b   : > { %2080 = vrot.lane.b32.xlu0 %v9269_v63, %s8999_s13 }
  0x6e   : > { %1356 = vrot.lane.b32.xlu1 %v9284_v15, %s8999_s13 }
  0x6f   : > { %1354 = vrot.lane.b32.xlu0 %v9288_v17, %s8999_s13 }
  0x72   : > { %1485 = vrot.lane.b32.xlu1 %v9311_v43, %s8998_s12 }
  0x73   : > { %1483 = vrot.lane.b32.xlu0 %v9315_v46, %s8998_s12 }
  0x76   : > { %2147 = vrot.lane.b32.xlu1 %v9326_v49, %s8998_s12 }
  0x77   : > { %2082 = vrot.lane.b32.xlu0 %v9296_v20, %s8999_s13 }
  0x7a   : > { %1360 = vrot.lane.b32.xlu1 %v9311_v43, %s8999_s13 }
  0x7b   : > { %1358 = vrot.lane.b32.xlu0 %v9315_v46, %s8999_s13 }
  0x7e   : > { %1489 = vrot.lane.b32.xlu1 %v9345_v4, %s8998_s12 }
  0x7f   : > { %1487 = vrot.lane.b32.xlu0 %v9349_v6, %s8998_s12 }
  0x82   : > { %2149 = vrot.lane.b32.xlu1 %v9357_v9, %s8998_s12 }
  0x83   : > { %2084 = vrot.lane.b32.xlu0 %v9326_v49, %s8999_s13 }
  0x86   : > { %1364 = vrot.lane.b32.xlu1 %v9345_v4, %s8999_s13 }
  0x87   : > { %1362 = vrot.lane.b32.xlu0 %v9349_v6, %s8999_s13 }
  0x8a   : > { %1493 = vrot.lane.b32.xlu1 %v9376_v33, %s8998_s12 }
  0x8b   : > { %1491 = vrot.lane.b32.xlu0 %v9380_v50, %s8998_s12 }
  0x8e   : > { %2151 = vrot.lane.b32.xlu1 %v9388_v56, %s8998_s12 }
  0x8f   : > { %2086 = vrot.lane.b32.xlu0 %v9357_v9, %s8999_s13 }
  0x92   : > { %1368 = vrot.lane.b32.xlu1 %v9376_v33, %s8999_s13 }
  0x93   : > { %1366 = vrot.lane.b32.xlu0 %v9380_v50, %s8999_s13 }
  0x96   : > { %1497 = vrot.lane.b32.xlu1 %v9403_v23, %s8998_s12 }
  0x97   : > { %1495 = vrot.lane.b32.xlu0 %v9407_v27, %s8998_s12 }
  0x98   : > { %v2136_v54 = vpop.permute.xlu1 %2135 }
  0x99   : > { %v2071_v3 = vpop.permute.xlu0 %2070 }
  0x9a   : > { %2153 = vrot.lane.b32.xlu1 %v9413_v36, %s8998_s12  ;;  %v2201_v19 = vsel %vm1587_vm5, %v1264_v34, %v2071_v3  ;;  %v849_v3 = vshll.u32 %v9425_v60, 16 }
  0x9b   : > { %2088 = vrot.lane.b32.xlu0 %v9388_v56, %s8999_s13  ;;  %v2296_v45 = vsel %vm1780_vm6, %v2201_v19, %v2136_v54 }
  0x9c   : > { %v1460_v16 = vpop.permute.xlu1 %1459  ;;  %v2373_v34 = vshll.u32 %v2296_v45, 16 }
  0x9d   : > { %v1331_v21 = vpop.permute.xlu0 %1330 }
  0x9e   : > { %v1590_v22 = vsel %vm1587_vm5, %v1230_v7, %v1331_v21  ;;  %1372 = vrot.lane.b32.xlu1 %v9403_v23, %s8999_s13 }
  0x9f   : > { %v1782_v26 = vsel %vm1780_vm6, %v1590_v22, %v1460_v16  ;;  %1370 = vrot.lane.b32.xlu0 %v9407_v27, %s8999_s13  ;;  %v3133_v16 = vrot.slane %v2296_v45, 1  ;;  %v858_v45 = vor.u32 %v856_v62, %v855_v47 }
  0xa0   : > { %1974 = vst.msk [vmem:[#allocation2] sm:$0xff] %vm1973_vm7, %v1782_v26  ;;  %v2362_v48 = vshll.u32 %v1782_v26, 16  ;;  %v1462_v51 = vpop.permute.xlu1 %1461  ;;  %v2360_v5 = vshrl.u32 %v1782_v26, 16  ;;  %v3130_v11 = vrot.slane %v1782_v26, 1 }
  0xa1   : > { %v1333_v0 = vpop.permute.xlu0 %1332 }
  0xa2   : > { %v2364_v1 = vrot.slane %v2362_v48, 1  ;;  %v1593_v54 = vsel %vm1587_vm5, %v664_v28, %v1333_v0  ;;  %1501 = vrot.lane.b32.xlu1 %v9441_v29, %s8998_s12  ;;  %v508_v28 = vld [vmem:[%s9098_s11 + $0x1b8] sm:$0xff] }
  0xa3   : > { %v1785_v7 = vsel %vm1780_vm6, %v1593_v54, %v1462_v51  ;;  %1499 = vrot.lane.b32.xlu0 %v9447_v53, %s8998_s12 }
  0xa4   : > { %1975 = vst.msk [vmem:[#allocation2 + $0x8] sm:$0xff] %vm1973_vm7, %v1785_v7  ;;  %v2366_v19 = vshll.u32 %v1785_v7, 16  ;;  %v3131_v21 = vrot.slane %v1785_v7, 1  ;;  %v1337_v22 = vpop.permute.xlu1 %1336  ;;  %v2365_v60 = vor.u32 %v2364_v1, %v2360_v5  ;;  %v2370_v51 = vshrl.u32 %v1785_v7, 16 }
  0xa5   : > { %v1335_v48 = vpop.permute.xlu0 %1334  ;;  %v851_v1 = vor.u32 %v849_v3, %v848_v2  ;;  %v9473_v5 = vpack.c.bf16 %v506_v14, %v505_v13  ;;  %v9475_v7 = vpack.c.bf16 %v508_v28, %v507_v25  ;;  %v9494_v25 = vsel %vm649_vm0, %v848_v2, %v858_v45 }
  0xa6   : > { %v2368_v0 = vrot.slane %v2366_v19, 1  ;;  %v3132_v54 = vsel %vm3129_vm8, %v3130_v11, %v3131_v21  ;;  %v3134_v37 = vsel %vm3129_vm8, %v3131_v21, %v3133_v16  ;;  %2155 = vrot.lane.b32.xlu1 %v9451_v24, %s8998_s12  ;;  %v2375_v11 = vrot.slane %v2373_v34, 1 }
  0xa7   : > { %3355 = vst.msk [vmem:[#allocation2 + $0x400] sm:$0xff] %vm1973_vm7, %v3132_v54  ;;  %3356 = vst.msk [vmem:[#allocation2 + $0x408] sm:$0xff] %vm1973_vm7, %v3134_v37  ;;  %2090 = vrot.lane.b32.xlu0 %v9413_v36, %s8999_s13  ;;  %v3419_v26 = vld [vmem:[#allocation2] sm:$0xff]  ;;  %v1599_v21 = vsel %vm1587_vm5, %v9146_v44, %v1337_v22  ;;  %v1596_v13 = vsel %vm1587_vm5, %v9136_v40, %v1335_v48  ;;  %v861_v40 = vshrl.u32 %v9473_v5, 16  ;;  %v868_v28 = vshrl.u32 %v9475_v7, 16 }
  0xa8   : > { %v2369_v16 = vsel %vm2359_vm9, %v2365_v60, %v2368_v0  ;;  %v2372_v19 = vor.u32 %v2370_v51, %v2368_v0  ;;  %7916 = vmatprep.mubr.msk.bf16.mxu1 %vm1973_vm7, %v3419_v26  ;;  %v1466_v54 = vpop.permute.xlu1 %1465  ;;  %v9502_v51 = vsel %vm9114_vm2, 0, %v851_v1  ;;  %v9506_v2 = vsel %vm9114_vm2, %v855_v47, 0 }
  0xa9   : > { %2969 = vst.msk [vmem:[#allocation2 + $0x200] sm:$0xff] %vm1973_vm7, %v2369_v16  ;;  %v1791_v37 = vsel %vm1780_vm6, %v1599_v21, %v1466_v54  ;;  %v1464_v62 = vpop.permute.xlu0 %1463  ;;  %v864_v45 = vshll.u32 %v9473_v5, 16  ;;  %v9519_v5 = vrot.slane %v868_v28, 7  ;;  %v871_v54 = vshll.u32 %v9475_v7, 16 }
  0xaa   : > { %v2376_v3 = vsel %vm2359_vm9, %v2372_v19, %v2375_v11  ;;  %1977 = vst.msk [vmem:[#allocation2 + $0x18] sm:$0xff] %vm1973_vm7, %v1791_v37  ;;  %v2383_v34 = vshll.u32 %v1791_v37, 16  ;;  %v3136_v14 = vrot.slane %v1791_v37, 1  ;;  %1376 = vrot.lane.b32.xlu1 %v9441_v29, %s8999_s13  ;;  %v1788_v44 = vsel %vm1780_vm6, %v1596_v13, %v1464_v62  ;;  %v509_v62 = vld [vmem:[%s9098_s11 + $0x1c0] sm:$0xff] }
  0xab   : > { %2970 = vst.msk [vmem:[#allocation2 + $0x208] sm:$0xff] %vm1973_vm7, %v2376_v3  ;;  %1374 = vrot.lane.b32.xlu0 %v9447_v53, %s8999_s13  ;;  %v3420_v22 = vld [vmem:[#allocation2 + $0x8] sm:$0xff]  ;;  %1976 = vst.msk [vmem:[#allocation2 + $0x10] sm:$0xff] %vm1973_vm7, %v1788_v44  ;;  %v2379_v60 = vshll.u32 %v1788_v44, 16  ;;  %v3135_v48 = vrot.slane %v1788_v44, 1  ;;  %v2377_v16 = vshrl.u32 %v1788_v44, 16 }
  0xac   : > { %7917 = vmatmul.mubr.msk.bf16.vlgmr.msra.gmra.mrb[0].mxu1 %vm1973_vm7, %v3420_v22  ;;  %v2138_v0 = vpop.permute.xlu1 %2137  ;;  %v2385_v26 = vrot.slane %v2383_v34, 1  ;;  %v510_v3 = vld [vmem:[%s9098_s11 + $0x1c8] sm:$0xff] }
  0xad   : > { %v2073_v11 = vpop.permute.xlu0 %2072  ;;  %8305 = vmatpush3.bf16.msra.mxu1 %v9231_v39  ;;  %v2381_v19 = vrot.slane %v2379_v60, 1  ;;  %v3137_v21 = vsel %vm3129_vm8, %v3135_v48, %v3136_v14  ;;  %v863_v39 = vrot.slane %v861_v40, 7  ;;  %v511_v48 = vld [vmem:[%s9098_s11 + $0x1d0] sm:$0xff] }
  0xae   : > { %v2204_v1 = vsel %vm1587_vm5, %v9126_v32, %v2073_v11  ;;  %1505 = vrot.lane.b32.xlu1 %v9494_v25, %s8998_s12  ;;  %3357 = vst.msk [vmem:[#allocation2 + $0x410] sm:$0xff] %vm1973_vm7, %v3137_v21  ;;  %v2387_v32 = vshrl.u32 %v1791_v37, 16  ;;  %v512_v11 = vld [vmem:[%s9098_s11 + $0x1d8] sm:$0xff] }
  0xaf   : > { %v2298_v47 = vsel %vm1780_vm6, %v2204_v1, %v2138_v0  ;;  %1503 = vrot.lane.b32.xlu0 %v9502_v51, %s8998_s12  ;;  %v2382_v13 = vor.u32 %v2381_v19, %v2377_v16  ;;  %v9537_v19 = vpack.c.bf16 %v510_v3, %v509_v62 }
  0xb0   : > { %v2390_v34 = vshll.u32 %v2298_v47, 16  ;;  %v3138_v44 = vrot.slane %v2298_v47, 1  ;;  %v1341_v22 = vpop.permute.xlu1 %1340  ;;  %v4492_v60 = vld [vmem:[#allocation2 + $0x200] sm:$0xff]  ;;  %v2389_v21 = vor.u32 %v2387_v32, %v2385_v26 }
  0xb1   : > { %8046 = vmatprep.mubr.msk.bf16.mxu0 %vm1973_vm7, %v4492_v60  ;;  %v1339_v0 = vpop.permute.xlu0 %1338  ;;  %v2386_v40 = vsel %vm2359_vm9, %v2382_v13, %v2385_v26  ;;  %v3422_v37 = vld [vmem:[#allocation2 + $0x18] sm:$0xff]  ;;  %v873_v26 = vor.u32 %v871_v54, %v9519_v5  ;;  %v1605_v32 = vsel %vm1587_vm5, %v9143_v41, %v1341_v22 }
  0xb2   : > { %v2392_v28 = vrot.slane %v2390_v34, 1  ;;  %v3139_v1 = vsel %vm3129_vm8, %v3136_v14, %v3138_v44  ;;  %2157 = vrot.lane.b32.xlu1 %v9506_v2, %s8998_s12  ;;  %v4493_v7 = vld [vmem:[#allocation2 + $0x208] sm:$0xff]  ;;  %2971 = vst.msk [vmem:[#allocation2 + $0x210] sm:$0xff] %vm1973_vm7, %v2386_v40  ;;  %v3421_v16 = vld [vmem:[#allocation2 + $0x10] sm:$0xff]  ;;  %v9539_v14 = vpack.c.bf16 %v512_v11, %v511_v48  ;;  %v866_v34 = vor.u32 %v864_v45, %v863_v39 }
  0xb3   : > { %3358 = vst.msk [vmem:[#allocation2 + $0x418] sm:$0xff] %vm1973_vm7, %v3139_v1  ;;  %2092 = vrot.lane.b32.xlu0 %v9451_v24, %s8999_s13  ;;  %8047 = vmatmul.mubr.msk.bf16.vlgmr.msra.gmra.mrb[0].mxu0 %vm1973_vm7, %v4493_v7  ;;  %v1602_v54 = vsel %vm1587_vm5, %v9132_v38, %v1339_v0  ;;  %v9559_v38 = vsel %vm649_vm0, %v863_v39, %v873_v26  ;;  %v876_v0 = vshrl.u32 %v9537_v19, 16  ;;  %v879_v26 = vshll.u32 %v9537_v19, 16 }
  0xb4   : > { %v2393_v47 = vsel %vm2359_vm9, %v2389_v21, %v2392_v28  ;;  %7920 = vmatprep.mubr.msk.bf16.mxu1 %vm1973_vm7, %v3421_v16  ;;  %v1470_v13 = vpop.permute.xlu1 %1469  ;;  %8175 = vmatpush3.bf16.msra.mxu0 %v9329_v52  ;;  %v883_v60 = vshrl.u32 %v9539_v14, 16  ;;  %v9564_v11 = vsel %vm9114_vm2, 0, %v866_v34  ;;  %v886_v16 = vshll.u32 %v9539_v14, 16  ;;  %v515_v34 = vld [vmem:[%s9098_s11 + $0x1f0] sm:$0xff] }
  0xb5   : > { %2972 = vst.msk [vmem:[#allocation2 + $0x218] sm:$0xff] %vm1973_vm7, %v2393_v47  ;;  %7921 = vmatmul.mubr.msk.bf16.gmra.mrb[4].mxu1 %vm1973_vm7, %v3422_v37  ;;  %v1797_v62 = vsel %vm1780_vm6, %v1605_v32, %v1470_v13  ;;  %v1468_v3 = vpop.permute.xlu0 %1467 }
  0xb6   : > { %1979 = vst.msk [vmem:[#allocation2 + $0x28] sm:$0xff] %vm1973_vm7, %v1797_v62  ;;  %v2400_v44 = vshll.u32 %v1797_v62, 16  ;;  %v3141_v41 = vrot.slane %v1797_v62, 1  ;;  %v1794_v22 = vsel %vm1780_vm6, %v1602_v54, %v1468_v3  ;;  %1380 = vrot.lane.b32.xlu1 %v9494_v25, %s8999_s13  ;;  %v885_v13 = vrot.slane %v883_v60, 7 }
  0xb7   : > { %1978 = vst.msk [vmem:[#allocation2 + $0x20] sm:$0xff] %vm1973_vm7, %v1794_v22  ;;  %v2396_v52 = vshll.u32 %v1794_v22, 16  ;;  %v3140_v45 = vrot.slane %v1794_v22, 1  ;;  %1378 = vrot.lane.b32.xlu0 %v9502_v51, %s8999_s13  ;;  %v2394_v21 = vshrl.u32 %v1794_v22, 16  ;;  %v2404_v14 = vshrl.u32 %v1797_v62, 16 }
  0xb8   : > { %v2140_v48 = vpop.permute.xlu1 %2139  ;;  %v2402_v7 = vrot.slane %v2400_v44, 1  ;;  %v878_v22 = vrot.slane %v876_v0, 7  ;;  %v888_v0 = vor.u32 %v886_v16, %v885_v13 }
  0xb9   : > { %v2398_v40 = vrot.slane %v2396_v52, 1  ;;  %v3142_v28 = vsel %vm3129_vm8, %v3140_v45, %v3141_v41  ;;  %v2075_v1 = vpop.permute.xlu0 %2074  ;;  %v4494_v37 = vld [vmem:[#allocation2 + $0x210] sm:$0xff]  ;;  %v516_v52 = vld [vmem:[%s9098_s11 + $0x1f8] sm:$0xff] }
  0xba   : > { %3359 = vst.msk [vmem:[#allocation2 + $0x420] sm:$0xff] %vm1973_vm7, %v3142_v28  ;;  %v2207_v39 = vsel %vm1587_vm5, %v9120_v30, %v2075_v1  ;;  %1509 = vrot.lane.b32.xlu1 %v9559_v38, %s8998_s12  ;;  %8050 = vmatprep.mubr.msk.bf16.mxu0 %vm1973_vm7, %v4494_v37  ;;  %v9582_v30 = vsel %vm9114_vm2, %v9519_v5, 0  ;;  %v514_v28 = vld [vmem:[%s9098_s11 + $0x1e8] sm:$0xff]  ;;  %v2406_v1 = vor.u32 %v2404_v14, %v2402_v7 }
  0xbb   : > { %v2399_v47 = vor.u32 %v2398_v40, %v2394_v21  ;;  %v2300_v32 = vsel %vm1780_vm6, %v2207_v39, %v2140_v48  ;;  %1507 = vrot.lane.b32.xlu0 %v9564_v11, %s8998_s12  ;;  %v513_v40 = vld [vmem:[%s9098_s11 + $0x1e0] sm:$0xff]  ;;  %v9598_v39 = vpack.c.bf16 %v516_v52, %v515_v34 }
  0xbc   : > { %v2407_v54 = vshll.u32 %v2300_v32, 16  ;;  %v3143_v19 = vrot.slane %v2300_v32, 1  ;;  %v1345_v3 = vpop.permute.xlu1 %1344  ;;  %v4495_v44 = vld [vmem:[#allocation2 + $0x218] sm:$0xff]  ;;  %v9604_v32 = vpack.c.bf16 %v514_v28, %v513_v40 }
  0xbd   : > { %v2403_v45 = vsel %vm2359_vm9, %v2399_v47, %v2402_v7  ;;  %8051 = vmatmul.mubr.msk.bf16.gmra.mrb[4].mxu0 %vm1973_vm7, %v4495_v44  ;;  %v1343_v48 = vpop.permute.xlu0 %1342  ;;  %v3424_v21 = vld [vmem:[#allocation2 + $0x28] sm:$0xff]  ;;  %v1611_v37 = vsel %vm1587_vm5, %v9161_v55, %v1345_v3  ;;  %v881_v47 = vor.u32 %v879_v26, %v878_v22  ;;  %v898_v44 = vshrl.u32 %v9598_v39, 16 }
  0xbe   : > { %2973 = vst.msk [vmem:[#allocation2 + $0x220] sm:$0xff] %vm1973_vm7, %v2403_v45  ;;  %v2409_v5 = vrot.slane %v2407_v54, 1  ;;  %v3144_v62 = vsel %vm3129_vm8, %v3141_v41, %v3143_v19  ;;  %2159 = vrot.lane.b32.xlu1 %v9582_v30, %s8998_s12  ;;  %v3423_v60 = vld [vmem:[#allocation2 + $0x20] sm:$0xff]  ;;  %v1608_v14 = vsel %vm1587_vm5, %v9165_v57, %v1343_v48  ;;  %v9618_v57 = vsel %vm649_vm0, %v878_v22, %v888_v0 }
  0xbf   : > { %3360 = vst.msk [vmem:[#allocation2 + $0x428] sm:$0xff] %vm1973_vm7, %v3144_v62  ;;  %2094 = vrot.lane.b32.xlu0 %v9506_v2, %s8999_s13  ;;  %7924 = vmatprep.mubr.msk.bf16.mxu1 %vm1973_vm7, %v3423_v60  ;;  %v9623_v45 = vsel %vm9114_vm2, 0, %v881_v47  ;;  %v891_v48 = vshrl.u32 %v9604_v32, 16  ;;  %v9635_v60 = vsel %vm9114_vm2, %v885_v13, 0  ;;  %v894_v0 = vshll.u32 %v9604_v32, 16  ;;  %v517_v47 = vld [vmem:[%s9098_s11 + $0x200] sm:$0xff] }
  0xc0   : > { %v2410_v7 = vsel %vm2359_vm9, %v2406_v1, %v2409_v5  ;;  %7925 = vmatmul.mubr.msk.bf16.gmra.mrb[8].mxu1 %vm1973_vm7, %v3424_v21  ;;  %v1474_v41 = vpop.permute.xlu1 %1473  ;;  %v518_v32 = vld [vmem:[%s9098_s11 + $0x208] sm:$0xff] }
  0xc1   : > { %2974 = vst.msk [vmem:[#allocation2 + $0x228] sm:$0xff] %vm1973_vm7, %v2410_v7  ;;  %v1803_v16 = vsel %vm1780_vm6, %v1611_v37, %v1474_v41  ;;  %v1472_v34 = vpop.permute.xlu0 %1471  ;;  %v9641_v41 = vrot.slane %v898_v44, 7 }
  0xc2   : > { %1981 = vst.msk [vmem:[#allocation2 + $0x38] sm:$0xff] %vm1973_vm7, %v1803_v16  ;;  %v2417_v54 = vshll.u32 %v1803_v16, 16  ;;  %v3146_v19 = vrot.slane %v1803_v16, 1  ;;  %v1800_v55 = vsel %vm1780_vm6, %v1608_v14, %v1472_v34  ;;  %1384 = vrot.lane.b32.xlu1 %v9559_v38, %s8999_s13  ;;  %v519_v14 = vld [vmem:[%s9098_s11 + $0x210] sm:$0xff]  ;;  %v520_v34 = vld [vmem:[%s9098_s11 + $0x218] sm:$0xff] }
  0xc3   : > { %1980 = vst.msk [vmem:[#allocation2 + $0x30] sm:$0xff] %vm1973_vm7, %v1800_v55  ;;  %v2413_v26 = vshll.u32 %v1800_v55, 16  ;;  %v3145_v3 = vrot.slane %v1800_v55, 1  ;;  %1382 = vrot.lane.b32.xlu0 %v9564_v11, %s8999_s13  ;;  %v2411_v21 = vshrl.u32 %v1800_v55, 16 }
  0xc4   : > { %v2142_v52 = vpop.permute.xlu1 %2141  ;;  %v2419_v22 = vrot.slane %v2417_v54, 1  ;;  %v2421_v54 = vshrl.u32 %v1803_v16, 16 }
  0xc5   : > { %v2415_v40 = vrot.slane %v2413_v26, 1  ;;  %v3147_v28 = vsel %vm3129_vm8, %v3145_v3, %v3146_v19  ;;  %v2077_v1 = vpop.permute.xlu0 %2076  ;;  %v4496_v5 = vld [vmem:[#allocation2 + $0x220] sm:$0xff] }
  0xc6   : > { %3361 = vst.msk [vmem:[#allocation2 + $0x430] sm:$0xff] %vm1973_vm7, %v3147_v28  ;;  %v2210_v62 = vsel %vm1587_vm5, %v9173_v59, %v2077_v1  ;;  %8054 = vmatprep.mubr.msk.bf16.mxu0 %vm1973_vm7, %v4496_v5  ;;  %1513 = vrot.lane.b32.xlu1 %v9618_v57, %s8998_s12  ;;  %v901_v59 = vshll.u32 %v9598_v39, 16  ;;  %v893_v28 = vrot.slane %v891_v48, 7  ;;  %v2423_v44 = vor.u32 %v2421_v54, %v2419_v22 }
  0xc7   : > { %v2416_v7 = vor.u32 %v2415_v40, %v2411_v21  ;;  %v2302_v37 = vsel %vm1780_vm6, %v2210_v62, %v2142_v52  ;;  %1511 = vrot.lane.b32.xlu0 %v9623_v45, %s8998_s12  ;;  %v9654_v5 = vpack.c.bf16 %v520_v34, %v519_v14 }
  0xc8   : > { %v2424_v55 = vshll.u32 %v2302_v37, 16  ;;  %v3148_v13 = vrot.slane %v2302_v37, 1  ;;  %v1349_v26 = vpop.permute.xlu1 %1348  ;;  %v4497_v3 = vld [vmem:[#allocation2 + $0x228] sm:$0xff]  ;;  %v903_v48 = vor.u32 %v901_v59, %v9641_v41  ;;  %v896_v37 = vor.u32 %v894_v0, %v893_v28 }
  0xc9   : > { %v2420_v21 = vsel %vm2359_vm9, %v2416_v7, %v2419_v22  ;;  %8055 = vmatmul.mubr.msk.bf16.gmra.mrb[8].mxu0 %vm1973_vm7, %v4497_v3  ;;  %v1347_v52 = vpop.permute.xlu0 %1346  ;;  %v3426_v40 = vld [vmem:[#allocation2 + $0x38] sm:$0xff]  ;;  %v9661_v22 = vpack.c.bf16 %v518_v32, %v517_v47 }
  0xca   : > { %2975 = vst.msk [vmem:[#allocation2 + $0x230] sm:$0xff] %vm1973_vm7, %v2420_v21  ;;  %v2426_v39 = vrot.slane %v2424_v55, 1  ;;  %v3149_v1 = vsel %vm3129_vm8, %v3146_v19, %v3148_v13  ;;  %2161 = vrot.lane.b32.xlu1 %v9635_v60, %s8998_s12  ;;  %v3425_v16 = vld [vmem:[#allocation2 + $0x30] sm:$0xff]  ;;  %v1617_v19 = vsel %vm1587_vm5, %v9188_v8, %v1349_v26  ;;  %v1614_v14 = vsel %vm1587_vm5, %v9192_v10, %v1347_v52 }
  0xcb   : > { %3362 = vst.msk [vmem:[#allocation2 + $0x438] sm:$0xff] %vm1973_vm7, %v3149_v1  ;;  %2096 = vrot.lane.b32.xlu0 %v9582_v30, %s8999_s13  ;;  %7928 = vmatprep.mubr.msk.bf16.mxu1 %vm1973_vm7, %v3425_v16  ;;  %v913_v8 = vshrl.u32 %v9654_v5, 16  ;;  %v9680_v13 = vsel %vm649_vm0, %v893_v28, %v903_v48  ;;  %v906_v26 = vshrl.u32 %v9661_v22, 16  ;;  %v9685_v32 = vsel %vm9114_vm2, 0, %v896_v37  ;;  %v521_v16 = vld [vmem:[%s9098_s11 + $0x220] sm:$0xff] }
  0xcc   : > { %v2427_v62 = vsel %vm2359_vm9, %v2423_v44, %v2426_v39  ;;  %7929 = vmatmul.mubr.msk.bf16.gmra.mrb[12].mxu1 %vm1973_vm7, %v3426_v40  ;;  %v1478_v7 = vpop.permute.xlu1 %1477  ;;  %11679 = vst [vmem:[#allocation9_spill] sm:$0xff] %v9685_v32  ;;  %v916_v1 = vshll.u32 %v9654_v5, 16 }
  0xcd   : > { %2976 = vst.msk [vmem:[#allocation2 + $0x238] sm:$0xff] %vm1973_vm7, %v2427_v62  ;;  %v1809_v34 = vsel %vm1780_vm6, %v1617_v19, %v1478_v7  ;;  %v1476_v54 = vpop.permute.xlu0 %1475  ;;  %v522_v62 = vld [vmem:[%s9098_s11 + $0x228] sm:$0xff]  ;;  %v915_v48 = vrot.slane %v913_v8, 7  ;;  %v909_v7 = vshll.u32 %v9661_v22, 16  ;;  %v523_v8 = vld [vmem:[%s9098_s11 + $0x230] sm:$0xff] }
  0xce   : > { %1983 = vst.msk [vmem:[#allocation2 + $0x48] sm:$0xff] %vm1973_vm7, %v1809_v34  ;;  %v2434_v59 = vshll.u32 %v1809_v34, 16  ;;  %v3151_v47 = vrot.slane %v1809_v34, 1  ;;  %v1806_v55 = vsel %vm1780_vm6, %v1614_v14, %v1476_v54  ;;  %1388 = vrot.lane.b32.xlu1 %v9618_v57, %s8999_s13  ;;  %v9704_v14 = vsel %vm9114_vm2, %v9641_v41, 0 }
  0xcf   : > { %1982 = vst.msk [vmem:[#allocation2 + $0x40] sm:$0xff] %vm1973_vm7, %v1806_v55  ;;  %v2430_v0 = vshll.u32 %v1806_v55, 16  ;;  %v3150_v10 = vrot.slane %v1806_v55, 1  ;;  %1386 = vrot.lane.b32.xlu0 %v9623_v45, %s8999_s13  ;;  %v2428_v21 = vshrl.u32 %v1806_v55, 16  ;;  %11680 = vst [vmem:[#allocation10_spill] sm:$0xff] %v9704_v14  ;;  %v2438_v54 = vshrl.u32 %v1809_v34, 16 }
  0xd0   : > { %v2144_v3 = vpop.permute.xlu1 %2143  ;;  %v2436_v19 = vrot.slane %v2434_v59, 1  ;;  %v9708_v22 = vpack.c.bf16 %v522_v62, %v521_v16 }
  0xd1   : > { %v2432_v52 = vrot.slane %v2430_v0, 1  ;;  %v3152_v40 = vsel %vm3129_vm8, %v3150_v10, %v3151_v47  ;;  %v2079_v44 = vpop.permute.xlu0 %2078  ;;  %v4498_v39 = vld [vmem:[#allocation2 + $0x230] sm:$0xff] }
  0xd2   : > { %3363 = vst.msk [vmem:[#allocation2 + $0x440] sm:$0xff] %vm1973_vm7, %v3152_v40  ;;  %v2213_v28 = vsel %vm1587_vm5, %v9200_v12, %v2079_v44  ;;  %8058 = vmatprep.mubr.msk.bf16.mxu0 %vm1973_vm7, %v4498_v39  ;;  %1517 = vrot.lane.b32.xlu1 %v9680_v13, %s8998_s12  ;;  %v908_v12 = vrot.slane %v906_v26, 7  ;;  %v524_v40 = vld [vmem:[%s9098_s11 + $0x238] sm:$0xff]  ;;  %v2440_v44 = vor.u32 %v2438_v54, %v2436_v19 }
  0xd3   : > { %v2433_v37 = vor.u32 %v2432_v52, %v2428_v21  ;;  %v2304_v5 = vsel %vm1780_vm6, %v2213_v28, %v2144_v3  ;;  %1515 = vrot.lane.b32.xlu0 %v9685_v32, %s8998_s12  ;;  %v918_v39 = vor.u32 %v916_v1, %v915_v48  ;;  %v9720_v16 = vpack.c.bf16 %v524_v40, %v523_v8  ;;  %v527_v8 = vld [vmem:[%s9098_s11 + $0x250] sm:$0xff]  ;;  %v528_v40 = vld [vmem:[%s9098_s11 + $0x258] sm:$0xff] }
  0xd4   : > { %v2441_v59 = vshll.u32 %v2304_v5, 16  ;;  %v3153_v55 = vrot.slane %v2304_v5, 1  ;;  %v1353_v0 = vpop.permute.xlu1 %1352  ;;  %v4499_v10 = vld [vmem:[#allocation2 + $0x238] sm:$0xff]  ;;  %v911_v1 = vor.u32 %v909_v7, %v908_v12  ;;  %v921_v28 = vshrl.u32 %v9708_v22, 16  ;;  %v526_v5 = vld [vmem:[%s9098_s11 + $0x248] sm:$0xff] }
  0xd5   : > { %v2437_v3 = vsel %vm2359_vm9, %v2433_v37, %v2436_v19  ;;  %8059 = vmatmul.mubr.msk.bf16.gmra.mrb[12].mxu0 %vm1973_vm7, %v4499_v10  ;;  %v1351_v21 = vpop.permute.xlu0 %1350  ;;  %v3428_v52 = vld [vmem:[#allocation2 + $0x48] sm:$0xff]  ;;  %v1623_v19 = vsel %vm1587_vm5, %v9221_v31, %v1353_v0  ;;  %v525_v37 = vld [vmem:[%s9098_s11 + $0x240] sm:$0xff]  ;;  %v9738_v7 = vsel %vm649_vm0, %v908_v12, %v918_v39  ;;  %v9754_v12 = vsel %vm9114_vm2, %v915_v48, 0 }
  0xd6   : > { %2977 = vst.msk [vmem:[#allocation2 + $0x240] sm:$0xff] %vm1973_vm7, %v2437_v3  ;;  %v2443_v41 = vrot.slane %v2441_v59, 1  ;;  %v3154_v34 = vsel %vm3129_vm8, %v3151_v47, %v3153_v55  ;;  %2163 = vrot.lane.b32.xlu1 %v9704_v14, %s8998_s12  ;;  %v3427_v26 = vld [vmem:[#allocation2 + $0x40] sm:$0xff]  ;;  %v1620_v54 = vsel %vm1587_vm5, %v9227_v35, %v1351_v21  ;;  %v928_v21 = vshrl.u32 %v9720_v16, 16 }
  0xd7   : > { %3364 = vst.msk [vmem:[#allocation2 + $0x448] sm:$0xff] %vm1973_vm7, %v3154_v34  ;;  %2098 = vrot.lane.b32.xlu0 %v9635_v60, %s8999_s13  ;;  %7932 = vmatprep.mubr.msk.bf16.mxu1 %vm1973_vm7, %v3427_v26  ;;  %v9756_v34 = vrot.slane %v921_v28, 7  ;;  %v931_v48 = vshll.u32 %v9720_v16, 16  ;;  %v924_v28 = vshll.u32 %v9708_v22, 16  ;;  %v531_v16 = vld [vmem:[%s9098_s11 + $0x270] sm:$0xff] }
  0xd8   : > { %v2444_v62 = vsel %vm2359_vm9, %v2440_v44, %v2443_v41  ;;  %7933 = vmatmul.mubr.msk.bf16.gmra.mrb[16].mxu1 %vm1973_vm7, %v3428_v52  ;;  %v1482_v47 = vpop.permute.xlu1 %1481  ;;  %v9746_v52 = vpack.c.bf16 %v526_v5, %v525_v37  ;;  %v9750_v41 = vsel %vm9114_vm2, 0, %v911_v1  ;;  %v9759_v37 = vpack.c.bf16 %v528_v40, %v527_v8  ;;  %v530_v8 = vld [vmem:[%s9098_s11 + $0x268] sm:$0xff] }
  0xd9   : > { %2978 = vst.msk [vmem:[#allocation2 + $0x248] sm:$0xff] %vm1973_vm7, %v2444_v62  ;;  %v1815_v59 = vsel %vm1780_vm6, %v1623_v19, %v1482_v47  ;;  %v1480_v55 = vpop.permute.xlu0 %1479 }
  0xda   : > { %1985 = vst.msk [vmem:[#allocation2 + $0x58] sm:$0xff] %vm1973_vm7, %v1815_v59  ;;  %v2451_v31 = vshll.u32 %v1815_v59, 16  ;;  %v3156_v0 = vrot.slane %v1815_v59, 1  ;;  %v1812_v10 = vsel %vm1780_vm6, %v1620_v54, %v1480_v55  ;;  %1392 = vrot.lane.b32.xlu1 %v9680_v13, %s8999_s13  ;;  %v2455_v40 = vshrl.u32 %v1815_v59, 16 }
  0xdb   : > { %1984 = vst.msk [vmem:[#allocation2 + $0x50] sm:$0xff] %vm1973_vm7, %v1812_v10  ;;  %v2447_v35 = vshll.u32 %v1812_v10, 16  ;;  %v3155_v3 = vrot.slane %v1812_v10, 1  ;;  %1390 = vrot.lane.b32.xlu0 %v9685_v32, %s8999_s13  ;;  %v2445_v26 = vshrl.u32 %v1812_v10, 16  ;;  %v529_v10 = vld [vmem:[%s9098_s11 + $0x260] sm:$0xff] }
  0xdc   : > { %v2146_v44 = vpop.permute.xlu1 %2145  ;;  %v2453_v5 = vrot.slane %v2451_v31, 1  ;;  %v9772_v31 = vrot.slane %v928_v21, 7  ;;  %v943_v21 = vshrl.u32 %v9759_v37, 16  ;;  %v9786_v32 = vpack.c.bf16 %v530_v8, %v529_v10 }
  0xdd   : > { %v2449_v39 = vrot.slane %v2447_v35, 1  ;;  %v3157_v62 = vsel %vm3129_vm8, %v3155_v3, %v3156_v0  ;;  %v2081_v19 = vpop.permute.xlu0 %2080  ;;  %v4500_v47 = vld [vmem:[#allocation2 + $0x240] sm:$0xff] }
  0xde   : > { %3365 = vst.msk [vmem:[#allocation2 + $0x450] sm:$0xff] %vm1973_vm7, %v3157_v62  ;;  %v2216_v1 = vsel %vm1587_vm5, %v9239_v42, %v2081_v19  ;;  %8062 = vmatprep.mubr.msk.bf16.mxu0 %vm1973_vm7, %v4500_v47  ;;  %1521 = vrot.lane.b32.xlu1 %v9738_v7, %s8998_s12  ;;  %v936_v42 = vshrl.u32 %v9746_v52, 16  ;;  %v532_v47 = vld [vmem:[%s9098_s11 + $0x278] sm:$0xff] }
  0xdf   : > { %v2450_v54 = vor.u32 %v2449_v39, %v2445_v26  ;;  %v2306_v55 = vsel %vm1780_vm6, %v2216_v1, %v2146_v44  ;;  %1519 = vrot.lane.b32.xlu0 %v9750_v41, %s8998_s12  ;;  %v2457_v39 = vor.u32 %v2455_v40, %v2453_v5  ;;  %v9794_v40 = vpack.c.bf16 %v532_v47, %v531_v16 }
  0xe0   : > { %v2458_v35 = vshll.u32 %v2306_v55, 16  ;;  %v3158_v3 = vrot.slane %v2306_v55, 1  ;;  %v1357_v62 = vpop.permute.xlu1 %1356  ;;  %v4501_v19 = vld [vmem:[#allocation2 + $0x248] sm:$0xff]  ;;  %v9800_v8 = vrot.slane %v936_v42, 7  ;;  %v9807_v16 = vrot.slane %v943_v21, 7 }
  0xe1   : > { %v2454_v22 = vsel %vm2359_vm9, %v2450_v54, %v2453_v5  ;;  %8063 = vmatmul.mubr.msk.bf16.gmra.mrb[16].mxu0 %vm1973_vm7, %v4501_v19  ;;  %v1355_v44 = vpop.permute.xlu0 %1354  ;;  %v3430_v26 = vld [vmem:[#allocation2 + $0x58] sm:$0xff]  ;;  %v933_v5 = vor.u32 %v931_v48, %v9772_v31  ;;  %v926_v54 = vor.u32 %v924_v28, %v9756_v34  ;;  %v946_v47 = vshll.u32 %v9759_v37, 16 }
  0xe2   : > { %2979 = vst.msk [vmem:[#allocation2 + $0x250] sm:$0xff] %vm1973_vm7, %v2454_v22  ;;  %v2460_v1 = vrot.slane %v2458_v35, 1  ;;  %v3159_v59 = vsel %vm3129_vm8, %v3156_v0, %v3158_v3  ;;  %2165 = vrot.lane.b32.xlu1 %v9754_v12, %s8998_s12  ;;  %v3429_v55 = vld [vmem:[#allocation2 + $0x50] sm:$0xff]  ;;  %v1629_v35 = vsel %vm1587_vm5, %v9257_v58, %v1357_v62  ;;  %v939_v3 = vshll.u32 %v9746_v52, 16  ;;  %11681 = vst [vmem:[#allocation11_spill] sm:$0xff] %v9807_v16 }
  0xe3   : > { %3366 = vst.msk [vmem:[#allocation2 + $0x458] sm:$0xff] %vm1973_vm7, %v3159_v59  ;;  %2100 = vrot.lane.b32.xlu0 %v9704_v14, %s8999_s13  ;;  %7936 = vmatprep.mubr.msk.bf16.mxu1 %vm1973_vm7, %v3429_v55  ;;  %v1626_v48 = vsel %vm1587_vm5, %v9261_v61, %v1355_v44  ;;  %v951_v52 = vshrl.u32 %v9786_v32, 16  ;;  %v9820_v37 = vsel %vm649_vm0, %v9756_v34, %v933_v5  ;;  %v958_v44 = vshrl.u32 %v9794_v40, 16  ;;  %v534_v34 = vld [vmem:[%s9098_s11 + $0x288] sm:$0xff]  ;;  %v535_v14 = vld [vmem:[%s9098_s11 + $0x290] sm:$0xff] }
  0xe4   : > { %v2461_v0 = vsel %vm2359_vm9, %v2457_v39, %v2460_v1  ;;  %7937 = vmatmul.mubr.msk.bf16.gmra.mrb[20].mxu1 %vm1973_vm7, %v3430_v26  ;;  %v1486_v10 = vpop.permute.xlu1 %1485  ;;  %v9825_v21 = vsel %vm9114_vm2, 0, %v926_v54  ;;  %v941_v39 = vor.u32 %v939_v3, %v9800_v8 }
  0xe5   : > { %2980 = vst.msk [vmem:[#allocation2 + $0x258] sm:$0xff] %vm1973_vm7, %v2461_v0  ;;  %v1821_v28 = vsel %vm1780_vm6, %v1629_v35, %v1486_v10  ;;  %v1484_v19 = vpop.permute.xlu0 %1483  ;;  %v948_v10 = vor.u32 %v946_v47, %v9807_v16  ;;  %v953_v3 = vrot.slane %v951_v52, 7  ;;  %v536_v16 = vld [vmem:[%s9098_s11 + $0x298] sm:$0xff] }
  0xe6   : > { %1987 = vst.msk [vmem:[#allocation2 + $0x68] sm:$0xff] %vm1973_vm7, %v1821_v28  ;;  %v2468_v58 = vshll.u32 %v1821_v28, 16  ;;  %v3161_v62 = vrot.slane %v1821_v28, 1  ;;  %v1818_v42 = vsel %vm1780_vm6, %v1626_v48, %v1484_v19  ;;  %1396 = vrot.lane.b32.xlu1 %v9738_v7, %s8999_s13  ;;  %v533_v48 = vld [vmem:[%s9098_s11 + $0x280] sm:$0xff]  ;;  %v961_v19 = vshll.u32 %v9794_v40, 16 }
  0xe7   : > { %1986 = vst.msk [vmem:[#allocation2 + $0x60] sm:$0xff] %vm1973_vm7, %v1818_v42  ;;  %v2464_v61 = vshll.u32 %v1818_v42, 16  ;;  %v3160_v22 = vrot.slane %v1818_v42, 1  ;;  %1394 = vrot.lane.b32.xlu0 %v9750_v41, %s8999_s13  ;;  %v2462_v1 = vshrl.u32 %v1818_v42, 16  ;;  %v9847_v52 = vpack.c.bf16 %v534_v34, %v533_v48 }
  0xe8   : > { %v2148_v26 = vpop.permute.xlu1 %2147  ;;  %v2470_v5 = vrot.slane %v2468_v58, 1  ;;  %v9842_v58 = vrot.slane %v958_v44, 7  ;;  %v9861_v48 = vsel %vm649_vm0, %v9800_v8, %v948_v10 }
  0xe9   : > { %v2466_v59 = vrot.slane %v2464_v61, 1  ;;  %v3162_v55 = vsel %vm3129_vm8, %v3160_v22, %v3161_v62  ;;  %v2083_v0 = vpop.permute.xlu0 %2082  ;;  %v4502_v35 = vld [vmem:[#allocation2 + $0x250] sm:$0xff]  ;;  %v954_v61 = vshll.u32 %v9786_v32, 16  ;;  %v966_v10 = vshrl.u32 %v9847_v52, 16 }
  0xea   : > { %3367 = vst.msk [vmem:[#allocation2 + $0x460] sm:$0xff] %vm1973_vm7, %v3162_v55  ;;  %v2219_v54 = vsel %vm1587_vm5, %v9269_v63, %v2083_v0  ;;  %8066 = vmatprep.mubr.msk.bf16.mxu0 %vm1973_vm7, %v4502_v35  ;;  %1525 = vrot.lane.b32.xlu1 %v9820_v37, %s8998_s12  ;;  %v2472_v63 = vshrl.u32 %v1821_v28, 16  ;;  %v963_v8 = vor.u32 %v961_v19, %v9842_v58  ;;  %v539_v19 = vld [vmem:[%s9098_s11 + $0x2b0] sm:$0xff] }
  0xeb   : > { %v2467_v42 = vor.u32 %v2466_v59, %v2462_v1  ;;  %v2308_v47 = vsel %vm1780_vm6, %v2219_v54, %v2148_v26  ;;  %1523 = vrot.lane.b32.xlu0 %v9825_v21, %s8998_s12  ;;  %v956_v34 = vor.u32 %v954_v61, %v953_v3 }
  0xec   : > { %v2475_v22 = vshll.u32 %v2308_v47, 16  ;;  %v3163_v55 = vrot.slane %v2308_v47, 1  ;;  %v1361_v0 = vpop.permute.xlu1 %1360  ;;  %v4503_v35 = vld [vmem:[#allocation2 + $0x258] sm:$0xff]  ;;  %v2474_v59 = vor.u32 %v2472_v63, %v2470_v5  ;;  %v537_v63 = vld [vmem:[%s9098_s11 + $0x2a0] sm:$0xff] }
  0xed   : > { %v2471_v40 = vsel %vm2359_vm9, %v2467_v42, %v2470_v5  ;;  %8067 = vmatmul.mubr.msk.bf16.gmra.mrb[20].mxu0 %vm1973_vm7, %v4503_v35  ;;  %v1359_v26 = vpop.permute.xlu0 %1358  ;;  %v3432_v1 = vld [vmem:[#allocation2 + $0x68] sm:$0xff]  ;;  %v9867_v5 = vpack.c.bf16 %v536_v16, %v535_v14  ;;  %v1635_v42 = vsel %vm1587_vm5, %v9284_v15, %v1361_v0  ;;  %v540_v0 = vld [vmem:[%s9098_s11 + $0x2b8] sm:$0xff] }
  0xee   : > { %2981 = vst.msk [vmem:[#allocation2 + $0x260] sm:$0xff] %vm1973_vm7, %v2471_v40  ;;  %v2477_v44 = vrot.slane %v2475_v22, 1  ;;  %v3164_v32 = vsel %vm3129_vm8, %v3161_v62, %v3163_v55  ;;  %1400 = vrot.lane.b32.xlu1 %v9820_v37, %s8999_s13  ;;  %v3431_v28 = vld [vmem:[#allocation2 + $0x60] sm:$0xff]  ;;  %v9865_v62 = vsel %vm9114_vm2, 0, %v941_v39  ;;  %v538_v39 = vld [vmem:[%s9098_s11 + $0x2a8] sm:$0xff]  ;;  %v1632_v14 = vsel %vm1587_vm5, %v9288_v17, %v1359_v26 }
  0xef   : > { %3368 = vst.msk [vmem:[#allocation2 + $0x468] sm:$0xff] %vm1973_vm7, %v3164_v32  ;;  %1398 = vrot.lane.b32.xlu0 %v9825_v21, %s8999_s13  ;;  %7940 = vmatprep.mubr.msk.bf16.mxu1 %vm1973_vm7, %v3431_v28  ;;  %11682 = vst [vmem:[#allocation12_spill] sm:$0xff] %v9865_v62  ;;  %v973_v17 = vshrl.u32 %v9867_v5, 16  ;;  %v9891_v26 = vpack.c.bf16 %v538_v39, %v537_v63  ;;  %v9900_v32 = vrot.slane %v966_v10, 7 }
  0xf0   : > { %v2478_v54 = vsel %vm2359_vm9, %v2474_v59, %v2477_v44  ;;  %7941 = vmatmul.mubr.msk.bf16.gmra.mrb[24].mxu1 %vm1973_vm7, %v3432_v1  ;;  %v1490_v47 = vpop.permute.xlu1 %1489  ;;  %v9894_v59 = vsel %vm649_vm0, %v953_v3, %v963_v8  ;;  %v9898_v44 = vsel %vm9114_vm2, 0, %v956_v34  ;;  %v9903_v63 = vpack.c.bf16 %v540_v0, %v539_v19  ;;  %v542_v19 = vld [vmem:[%s9098_s11 + $0x2c8] sm:$0xff] }
  0xf1   : > { %2982 = vst.msk [vmem:[#allocation2 + $0x268] sm:$0xff] %vm1973_vm7, %v2478_v54  ;;  %v1827_v16 = vsel %vm1780_vm6, %v1635_v42, %v1490_v47  ;;  %v1488_v61 = vpop.permute.xlu0 %1487  ;;  %11683 = vst [vmem:[#allocation13_spill] sm:$0xff] %v9894_v59  ;;  %v976_v34 = vshll.u32 %v9867_v5, 16  ;;  %v969_v8 = vshll.u32 %v9847_v52, 16  ;;  %v543_v5 = vld [vmem:[%s9098_s11 + $0x2d0] sm:$0xff] }
  0xf2   : > { %1989 = vst.msk [vmem:[#allocation2 + $0x78] sm:$0xff] %vm1973_vm7, %v1827_v16  ;;  %v2485_v15 = vshll.u32 %v1827_v16, 16  ;;  %v3166_v22 = vrot.slane %v1827_v16, 1  ;;  %v1824_v55 = vsel %vm1780_vm6, %v1632_v14, %v1488_v61  ;;  %1529 = vrot.lane.b32.xlu1 %v9861_v48, %s8998_s12  ;;  %11684 = vst [vmem:[#allocation14_spill] sm:$0xff] %v9898_v44  ;;  %v2489_v0 = vshrl.u32 %v1827_v16, 16 }
  0xf3   : > { %1988 = vst.msk [vmem:[#allocation2 + $0x70] sm:$0xff] %vm1973_vm7, %v1824_v55  ;;  %v2481_v35 = vshll.u32 %v1824_v55, 16  ;;  %v3165_v40 = vrot.slane %v1824_v55, 1  ;;  %1527 = vrot.lane.b32.xlu0 %v9865_v62, %s8998_s12  ;;  %v2479_v28 = vshrl.u32 %v1824_v55, 16  ;;  %v541_v55 = vld [vmem:[%s9098_s11 + $0x2c0] sm:$0xff] }
  0xf4   : > { %v2150_v1 = vpop.permute.xlu1 %2149  ;;  %v2487_v39 = vrot.slane %v2485_v15, 1  ;;  %v9916_v15 = vrot.slane %v973_v17, 7  ;;  %v988_v17 = vshrl.u32 %v9903_v63, 16 }
  0xf5   : > { %v2483_v54 = vrot.slane %v2481_v35, 1  ;;  %v3167_v42 = vsel %vm3129_vm8, %v3165_v40, %v3166_v22  ;;  %v2085_v47 = vpop.permute.xlu0 %2084  ;;  %v4504_v14 = vld [vmem:[#allocation2 + $0x260] sm:$0xff] }
  0xf6   : > { %3369 = vst.msk [vmem:[#allocation2 + $0x470] sm:$0xff] %vm1973_vm7, %v3167_v42  ;;  %v2222_v3 = vsel %vm1587_vm5, %v9296_v20, %v2085_v47  ;;  %8070 = vmatprep.mubr.msk.bf16.mxu0 %vm1973_vm7, %v4504_v14  ;;  %1404 = vrot.lane.b32.xlu1 %v9861_v48, %s8999_s13  ;;  %v981_v20 = vshrl.u32 %v9891_v26, 16  ;;  %v544_v14 = vld [vmem:[%s9098_s11 + $0x2d8] sm:$0xff] }
  0xf7   : > { %v2484_v10 = vor.u32 %v2483_v54, %v2479_v28  ;;  %v2310_v61 = vsel %vm1780_vm6, %v2222_v3, %v2150_v1  ;;  %1402 = vrot.lane.b32.xlu0 %v9865_v62, %s8999_s13  ;;  %v2491_v54 = vor.u32 %v2489_v0, %v2487_v39  ;;  %v9930_v62 = vpack.c.bf16 %v542_v19, %v541_v55 }
  0xf8   : > { %v2492_v35 = vshll.u32 %v2310_v61, 16  ;;  %v3168_v40 = vrot.slane %v2310_v61, 1  ;;  %v1365_v42 = vpop.permute.xlu1 %1364  ;;  %v4505_v47 = vld [vmem:[#allocation2 + $0x268] sm:$0xff]  ;;  %v9938_v0 = vpack.c.bf16 %v544_v14, %v543_v5  ;;  %v9944_v19 = vrot.slane %v981_v20, 7 }
  0xf9   : > { %v2488_v52 = vsel %vm2359_vm9, %v2484_v10, %v2487_v39  ;;  %8071 = vmatmul.mubr.msk.bf16.gmra.mrb[24].mxu0 %vm1973_vm7, %v4505_v47  ;;  %v1363_v1 = vpop.permute.xlu0 %1362  ;;  %v3434_v28 = vld [vmem:[#allocation2 + $0x78] sm:$0xff]  ;;  %v978_v39 = vor.u32 %v976_v34, %v9916_v15  ;;  %v971_v10 = vor.u32 %v969_v8, %v9900_v32  ;;  %v9951_v5 = vrot.slane %v988_v17, 7 }
  0xfa   : > { %2983 = vst.msk [vmem:[#allocation2 + $0x270] sm:$0xff] %vm1973_vm7, %v2488_v52  ;;  %v2494_v3 = vrot.slane %v2492_v35, 1  ;;  %v3169_v16 = vsel %vm3129_vm8, %v3166_v22, %v3168_v40  ;;  %1533 = vrot.lane.b32.xlu1 %v9894_v59, %s8998_s12  ;;  %v3433_v61 = vld [vmem:[#allocation2 + $0x70] sm:$0xff]  ;;  %v1641_v35 = vsel %vm1587_vm5, %v9311_v43, %v1365_v42  ;;  %v984_v40 = vshll.u32 %v9891_v26, 16 }
  0xfb   : > { %3370 = vst.msk [vmem:[#allocation2 + $0x478] sm:$0xff] %vm1973_vm7, %v3169_v16  ;;  %1531 = vrot.lane.b32.xlu0 %v9898_v44, %s8998_s12  ;;  %7944 = vmatprep.mubr.msk.bf16.mxu1 %vm1973_vm7, %v3433_v61  ;;  %v1638_v34 = vsel %vm1587_vm5, %v9315_v46, %v1363_v1  ;;  %v991_v14 = vshll.u32 %v9903_v63, 16  ;;  %v996_v26 = vshrl.u32 %v9930_v62, 16  ;;  %v9964_v63 = vsel %vm649_vm0, %v9900_v32, %v978_v39  ;;  %v546_v32 = vld [vmem:[%s9098_s11 + $0x2e8] sm:$0xff] }
  0xfc   : > { %v2495_v22 = vsel %vm2359_vm9, %v2491_v54, %v2494_v3  ;;  %7945 = vmatmul.mubr.msk.bf16.gmra.mrb[28].mxu1 %vm1973_vm7, %v3434_v28  ;;  %v1494_v55 = vpop.permute.xlu1 %1493  ;;  %v1003_v1 = vshrl.u32 %v9938_v0, 16  ;;  %v9969_v17 = vsel %vm9114_vm2, 0, %v971_v10  ;;  %v986_v54 = vor.u32 %v984_v40, %v9944_v19 }
  0xfd   : > { %2984 = vst.msk [vmem:[#allocation2 + $0x278] sm:$0xff] %vm1973_vm7, %v2495_v22  ;;  %v1833_v8 = vsel %vm1780_vm6, %v1641_v35, %v1494_v55  ;;  %v1492_v47 = vpop.permute.xlu0 %1491  ;;  %v993_v55 = vor.u32 %v991_v14, %v9951_v5  ;;  %v998_v40 = vrot.slane %v996_v26, 7 }
  0xfe   : > { %1991 = vst.msk [vmem:[#allocation2 + $0x88] sm:$0xff] %vm1973_vm7, %v1833_v8  ;;  %v2502_v43 = vshll.u32 %v1833_v8, 16  ;;  %v3171_v42 = vrot.slane %v1833_v8, 1  ;;  %v1830_v20 = vsel %vm1780_vm6, %v1638_v34, %v1492_v47  ;;  %1408 = vrot.lane.b32.xlu1 %v9894_v59, %s8999_s13  ;;  %v545_v34 = vld [vmem:[%s9098_s11 + $0x2e0] sm:$0xff]  ;;  %v1006_v47 = vshll.u32 %v9938_v0, 16  ;;  %v548_v59 = vld [vmem:[%s9098_s11 + $0x2f8] sm:$0xff] }
  0xff   : > { %1990 = vst.msk [vmem:[#allocation2 + $0x80] sm:$0xff] %vm1973_vm7, %v1830_v20  ;;  %v2498_v46 = vshll.u32 %v1830_v20, 16  ;;  %v3170_v52 = vrot.slane %v1830_v20, 1  ;;  %1406 = vrot.lane.b32.xlu0 %v9898_v44, %s8999_s13  ;;  %v2496_v3 = vshrl.u32 %v1830_v20, 16  ;;  %v547_v44 = vld [vmem:[%s9098_s11 + $0x2f0] sm:$0xff]  ;;  %v9991_v26 = vpack.c.bf16 %v546_v32, %v545_v34 }
 0x100   : > { %v2152_v28 = vpop.permute.xlu1 %2151  ;;  %v2504_v39 = vrot.slane %v2502_v43, 1  ;;  %v9986_v43 = vrot.slane %v1003_v1, 7  ;;  %v10005_v34 = vsel %vm649_vm0, %v9944_v19, %v993_v55 }
 0x101   : > { %v2500_v16 = vrot.slane %v2498_v46, 1  ;;  %v3172_v61 = vsel %vm3129_vm8, %v3170_v52, %v3171_v42  ;;  %v2087_v22 = vpop.permute.xlu0 %2086  ;;  %v4506_v35 = vld [vmem:[#allocation2 + $0x270] sm:$0xff]  ;;  %v999_v46 = vshll.u32 %v9930_v62, 16  ;;  %v1011_v55 = vshrl.u32 %v9991_v26, 16 }
 0x102   : > { %3371 = vst.msk [vmem:[#allocation2 + $0x480] sm:$0xff] %vm1973_vm7, %v3172_v61  ;;  %v2225_v10 = vsel %vm1587_vm5, %v9326_v49, %v2087_v22  ;;  %8074 = vmatprep.mubr.msk.bf16.mxu0 %vm1973_vm7, %v4506_v35  ;;  %1537 = vrot.lane.b32.xlu1 %v9964_v63, %s8998_s12  ;;  %v2506_v49 = vshrl.u32 %v1833_v8, 16  ;;  %v1008_v19 = vor.u32 %v1006_v47, %v9986_v43  ;;  %v551_v47 = vld [vmem:[%s9098_s11 + $0x310] sm:$0xff] }
 0x103   : > { %v2501_v20 = vor.u32 %v2500_v16, %v2496_v3  ;;  %v2312_v14 = vsel %vm1780_vm6, %v2225_v10, %v2152_v28  ;;  %1535 = vrot.lane.b32.xlu0 %v9969_v17, %s8998_s12  ;;  %v1001_v32 = vor.u32 %v999_v46, %v998_v40 }
 0x104   : > { %v2509_v52 = vshll.u32 %v2312_v14, 16  ;;  %v3173_v61 = vrot.slane %v2312_v14, 1  ;;  %v1369_v22 = vpop.permute.xlu1 %1368  ;;  %v4507_v35 = vld [vmem:[#allocation2 + $0x278] sm:$0xff]  ;;  %v2508_v16 = vor.u32 %v2506_v49, %v2504_v39  ;;  %v549_v49 = vld [vmem:[%s9098_s11 + $0x300] sm:$0xff] }
 0x105   : > { %v2505_v0 = vsel %vm2359_vm9, %v2501_v20, %v2504_v39  ;;  %8075 = vmatmul.mubr.msk.bf16.gmra.mrb[28].mxu0 %vm1973_vm7, %v4507_v35  ;;  %v1367_v28 = vpop.permute.xlu0 %1366  ;;  %v3436_v3 = vld [vmem:[#allocation2 + $0x88] sm:$0xff]  ;;  %v10011_v39 = vpack.c.bf16 %v548_v59, %v547_v44  ;;  %v1647_v20 = vsel %vm1587_vm5, %v9345_v4, %v1369_v22  ;;  %v552_v22 = vld [vmem:[%s9098_s11 + $0x318] sm:$0xff] }
 0x106   : > { %2985 = vst.msk [vmem:[#allocation2 + $0x280] sm:$0xff] %vm1973_vm7, %v2505_v0  ;;  %v2511_v1 = vrot.slane %v2509_v52, 1  ;;  %v3174_v62 = vsel %vm3129_vm8, %v3171_v42, %v3173_v61  ;;  %1412 = vrot.lane.b32.xlu1 %v9964_v63, %s8999_s13  ;;  %v3435_v8 = vld [vmem:[#allocation2 + $0x80] sm:$0xff]  ;;  %v10009_v42 = vsel %vm9114_vm2, 0, %v986_v54  ;;  %v550_v54 = vld [vmem:[%s9098_s11 + $0x308] sm:$0xff]  ;;  %v1644_v59 = vsel %vm1587_vm5, %v9349_v6, %v1367_v28 }
 0x107   : > { %3372 = vst.msk [vmem:[#allocation2 + $0x488] sm:$0xff] %vm1973_vm7, %v3174_v62  ;;  %1410 = vrot.lane.b32.xlu0 %v9969_v17, %s8999_s13  ;;  %7948 = vmatprep.mubr.msk.bf16.mxu1 %vm1973_vm7, %v3435_v8  ;;  %11685 = vst [vmem:[#allocation15_spill] sm:$0xff] %v10009_v42  ;;  %v1018_v6 = vshrl.u32 %v10011_v39, 16  ;;  %v10035_v28 = vpack.c.bf16 %v550_v54, %v549_v49  ;;  %v10044_v62 = vrot.slane %v1011_v55, 7 }
 0x108   : > { %v2512_v10 = vsel %vm2359_vm9, %v2508_v16, %v2511_v1  ;;  %7949 = vmatmul.mubr.msk.bf16.gmra.mrb[32].mxu1 %vm1973_vm7, %v3436_v3  ;;  %v1498_v14 = vpop.permute.xlu1 %1497  ;;  %v10038_v16 = vsel %vm649_vm0, %v998_v40, %v1008_v19  ;;  %v10042_v1 = vsel %vm9114_vm2, 0, %v1001_v32  ;;  %v10047_v49 = vpack.c.bf16 %v552_v22, %v551_v47  ;;  %v554_v47 = vld [vmem:[%s9098_s11 + $0x328] sm:$0xff] }
 0x109   : > { %2986 = vst.msk [vmem:[#allocation2 + $0x288] sm:$0xff] %vm1973_vm7, %v2512_v10  ;;  %v1839_v44 = vsel %vm1780_vm6, %v1647_v20, %v1498_v14  ;;  %v1496_v46 = vpop.permute.xlu0 %1495  ;;  %11686 = vst [vmem:[#allocation16_spill] sm:$0xff] %v10038_v16  ;;  %v1021_v32 = vshll.u32 %v10011_v39, 16  ;;  %v1014_v19 = vshll.u32 %v9991_v26, 16  ;;  %v555_v39 = vld [vmem:[%s9098_s11 + $0x330] sm:$0xff] }
 0x10a   : > { %1993 = vst.msk [vmem:[#allocation2 + $0x98] sm:$0xff] %vm1973_vm7, %v1839_v44  ;;  %v2519_v4 = vshll.u32 %v1839_v44, 16  ;;  %v3176_v52 = vrot.slane %v1839_v44, 1  ;;  %v1836_v61 = vsel %vm1780_vm6, %v1644_v59, %v1496_v46  ;;  %1541 = vrot.lane.b32.xlu1 %v10005_v34, %s8998_s12  ;;  %11687 = vst [vmem:[#allocation17_spill] sm:$0xff] %v10042_v1  ;;  %v2523_v22 = vshrl.u32 %v1839_v44, 16 }
 0x10b   : > { %1992 = vst.msk [vmem:[#allocation2 + $0x90] sm:$0xff] %vm1973_vm7, %v1836_v61  ;;  %v2515_v35 = vshll.u32 %v1836_v61, 16  ;;  %v3175_v0 = vrot.slane %v1836_v61, 1  ;;  %1539 = vrot.lane.b32.xlu0 %v10009_v42, %s8998_s12  ;;  %v2513_v8 = vshrl.u32 %v1836_v61, 16  ;;  %v553_v61 = vld [vmem:[%s9098_s11 + $0x320] sm:$0xff] }
 0x10c   : > { %v2154_v3 = vpop.permute.xlu1 %2153  ;;  %v2521_v54 = vrot.slane %v2519_v4, 1  ;;  %v10060_v4 = vrot.slane %v1018_v6, 7  ;;  %v1033_v6 = vshrl.u32 %v10047_v49, 16 }
 0x10d   : > { %v2517_v10 = vrot.slane %v2515_v35, 1  ;;  %v3177_v20 = vsel %vm3129_vm8, %v3175_v0, %v3176_v52  ;;  %v2089_v14 = vpop.permute.xlu0 %2088  ;;  %v4508_v59 = vld [vmem:[#allocation2 + $0x280] sm:$0xff] }
 0x10e   : > { %3373 = vst.msk [vmem:[#allocation2 + $0x490] sm:$0xff] %vm1973_vm7, %v3177_v20  ;;  %v2228_v40 = vsel %vm1587_vm5, %v9357_v9, %v2089_v14  ;;  %8078 = vmatprep.mubr.msk.bf16.mxu0 %vm1973_vm7, %v4508_v59  ;;  %1416 = vrot.lane.b32.xlu1 %v10005_v34, %s8999_s13  ;;  %v1026_v9 = vshrl.u32 %v10035_v28, 16  ;;  %v556_v59 = vld [vmem:[%s9098_s11 + $0x338] sm:$0xff] }
 0x10f   : > { %v2518_v55 = vor.u32 %v2517_v10, %v2513_v8  ;;  %v2314_v46 = vsel %vm1780_vm6, %v2228_v40, %v2154_v3  ;;  %1414 = vrot.lane.b32.xlu0 %v10009_v42, %s8999_s13  ;;  %v2525_v10 = vor.u32 %v2523_v22, %v2521_v54  ;;  %v10074_v42 = vpack.c.bf16 %v554_v47, %v553_v61 }
 0x110   : > { %v2526_v35 = vshll.u32 %v2314_v46, 16  ;;  %v3178_v0 = vrot.slane %v2314_v46, 1  ;;  %v1373_v20 = vpop.permute.xlu1 %1372  ;;  %v4509_v14 = vld [vmem:[#allocation2 + $0x288] sm:$0xff]  ;;  %v10082_v22 = vpack.c.bf16 %v556_v59, %v555_v39  ;;  %v10088_v47 = vrot.slane %v1026_v9, 7 }
 0x111   : > { %v2522_v26 = vsel %vm2359_vm9, %v2518_v55, %v2521_v54  ;;  %8079 = vmatmul.mubr.msk.bf16.gmra.mrb[32].mxu0 %vm1973_vm7, %v4509_v14  ;;  %v1371_v3 = vpop.permute.xlu0 %1370  ;;  %v3438_v8 = vld [vmem:[#allocation2 + $0x98] sm:$0xff]  ;;  %v1023_v54 = vor.u32 %v1021_v32, %v10060_v4  ;;  %v1016_v55 = vor.u32 %v1014_v19, %v10044_v62  ;;  %v10095_v39 = vrot.slane %v1033_v6, 7 }
 0x112   : > { %2987 = vst.msk [vmem:[#allocation2 + $0x290] sm:$0xff] %vm1973_vm7, %v2522_v26  ;;  %v2528_v40 = vrot.slane %v2526_v35, 1  ;;  %v3179_v44 = vsel %vm3129_vm8, %v3176_v52, %v3178_v0  ;;  %1545 = vrot.lane.b32.xlu1 %v10038_v16, %s8998_s12  ;;  %v3437_v46 = vld [vmem:[#allocation2 + $0x90] sm:$0xff]  ;;  %v1653_v35 = vsel %vm1587_vm5, %v9376_v33, %v1373_v20  ;;  %v1029_v0 = vshll.u32 %v10035_v28, 16 }
 0x113   : > { %3374 = vst.msk [vmem:[#allocation2 + $0x498] sm:$0xff] %vm1973_vm7, %v3179_v44  ;;  %1543 = vrot.lane.b32.xlu0 %v10042_v1, %s8998_s12  ;;  %7952 = vmatprep.mubr.msk.bf16.mxu1 %vm1973_vm7, %v3437_v46  ;;  %v1650_v32 = vsel %vm1587_vm5, %v9380_v50, %v1371_v3  ;;  %v1036_v59 = vshll.u32 %v10047_v49, 16  ;;  %v1041_v28 = vshrl.u32 %v10074_v42, 16  ;;  %v10108_v49 = vsel %vm649_vm0, %v10044_v62, %v1023_v54  ;;  %v558_v62 = vld [vmem:[%s9098_s11 + $0x348] sm:$0xff] }
 0x114   : > { %v2529_v52 = vsel %vm2359_vm9, %v2525_v10, %v2528_v40  ;;  %7953 = vmatmul.mubr.msk.bf16.gmra.mrb[36].mxu1 %vm1973_vm7, %v3438_v8  ;;  %v1502_v61 = vpop.permute.xlu1 %1501  ;;  %v1048_v3 = vshrl.u32 %v10082_v22, 16  ;;  %v10113_v6 = vsel %vm9114_vm2, 0, %v1016_v55  ;;  %v1031_v10 = vor.u32 %v1029_v0, %v10088_v47 }
 0x115   : > { %2988 = vst.msk [vmem:[#allocation2 + $0x298] sm:$0xff] %vm1973_vm7, %v2529_v52  ;;  %v1845_v19 = vsel %vm1780_vm6, %v1653_v35, %v1502_v61  ;;  %v1500_v14 = vpop.permute.xlu0 %1499  ;;  %v1038_v61 = vor.u32 %v1036_v59, %v10095_v39  ;;  %v1043_v0 = vrot.slane %v1041_v28, 7 }
 0x116   : > { %1995 = vst.msk [vmem:[#allocation2 + $0xa8] sm:$0xff] %vm1973_vm7, %v1845_v19  ;;  %v2536_v33 = vshll.u32 %v1845_v19, 16  ;;  %v3181_v20 = vrot.slane %v1845_v19, 1  ;;  %v1842_v9 = vsel %vm1780_vm6, %v1650_v32, %v1500_v14  ;;  %1420 = vrot.lane.b32.xlu1 %v10038_v16, %s8999_s13  ;;  %v557_v32 = vld [vmem:[%s9098_s11 + $0x340] sm:$0xff]  ;;  %v1051_v14 = vshll.u32 %v10082_v22, 16  ;;  %v560_v16 = vld [vmem:[%s9098_s11 + $0x358] sm:$0xff] }
 0x117   : > { %1994 = vst.msk [vmem:[#allocation2 + $0xa0] sm:$0xff] %vm1973_vm7, %v1842_v9  ;;  %v2532_v50 = vshll.u32 %v1842_v9, 16  ;;  %v3180_v26 = vrot.slane %v1842_v9, 1  ;;  %1418 = vrot.lane.b32.xlu0 %v10042_v1, %s8999_s13  ;;  %v2530_v40 = vshrl.u32 %v1842_v9, 16  ;;  %v559_v1 = vld [vmem:[%s9098_s11 + $0x350] sm:$0xff]  ;;  %v10135_v28 = vpack.c.bf16 %v558_v62, %v557_v32 }
 0x118   : > { %v2156_v8 = vpop.permute.xlu1 %2155  ;;  %v2538_v54 = vrot.slane %v2536_v33, 1  ;;  %v10130_v33 = vrot.slane %v1048_v3, 7  ;;  %v10149_v32 = vsel %vm649_vm0, %v10088_v47, %v1038_v61 }
 0x119   : > { %v2534_v44 = vrot.slane %v2532_v50, 1  ;;  %v3182_v46 = vsel %vm3129_vm8, %v3180_v26, %v3181_v20  ;;  %v2091_v52 = vpop.permute.xlu0 %2090  ;;  %v4510_v35 = vld [vmem:[#allocation2 + $0x290] sm:$0xff]  ;;  %v1044_v50 = vshll.u32 %v10074_v42, 16  ;;  %v1056_v61 = vshrl.u32 %v10135_v28, 16 }
 0x11a   : > { %3375 = vst.msk [vmem:[#allocation2 + $0x4a0] sm:$0xff] %vm1973_vm7, %v3182_v46  ;;  %v2231_v55 = vsel %vm1587_vm5, %v9388_v56, %v2091_v52  ;;  %8082 = vmatprep.mubr.msk.bf16.mxu0 %vm1973_vm7, %v4510_v35  ;;  %1549 = vrot.lane.b32.xlu1 %v10108_v49, %s8998_s12  ;;  %v2540_v56 = vshrl.u32 %v1845_v19, 16  ;;  %v1053_v47 = vor.u32 %v1051_v14, %v10130_v33  ;;  %v563_v14 = vld [vmem:[%s9098_s11 + $0x370] sm:$0xff] }
 0x11b   : > { %v2535_v9 = vor.u32 %v2534_v44, %v2530_v40  ;;  %v2316_v59 = vsel %vm1780_vm6, %v2231_v55, %v2156_v8  ;;  %1547 = vrot.lane.b32.xlu0 %v10113_v6, %s8998_s12  ;;  %v1046_v62 = vor.u32 %v1044_v50, %v1043_v0 }
 0x11c   : > { %v2543_v26 = vshll.u32 %v2316_v59, 16  ;;  %v3183_v46 = vrot.slane %v2316_v59, 1  ;;  %v1377_v52 = vpop.permute.xlu1 %1376  ;;  %v4511_v35 = vld [vmem:[#allocation2 + $0x298] sm:$0xff]  ;;  %v2542_v44 = vor.u32 %v2540_v56, %v2538_v54  ;;  %v561_v56 = vld [vmem:[%s9098_s11 + $0x360] sm:$0xff] }
 0x11d   : > { %v2539_v22 = vsel %vm2359_vm9, %v2535_v9, %v2538_v54  ;;  %8083 = vmatmul.mubr.msk.bf16.gmra.mrb[36].mxu0 %vm1973_vm7, %v4511_v35  ;;  %v1375_v8 = vpop.permute.xlu0 %1374  ;;  %v3440_v40 = vld [vmem:[#allocation2 + $0xa8] sm:$0xff]  ;;  %v10155_v54 = vpack.c.bf16 %v560_v16, %v559_v1  ;;  %v1659_v9 = vsel %vm1587_vm5, %v9403_v23, %v1377_v52  ;;  %v564_v52 = vld [vmem:[%s9098_s11 + $0x378] sm:$0xff] }
 0x11e   : > { %2989 = vst.msk [vmem:[#allocation2 + $0x2a0] sm:$0xff] %vm1973_vm7, %v2539_v22  ;;  %v2545_v3 = vrot.slane %v2543_v26, 1  ;;  %v3184_v42 = vsel %vm3129_vm8, %v3181_v20, %v3183_v46  ;;  %1424 = vrot.lane.b32.xlu1 %v10108_v49, %s8999_s13  ;;  %v3439_v19 = vld [vmem:[#allocation2 + $0xa0] sm:$0xff]  ;;  %v10153_v20 = vsel %vm9114_vm2, 0, %v1031_v10  ;;  %v562_v10 = vld [vmem:[%s9098_s11 + $0x368] sm:$0xff]  ;;  %v1656_v16 = vsel %vm1587_vm5, %v9407_v27, %v1375_v8 }
 0x11f   : > { %3376 = vst.msk [vmem:[#allocation2 + $0x4a8] sm:$0xff] %vm1973_vm7, %v3184_v42  ;;  %1422 = vrot.lane.b32.xlu0 %v10113_v6, %s8999_s13  ;;  %7956 = vmatprep.mubr.msk.bf16.mxu1 %vm1973_vm7, %v3439_v19  ;;  %11688 = vst [vmem:[#allocation18_spill] sm:$0xff] %v10153_v20  ;;  %v1063_v27 = vshrl.u32 %v10155_v54, 16  ;;  %v10179_v8 = vpack.c.bf16 %v562_v10, %v561_v56  ;;  %v10188_v42 = vrot.slane %v1056_v61, 7 }
 0x120   : > { %v2546_v55 = vsel %vm2359_vm9, %v2542_v44, %v2545_v3  ;;  %7957 = vmatmul.mubr.msk.bf16.gmra.mrb[40].mxu1 %vm1973_vm7, %v3440_v40  ;;  %v1506_v59 = vpop.permute.xlu1 %1505  ;;  %v10182_v44 = vsel %vm649_vm0, %v1043_v0, %v1053_v47  ;;  %v10186_v3 = vsel %vm9114_vm2, 0, %v1046_v62  ;;  %v10191_v56 = vpack.c.bf16 %v564_v52, %v563_v14  ;;  %v566_v14 = vld [vmem:[%s9098_s11 + $0x388] sm:$0xff] }
 0x121   : > { %2990 = vst.msk [vmem:[#allocation2 + $0x2a8] sm:$0xff] %vm1973_vm7, %v2546_v55  ;;  %v1851_v1 = vsel %vm1780_vm6, %v1659_v9, %v1506_v59  ;;  %v1504_v50 = vpop.permute.xlu0 %1503  ;;  %11689 = vst [vmem:[#allocation19_spill] sm:$0xff] %v10186_v3  ;;  %v1066_v62 = vshll.u32 %v10155_v54, 16  ;;  %v1059_v47 = vshll.u32 %v10135_v28, 16  ;;  %v567_v54 = vld [vmem:[%s9098_s11 + $0x390] sm:$0xff] }
 0x122   : > { %1997 = vst.msk [vmem:[#allocation2 + $0xb8] sm:$0xff] %vm1973_vm7, %v1851_v1  ;;  %v2553_v23 = vshll.u32 %v1851_v1, 16  ;;  %v3186_v26 = vrot.slane %v1851_v1, 1  ;;  %v1848_v46 = vsel %vm1780_vm6, %v1656_v16, %v1504_v50  ;;  %1553 = vrot.lane.b32.xlu1 %v10149_v32, %s8998_s12  ;;  %v2557_v52 = vshrl.u32 %v1851_v1, 16 }
 0x123   : > { %1996 = vst.msk [vmem:[#allocation2 + $0xb0] sm:$0xff] %vm1973_vm7, %v1848_v46  ;;  %v2549_v35 = vshll.u32 %v1848_v46, 16  ;;  %v3185_v22 = vrot.slane %v1848_v46, 1  ;;  %1551 = vrot.lane.b32.xlu0 %v10153_v20, %s8998_s12  ;;  %v2547_v19 = vshrl.u32 %v1848_v46, 16  ;;  %v565_v46 = vld [vmem:[%s9098_s11 + $0x380] sm:$0xff] }
 0x124   : > { %v2158_v40 = vpop.permute.xlu1 %2157  ;;  %v2555_v10 = vrot.slane %v2553_v23, 1  ;;  %v10204_v23 = vrot.slane %v1063_v27, 7  ;;  %v1078_v27 = vshrl.u32 %v10191_v56, 16 }
 0x125   : > { %v2551_v55 = vrot.slane %v2549_v35, 1  ;;  %v3187_v9 = vsel %vm3129_vm8, %v3185_v22, %v3186_v26  ;;  %v2093_v59 = vpop.permute.xlu0 %2092  ;;  %v4512_v16 = vld [vmem:[#allocation2 + $0x2a0] sm:$0xff] }
 0x126   : > { %3377 = vst.msk [vmem:[#allocation2 + $0x4b0] sm:$0xff] %vm1973_vm7, %v3187_v9  ;;  %v2234_v0 = vsel %vm1587_vm5, %v9413_v36, %v2093_v59  ;;  %8086 = vmatprep.mubr.msk.bf16.mxu0 %vm1973_vm7, %v4512_v16  ;;  %1428 = vrot.lane.b32.xlu1 %v10149_v32, %s8999_s13  ;;  %v1071_v36 = vshrl.u32 %v10179_v8, 16  ;;  %v568_v16 = vld [vmem:[%s9098_s11 + $0x398] sm:$0xff] }
 0x127   : > { %v2552_v61 = vor.u32 %v2551_v55, %v2547_v19  ;;  %v2318_v50 = vsel %vm1780_vm6, %v2234_v0, %v2158_v40  ;;  %1426 = vrot.lane.b32.xlu0 %v10153_v20, %s8999_s13  ;;  %v2559_v55 = vor.u32 %v2557_v52, %v2555_v10  ;;  %v10218_v20 = vpack.c.bf16 %v566_v14, %v565_v46 }
 0x128   : > { %v2560_v35 = vshll.u32 %v2318_v50, 16  ;;  %v3188_v22 = vrot.slane %v2318_v50, 1  ;;  %v1381_v9 = vpop.permute.xlu1 %1380  ;;  %v4513_v59 = vld [vmem:[#allocation2 + $0x2a8] sm:$0xff]  ;;  %v10226_v52 = vpack.c.bf16 %v568_v16, %v567_v54  ;;  %v10232_v14 = vrot.slane %v1071_v36, 7 }
 0x129   : > { %v2556_v28 = vsel %vm2359_vm9, %v2552_v61, %v2555_v10  ;;  %8087 = vmatmul.mubr.msk.bf16.gmra.mrb[40].mxu0 %vm1973_vm7, %v4513_v59  ;;  %v1379_v40 = vpop.permute.xlu0 %1378  ;;  %v3442_v19 = vld [vmem:[#allocation2 + $0xb8] sm:$0xff]  ;;  %v1068_v10 = vor.u32 %v1066_v62, %v10204_v23  ;;  %v1061_v61 = vor.u32 %v1059_v47, %v10188_v42  ;;  %v10239_v54 = vrot.slane %v1078_v27, 7 }
 0x12a   : > { %2991 = vst.msk [vmem:[#allocation2 + $0x2b0] sm:$0xff] %vm1973_vm7, %v2556_v28  ;;  %v2562_v0 = vrot.slane %v2560_v35, 1  ;;  %v3189_v1 = vsel %vm3129_vm8, %v3186_v26, %v3188_v22  ;;  %1557 = vrot.lane.b32.xlu1 %v10182_v44, %s8998_s12  ;;  %v3441_v50 = vld [vmem:[#allocation2 + $0xb0] sm:$0xff]  ;;  %v1665_v35 = vsel %vm1587_vm5, %v9441_v29, %v1381_v9  ;;  %v1074_v22 = vshll.u32 %v10179_v8, 16 }
 0x12b   : > { %3378 = vst.msk [vmem:[#allocation2 + $0x4b8] sm:$0xff] %vm1973_vm7, %v3189_v1  ;;  %1555 = vrot.lane.b32.xlu0 %v10186_v3, %s8998_s12  ;;  %7960 = vmatprep.mubr.msk.bf16.mxu1 %vm1973_vm7, %v3441_v50  ;;  %v1662_v62 = vsel %vm1587_vm5, %v9447_v53, %v1379_v40  ;;  %v1081_v16 = vshll.u32 %v10191_v56, 16  ;;  %v1086_v8 = vshrl.u32 %v10218_v20, 16  ;;  %v10252_v56 = vsel %vm649_vm0, %v10188_v42, %v1068_v10 }
 0x12c   : > { %v2563_v26 = vsel %vm2359_vm9, %v2559_v55, %v2562_v0  ;;  %7961 = vmatmul.mubr.msk.bf16.gmra.mrb[44].mxu1 %vm1973_vm7, %v3442_v19  ;;  %v1510_v46 = vpop.permute.xlu1 %1509  ;;  %11690 = vst [vmem:[#allocation20_spill] sm:$0xff] %v10252_v56  ;;  %v1093_v40 = vshrl.u32 %v10226_v52, 16  ;;  %v10257_v27 = vsel %vm9114_vm2, 0, %v1061_v61  ;;  %v1076_v55 = vor.u32 %v1074_v22, %v10232_v14 }
 0x12d   : > { %2992 = vst.msk [vmem:[#allocation2 + $0x2b8] sm:$0xff] %vm1973_vm7, %v2563_v26  ;;  %v1857_v47 = vsel %vm1780_vm6, %v1665_v35, %v1510_v46  ;;  %v1508_v59 = vpop.permute.xlu0 %1507  ;;  %11691 = vst [vmem:[#allocation21_spill] sm:$0xff] %v10257_v27  ;;  %v1083_v42 = vor.u32 %v1081_v16, %v10239_v54  ;;  %v1088_v61 = vrot.slane %v1086_v8, 7  ;;  %v1096_v22 = vshll.u32 %v10226_v52, 16  ;;  %v571_v8 = vld [vmem:[%s9098_s11 + $0x3b0] sm:$0xff] }
 0x12e   : > { %1999 = vst.msk [vmem:[#allocation2 + $0xc8] sm:$0xff] %vm1973_vm7, %v1857_v47  ;;  %v2570_v29 = vshll.u32 %v1857_v47, 16  ;;  %v3191_v9 = vrot.slane %v1857_v47, 1  ;;  %v1854_v36 = vsel %vm1780_vm6, %v1662_v62, %v1508_v59  ;;  %1432 = vrot.lane.b32.xlu1 %v10182_v44, %s8999_s13  ;;  %v10272_v16 = vrot.slane %v1093_v40, 7 }
 0x12f   : > { %1998 = vst.msk [vmem:[#allocation2 + $0xc0] sm:$0xff] %vm1973_vm7, %v1854_v36  ;;  %v2566_v53 = vshll.u32 %v1854_v36, 16  ;;  %v3190_v28 = vrot.slane %v1854_v36, 1  ;;  %1430 = vrot.lane.b32.xlu0 %v10186_v3, %s8999_s13  ;;  %v2564_v0 = vshrl.u32 %v1854_v36, 16  ;;  %v570_v36 = vld [vmem:[%s9098_s11 + $0x3a8] sm:$0xff]  ;;  %v572_v3 = vld [vmem:[%s9098_s11 + $0x3b8] sm:$0xff] }
 0x130   : > { %v2160_v19 = vpop.permute.xlu1 %2159  ;;  %v2572_v10 = vrot.slane %v2570_v29, 1  ;;  %v569_v29 = vld [vmem:[%s9098_s11 + $0x3a0] sm:$0xff] }
 0x131   : > { %v2568_v1 = vrot.slane %v2566_v53, 1  ;;  %v3192_v50 = vsel %vm3129_vm8, %v3190_v28, %v3191_v9  ;;  %v2095_v26 = vpop.permute.xlu0 %2094  ;;  %v4514_v35 = vld [vmem:[#allocation2 + $0x2b0] sm:$0xff]  ;;  %v2574_v53 = vshrl.u32 %v1857_v47, 16 }
 0x132   : > { %3379 = vst.msk [vmem:[#allocation2 + $0x4c0] sm:$0xff] %vm1973_vm7, %v3192_v50  ;;  %v2237_v46 = vsel %vm1587_vm5, %v9451_v24, %v2095_v26  ;;  %8090 = vmatprep.mubr.msk.bf16.mxu0 %vm1973_vm7, %v4514_v35  ;;  %1561 = vrot.lane.b32.xlu1 %v10252_v56, %s8998_s12  ;;  %v1089_v24 = vshll.u32 %v10218_v20, 16 }
 0x133   : > { %v2569_v62 = vor.u32 %v2568_v1, %v2564_v0  ;;  %v2320_v59 = vsel %vm1780_vm6, %v2237_v46, %v2160_v19  ;;  %1559 = vrot.lane.b32.xlu0 %v10257_v27, %s8998_s12  ;;  %v2576_v1 = vor.u32 %v2574_v53, %v2572_v10  ;;  %v10285_v46 = vpack.c.bf16 %v570_v36, %v569_v29 }
 0x134   : > { %v2577_v28 = vshll.u32 %v2320_v59, 16  ;;  %v3193_v50 = vrot.slane %v2320_v59, 1  ;;  %v1385_v26 = vpop.permute.xlu1 %1384  ;;  %v4515_v35 = vld [vmem:[#allocation2 + $0x2b8] sm:$0xff]  ;;  %v1098_v53 = vor.u32 %v1096_v22, %v10272_v16 }
 0x135   : > { %v2573_v52 = vsel %vm2359_vm9, %v2569_v62, %v2572_v10  ;;  %8091 = vmatmul.mubr.msk.bf16.gmra.mrb[44].mxu0 %vm1973_vm7, %v4515_v35  ;;  %v1383_v19 = vpop.permute.xlu0 %1382  ;;  %v3444_v0 = vld [vmem:[#allocation2 + $0xc8] sm:$0xff]  ;;  %v10293_v10 = vsel %vm649_vm0, %v10232_v14, %v1083_v42  ;;  %v10299_v62 = vpack.c.bf16 %v572_v3, %v571_v8  ;;  %v1671_v29 = vsel %vm1587_vm5, %v9494_v25, %v1385_v26  ;;  %v573_v14 = vld [vmem:[%s9098_s11 + $0x3c0] sm:$0xff]  ;;  %v575_v35 = vld [vmem:[%s9098_s11 + $0x3d0] sm:$0xff] }
 0x136   : > { %2993 = vst.msk [vmem:[#allocation2 + $0x2c0] sm:$0xff] %vm1973_vm7, %v2573_v52  ;;  %v2579_v40 = vrot.slane %v2577_v28, 1  ;;  %v3194_v20 = vsel %vm3129_vm8, %v3191_v9, %v3193_v50  ;;  %1436 = vrot.lane.b32.xlu1 %v10252_v56, %s8999_s13  ;;  %v3443_v47 = vld [vmem:[#allocation2 + $0xc0] sm:$0xff]  ;;  %11692 = vst [vmem:[#allocation22_spill] sm:$0xff] %v10293_v10  ;;  %v10297_v9 = vsel %vm9114_vm2, 0, %v1076_v55  ;;  %v1091_v28 = vor.u32 %v1089_v24, %v1088_v61  ;;  %v574_v42 = vld [vmem:[%s9098_s11 + $0x3c8] sm:$0xff] }
 0x137   : > { %3380 = vst.msk [vmem:[#allocation2 + $0x4c8] sm:$0xff] %vm1973_vm7, %v3194_v20  ;;  %1434 = vrot.lane.b32.xlu0 %v10257_v27, %s8999_s13  ;;  %7964 = vmatprep.mubr.msk.bf16.mxu1 %vm1973_vm7, %v3443_v47  ;;  %11693 = vst [vmem:[#allocation23_spill] sm:$0xff] %v10297_v9  ;;  %v1668_v55 = vsel %vm1587_vm5, %v9502_v51, %v1383_v19  ;;  %v576_v8 = vld [vmem:[%s9098_s11 + $0x3d8] sm:$0xff]  ;;  %v1101_v22 = vshrl.u32 %v10285_v46, 16  ;;  %v1108_v19 = vshrl.u32 %v10299_v62, 16  ;;  %v1111_v27 = vshll.u32 %v10299_v62, 16 }
 0x138   : > { %v2580_v59 = vsel %vm2359_vm9, %v2576_v1, %v2579_v40  ;;  %7965 = vmatmul.mubr.msk.bf16.gmra.mrb[48].mxu1 %vm1973_vm7, %v3444_v0  ;;  %v1514_v36 = vpop.permute.xlu1 %1513  ;;  %v10323_v0 = vpack.c.bf16 %v574_v42, %v573_v14  ;;  %v10326_v40 = vsel %vm649_vm0, %v1088_v61, %v1098_v53  ;;  %v10330_v20 = vsel %vm9114_vm2, 0, %v1091_v28 }
 0x139   : > { %2994 = vst.msk [vmem:[#allocation2 + $0x2c8] sm:$0xff] %vm1973_vm7, %v2580_v59  ;;  %v1863_v3 = vsel %vm1780_vm6, %v1671_v29, %v1514_v36  ;;  %v1512_v50 = vpop.permute.xlu0 %1511  ;;  %11694 = vst [vmem:[#allocation24_spill] sm:$0xff] %v10326_v40  ;;  %v10332_v47 = vpack.c.bf16 %v576_v8, %v575_v35  ;;  %v1103_v53 = vrot.slane %v1101_v22, 7  ;;  %v1104_v28 = vshll.u32 %v10285_v46, 16 }
 0x13a   : > { %2001 = vst.msk [vmem:[#allocation2 + $0xd8] sm:$0xff] %vm1973_vm7, %v1863_v3  ;;  %v2587_v25 = vshll.u32 %v1863_v3, 16  ;;  %v3196_v26 = vrot.slane %v1863_v3, 1  ;;  %v1860_v52 = vsel %vm1780_vm6, %v1668_v55, %v1512_v50  ;;  %1565 = vrot.lane.b32.xlu1 %v10293_v10, %s8998_s12  ;;  %11695 = vst [vmem:[#allocation25_spill] sm:$0xff] %v10330_v20  ;;  %v10346_v62 = vrot.slane %v1108_v19, 7 }
 0x13b   : > { %2000 = vst.msk [vmem:[#allocation2 + $0xd0] sm:$0xff] %vm1973_vm7, %v1860_v52  ;;  %v2583_v24 = vshll.u32 %v1860_v52, 16  ;;  %v3195_v51 = vrot.slane %v1860_v52, 1  ;;  %1563 = vrot.lane.b32.xlu0 %v10297_v9, %s8998_s12  ;;  %v2581_v59 = vshrl.u32 %v1860_v52, 16  ;;  %v1116_v8 = vshrl.u32 %v10323_v0, 16 }
 0x13c   : > { %v2162_v1 = vpop.permute.xlu1 %2161  ;;  %v2589_v14 = vrot.slane %v2587_v25, 1  ;;  %v1123_v46 = vshrl.u32 %v10332_v47, 16 }
 0x13d   : > { %v2585_v29 = vrot.slane %v2583_v24, 1  ;;  %v3197_v36 = vsel %vm3129_vm8, %v3195_v51, %v3196_v26  ;;  %v2097_v55 = vpop.permute.xlu0 %2096  ;;  %v4516_v50 = vld [vmem:[#allocation2 + $0x2c0] sm:$0xff] }
 0x13e   : > { %3381 = vst.msk [vmem:[#allocation2 + $0x4d0] sm:$0xff] %vm1973_vm7, %v3197_v36  ;;  %v2240_v61 = vsel %vm1587_vm5, %v9506_v2, %v2097_v55  ;;  %8094 = vmatprep.mubr.msk.bf16.mxu0 %vm1973_vm7, %v4516_v50  ;;  %1440 = vrot.lane.b32.xlu1 %v10293_v10, %s8999_s13  ;;  %v2591_v2 = vshrl.u32 %v1863_v3, 16  ;;  %v577_v55 = vld [vmem:[%s9098_s11 + $0x3e0] sm:$0xff]  ;;  %v578_v50 = vld [vmem:[%s9098_s11 + $0x3e8] sm:$0xff] }
 0x13f   : > { %v2586_v42 = vor.u32 %v2585_v29, %v2581_v59  ;;  %v2322_v35 = vsel %vm1780_vm6, %v2240_v61, %v2162_v1  ;;  %1438 = vrot.lane.b32.xlu0 %v10297_v9, %s8999_s13  ;;  %v1106_v61 = vor.u32 %v1104_v28, %v1103_v53 }
 0x140   : > { %v2594_v25 = vshll.u32 %v2322_v35, 16  ;;  %v3198_v52 = vrot.slane %v2322_v35, 1  ;;  %v1389_v24 = vpop.permute.xlu1 %1388  ;;  %v4517_v22 = vld [vmem:[#allocation2 + $0x2c8] sm:$0xff]  ;;  %v2593_v19 = vor.u32 %v2591_v2, %v2589_v14  ;;  %v579_v35 = vld [vmem:[%s9098_s11 + $0x3f0] sm:$0xff]  ;;  %v580_v2 = vld [vmem:[%s9098_s11 + $0x3f8] sm:$0xff]  ;;  %s10638_s11 = sand.u32 1, %s8980_s19  }
 0x141   : > { %v2590_v51 = vsel %vm2359_vm9, %v2586_v42, %v2589_v14  ;;  %8095 = vmatmul.mubr.msk.bf16.gmra.mrb[48].mxu0 %vm1973_vm7, %v4517_v22  ;;  %v1387_v1 = vpop.permute.xlu0 %1386  ;;  %v3446_v59 = vld [vmem:[#allocation2 + $0xd8] sm:$0xff]  ;;  %v1113_v14 = vor.u32 %v1111_v27, %v10346_v62  ;;  %v10364_v42 = vrot.slane %v1116_v8, 7  ;;  %s7499_s15 = sshll.u32 %s10638_s11, 10  ;;  %s7282_s27 = scalar_lea.sflag [#allocation4], %s10638_s11 }
 0x142   : > { %2995 = vst.msk [vmem:[#allocation2 + $0x2d0] sm:$0xff] %vm1973_vm7, %v2590_v51  ;;  %v2596_v3 = vrot.slane %v2594_v25, 1  ;;  %v3199_v29 = vsel %vm3129_vm8, %v3196_v26, %v3198_v52  ;;  %1569 = vrot.lane.b32.xlu1 %v10326_v40, %s8998_s12  ;;  %v3445_v36 = vld [vmem:[#allocation2 + $0xd0] sm:$0xff]  ;;  %v1126_v26 = vshll.u32 %v10332_v47, 16  ;;  %v1677_v52 = vsel %vm1587_vm5, %v9559_v38, %v1389_v24  ;;  %s10687_s16 = scalar_lea.vmem [#allocation3], %s7499_s15 }
 0x143   : > { %3382 = vst.msk [vmem:[#allocation2 + $0x4d8] sm:$0xff] %vm1973_vm7, %v3199_v29  ;;  %1567 = vrot.lane.b32.xlu0 %v10330_v20, %s8998_s12  ;;  %7968 = vmatprep.mubr.msk.bf16.mxu1 %vm1973_vm7, %v3445_v36  ;;  %v10373_v51 = vrot.slane %v1123_v46, 7  ;;  %v1119_v29 = vshll.u32 %v10323_v0, 16  ;;  %v1674_v27 = vsel %vm1587_vm5, %v9564_v11, %v1387_v1  ;;  %v10383_v38 = vpack.c.bf16 %v578_v50, %v577_v55 }
 0x144   : > { %v2597_v25 = vsel %vm2359_vm9, %v2593_v19, %v2596_v3  ;;  %7969 = vmatmul.mubr.msk.bf16.gmra.mrb[52].mxu1 %vm1973_vm7, %v3446_v59  ;;  %v1518_v22 = vpop.permute.xlu1 %1517  ;;  %v10389_v46 = vpack.c.bf16 %v580_v2, %v579_v35  ;;  %v10395_v1 = vsel %vm649_vm0, %v1103_v53, %v1113_v14  ;;  %v441_v19 = vld [vmem:[%s412_s14] sm:$0xff]  ;;  %v10399_v36 = vsel %vm9114_vm2, 0, %v1106_v61  ;;  %v443_v35 = vld [vmem:[%s412_s14 + $0x10] sm:$0xff]  ;;  %v444_v2 = vld [vmem:[%s412_s14 + $0x18] sm:$0xff] }
 0x145   : > { %2996 = vst.msk [vmem:[#allocation2 + $0x2d8] sm:$0xff] %vm1973_vm7, %v2597_v25  ;;  %v1869_v47 = vsel %vm1780_vm6, %v1677_v52, %v1518_v22  ;;  %v1516_v28 = vpop.permute.xlu0 %1515  ;;  %v1128_v55 = vor.u32 %v1126_v26, %v10373_v51  ;;  %v1121_v50 = vor.u32 %v1119_v29, %v10364_v42  ;;  %v1131_v53 = vshrl.u32 %v10383_v38, 16  ;;  %v442_v14 = vld [vmem:[%s412_s14 + $0x8] sm:$0xff] }
 0x146   : > { %2003 = vst.msk [vmem:[#allocation2 + $0xe8] sm:$0xff] %vm1973_vm7, %v1869_v47  ;;  %v2604_v8 = vshll.u32 %v1869_v47, 16  ;;  %v3201_v24 = vrot.slane %v1869_v47, 1  ;;  %v1866_v0 = vsel %vm1780_vm6, %v1674_v27, %v1516_v28  ;;  %1444 = vrot.lane.b32.xlu1 %v10326_v40, %s8999_s13  ;;  %v1138_v26 = vshrl.u32 %v10389_v46, 16 }
 0x147   : > { %2002 = vst.msk [vmem:[#allocation2 + $0xe0] sm:$0xff] %vm1973_vm7, %v1866_v0  ;;  %v2600_v59 = vshll.u32 %v1866_v0, 16  ;;  %v3200_v11 = vrot.slane %v1866_v0, 1  ;;  %1442 = vrot.lane.b32.xlu0 %v10330_v20, %s8999_s13  ;;  %v2598_v25 = vshrl.u32 %v1866_v0, 16  ;;  %v449_v29 = vmul.f32 0.0, %v441_v19 }
 0x148   : > { %v2164_v3 = vpop.permute.xlu1 %2163  ;;  %v2606_v20 = vrot.slane %v2604_v8, 1  ;;  %v451_v8 = vmul.f32 0.0, %v443_v35 }
 0x149   : > { %v2602_v52 = vrot.slane %v2600_v59, 1  ;;  %v3202_v22 = vsel %vm3129_vm8, %v3200_v11, %v3201_v24  ;;  %v2099_v27 = vpop.permute.xlu0 %2098  ;;  %v4518_v28 = vld [vmem:[#allocation2 + $0x2d0] sm:$0xff]  ;;  %v452_v11 = vmul.f32 0.0, %v444_v2 }
 0x14a   : > { %3383 = vst.msk [vmem:[#allocation2 + $0x4e0] sm:$0xff] %vm1973_vm7, %v3202_v22  ;;  %v2243_v61 = vsel %vm1587_vm5, %v9582_v30, %v2099_v27  ;;  %8098 = vmatprep.mubr.msk.bf16.mxu0 %vm1973_vm7, %v4518_v28  ;;  %1573 = vrot.lane.b32.xlu1 %v10395_v1, %s8998_s12  ;;  %v2608_v22 = vshrl.u32 %v1869_v47, 16  ;;  %v450_v28 = vmul.f32 0.0, %v442_v14  ;;  %v10423_v14 = vrot.slane %v1138_v26, 7 }
 0x14b   : > { %v2603_v0 = vor.u32 %v2602_v52, %v2598_v25  ;;  %v2324_v59 = vsel %vm1780_vm6, %v2243_v61, %v2164_v3  ;;  %1571 = vrot.lane.b32.xlu0 %v10399_v36, %s8998_s12  ;;  %v1133_v25 = vrot.slane %v1131_v53, 7  ;;  %v1141_v3 = vshll.u32 %v10389_v46, 16 }
 0x14c   : > { %v2611_v40 = vshll.u32 %v2324_v59, 16  ;;  %v3203_v9 = vrot.slane %v2324_v59, 1  ;;  %v1393_v30 = vpop.permute.xlu1 %1392  ;;  %v4519_v27 = vld [vmem:[#allocation2 + $0x2d8] sm:$0xff]  ;;  %v1134_v52 = vshll.u32 %v10383_v38, 16  ;;  %v2610_v61 = vor.u32 %v2608_v22, %v2606_v20 }
 0x14d   : > { %v2607_v10 = vsel %vm2359_vm9, %v2603_v0, %v2606_v20  ;;  %8099 = vmatmul.mubr.msk.bf16.gmra.mrb[52].mxu0 %vm1973_vm7, %v4519_v27  ;;  %v1391_v56 = vpop.permute.xlu0 %1390  ;;  %v3448_v19 = vld [vmem:[#allocation2 + $0xe8] sm:$0xff]  ;;  %v10431_v20 = vsel %vm649_vm0, %v10364_v42, %v1128_v55  ;;  %v10443_v46 = vpack.c.bf16 %v450_v28, %v449_v29 }
 0x14e   : > { %2997 = vst.msk [vmem:[#allocation2 + $0x2e0] sm:$0xff] %vm1973_vm7, %v2607_v10  ;;  %v2613_v47 = vrot.slane %v2611_v40, 1  ;;  %v3204_v35 = vsel %vm3129_vm8, %v3201_v24, %v3203_v9  ;;  %1448 = vrot.lane.b32.xlu1 %v10395_v1, %s8999_s13  ;;  %v3447_v2 = vld [vmem:[#allocation2 + $0xe0] sm:$0xff]  ;;  %v10433_v10 = vpack.c.bf16 %v452_v11, %v451_v8  ;;  %v1683_v40 = vsel %vm1587_vm5, %v9618_v57, %v1393_v30 }
 0x14f   : > { %3384 = vst.msk [vmem:[#allocation2 + $0x4e8] sm:$0xff] %vm1973_vm7, %v3204_v35  ;;  %1446 = vrot.lane.b32.xlu0 %v10399_v36, %s8999_s13  ;;  %7972 = vmatprep.mubr.msk.bf16.mxu1 %vm1973_vm7, %v3447_v2  ;;  %v10441_v24 = vsel %vm9114_vm2, 0, %v1121_v50  ;;  %v1680_v42 = vsel %vm1587_vm5, %v9623_v45, %v1391_v56  ;;  %v1136_v26 = vor.u32 %v1134_v52, %v1133_v25  ;;  %v1146_v11 = vshrl.u32 %v10443_v46, 16 }
 0x150   : > { %v2614_v9 = vsel %vm2359_vm9, %v2610_v61, %v2613_v47  ;;  %7973 = vmatmul.mubr.msk.bf16.gmra.mrb[56].mxu1 %vm1973_vm7, %v3448_v19  ;;  %v1522_v38 = vpop.permute.xlu1 %1521  ;;  %v1143_v50 = vor.u32 %v1141_v3, %v10423_v14  ;;  %v1153_v45 = vshrl.u32 %v10433_v10, 16  ;;  %v1149_v35 = vshll.u32 %v10443_v46, 16 }
 0x151   : > { %2998 = vst.msk [vmem:[#allocation2 + $0x2e8] sm:$0xff] %vm1973_vm7, %v2614_v9  ;;  %v1875_v55 = vsel %vm1780_vm6, %v1683_v40, %v1522_v38  ;;  %v1520_v53 = vpop.permute.xlu0 %1519  ;;  %v1262_v3 = vsel %vm9114_vm2, 0, %v1136_v26  ;;  %v1156_v38 = vshll.u32 %v10433_v10, 16 }
 0x152   : > { %2005 = vst.msk [vmem:[#allocation2 + $0xf8] sm:$0xff] %vm1973_vm7, %v1875_v55  ;;  %v2621_v57 = vshll.u32 %v1875_v55, 16  ;;  %v3206_v0 = vrot.slane %v1875_v55, 1  ;;  %v1872_v59 = vsel %vm1780_vm6, %v1680_v42, %v1520_v53  ;;  %1577 = vrot.lane.b32.xlu1 %v10431_v20, %s8998_s12  ;;  %v1144_v47 = vsel %vm649_vm0, %v1133_v25, %v1143_v50 }
 0x153   : > { %2004 = vst.msk [vmem:[#allocation2 + $0xf0] sm:$0xff] %vm1973_vm7, %v1872_v59  ;;  %v2617_v29 = vshll.u32 %v1872_v59, 16  ;;  %v3205_v8 = vrot.slane %v1872_v59, 1  ;;  %1575 = vrot.lane.b32.xlu0 %v10441_v24, %s8998_s12  ;;  %v2615_v22 = vshrl.u32 %v1872_v59, 16  ;;  %v10473_v40 = vrot.slane %v1153_v45, 7 }
 0x154   : > { %v2166_v56 = vpop.permute.xlu1 %2165  ;;  %v2623_v52 = vrot.slane %v2621_v57, 1  ;;  %v1148_v59 = vrot.slane %v1146_v11, 7 }
 0x155   : > { %v2619_v30 = vrot.slane %v2617_v29, 1  ;;  %v3207_v27 = vsel %vm3129_vm8, %v3205_v8, %v3206_v0  ;;  %v2101_v28 = vpop.permute.xlu0 %2100  ;;  %v4520_v19 = vld [vmem:[#allocation2 + $0x2e0] sm:$0xff] }
 0x156   : > { %3385 = vst.msk [vmem:[#allocation2 + $0x4f0] sm:$0xff] %vm1973_vm7, %v3207_v27  ;;  %v2246_v61 = vsel %vm1587_vm5, %v9635_v60, %v2101_v28  ;;  %8102 = vmatprep.mubr.msk.bf16.mxu0 %vm1973_vm7, %v4520_v19  ;;  %1452 = vrot.lane.b32.xlu1 %v10431_v20, %s8999_s13  ;;  %v2625_v60 = vshrl.u32 %v1875_v55, 16 }
 0x157   : > { %v2620_v2 = vor.u32 %v2619_v30, %v2615_v22  ;;  %v2326_v9 = vsel %vm1780_vm6, %v2246_v61, %v2166_v56  ;;  %1450 = vrot.lane.b32.xlu0 %v10441_v24, %s8999_s13  ;;  %v11696_v56 = vld [vmem:[#allocation9_spill] sm:$0xff]  ;;  %v1158_v22 = vor.u32 %v1156_v38, %v10473_v40 }
 0x158   : > { %v2628_v42 = vshll.u32 %v2326_v9, 16  ;;  %v3208_v53 = vrot.slane %v2326_v9, 1  ;;  %v1397_v26 = vpop.permute.xlu1 %1396  ;;  %v4521_v57 = vld [vmem:[#allocation2 + $0x2e8] sm:$0xff]  ;;  %v2627_v29 = vor.u32 %v2625_v60, %v2623_v52 }
 0x159   : > { %v2624_v25 = vsel %vm2359_vm9, %v2620_v2, %v2623_v52  ;;  %8103 = vmatmul.mubr.msk.bf16.gmra.mrb[56].mxu0 %vm1973_vm7, %v4521_v57  ;;  %v1395_v46 = vpop.permute.xlu0 %1394  ;;  %v3450_v50 = vld [vmem:[#allocation2 + $0xf8] sm:$0xff]  ;;  %v1689_v10 = vsel %vm1587_vm5, %v9680_v13, %v1397_v26  ;;  %v1151_v13 = vor.u32 %v1149_v35, %v1148_v59  ;;  %v1159_v60 = vsel %vm649_vm0, %v1148_v59, %v1158_v22 }
 0x15a   : > { %2999 = vst.msk [vmem:[#allocation2 + $0x2f0] sm:$0xff] %vm1973_vm7, %v2624_v25  ;;  %v2630_v8 = vrot.slane %v2628_v42, 1  ;;  %v3209_v45 = vsel %vm3129_vm8, %v3206_v0, %v3208_v53  ;;  %1581 = vrot.lane.b32.xlu1 %v1144_v47, %s8998_s12  ;;  %v3449_v55 = vld [vmem:[#allocation2 + $0xf0] sm:$0xff]  ;;  %v1686_v11 = vsel %vm1587_vm5, %v11696_v56, %v1395_v46 }
 0x15b   : > { %3386 = vst.msk [vmem:[#allocation2 + $0x4f8] sm:$0xff] %vm1973_vm7, %v3209_v45  ;;  %1579 = vrot.lane.b32.xlu0 %v1262_v3, %s8998_s12  ;;  %7976 = vmatprep.mubr.msk.bf16.mxu1 %vm1973_vm7, %v3449_v55  ;;  %v1263_v26 = vsel %vm9114_vm2, 0, %v1151_v13 }
 0x15c   : > { %v2631_v30 = vsel %vm2359_vm9, %v2627_v29, %v2630_v8  ;;  %7977 = vmatmul.mubr.msk.bf16.gmra.mrb[60].mxu1 %vm1973_vm7, %v3450_v50  ;;  %v1526_v0 = vpop.permute.xlu1 %1525  ;;  %v10523_v8 = vsel %vm9114_vm2, %v9772_v31, 0 }
 0x15d   : > { %3000 = vst.msk [vmem:[#allocation2 + $0x2f8] sm:$0xff] %vm1973_vm7, %v2631_v30  ;;  %v10493_v27 = vsel %vm1780_vm6, %v1689_v10, %v1526_v0  ;;  %v1524_v28 = vpop.permute.xlu0 %1523 }
 0x15e   : > { %2007 = vst.msk [vmem:[#allocation2 + $0x108] sm:$0xff] %vm1973_vm7, %v10493_v27  ;;  %v2638_v19 = vshll.u32 %v10493_v27, 16  ;;  %v2642_v52 = vshrl.u32 %v10493_v27, 16  ;;  %v11673_v61 = vrot.slane %v10493_v27, 1  ;;  %v1878_v2 = vsel %vm1780_vm6, %v1686_v11, %v1524_v28  ;;  %1456 = vrot.lane.b32.xlu1 %v1144_v47, %s8999_s13  ;;  %v5689_v11 = vld [vmem:[#allocation2 + $0x400] sm:$0xff] }
 0x15f   : > { %2006 = vst.msk [vmem:[#allocation2 + $0x100] sm:$0xff] %vm1973_vm7, %v1878_v2  ;;  %v2632_v35 = vshrl.u32 %v1878_v2, 16  ;;  %v2634_v9 = vshll.u32 %v1878_v2, 16  ;;  %v3210_v38 = vrot.slane %v1878_v2, 1  ;;  %1454 = vrot.lane.b32.xlu0 %v1262_v3, %s8999_s13  ;;  %v11697_v2 = vld [vmem:[#allocation11_spill] sm:$0xff] }
 0x160   : > { %v2640_v42 = vrot.slane %v2638_v19, 1  ;;  %v1401_v53 = vpop.permute.xlu1 %1400 }
 0x161   : > { %v2636_v57 = vrot.slane %v2634_v9, 1  ;;  %v3212_v25 = vsel %vm3129_vm8, %v3210_v38, %v11673_v61  ;;  %v1399_v47 = vpop.permute.xlu0 %1398  ;;  %v4522_v46 = vld [vmem:[#allocation2 + $0x2f0] sm:$0xff]  ;;  %v1695_v3 = vsel %vm1587_vm5, %v9738_v7, %v1401_v53  ;;  %v5716_v61 = vld [vmem:[#allocation2 + $0x4d8] sm:$0xff] }
 0x162   : > { %v10510_v50 = vor.u32 %v2642_v52, %v2640_v42  ;;  %3387 = vst.msk [vmem:[#allocation2 + $0x500] sm:$0xff] %vm1973_vm7, %v3212_v25  ;;  %8106 = vmatprep.mubr.msk.bf16.mxu0 %vm1973_vm7, %v4522_v46  ;;  %1585 = vrot.lane.b32.xlu1 %v1159_v60, %s8998_s12  ;;  %v1692_v29 = vsel %vm1587_vm5, %v9750_v41, %v1399_v47  ;;  %v10567_v46 = vsel %vm9114_vm2, %v9842_v58, 0 }
 0x163   : > { %v2637_v59 = vor.u32 %v2636_v57, %v2632_v35  ;;  %1583 = vrot.lane.b32.xlu0 %v1263_v26, %s8998_s12  ;;  %v10547_v35 = vsel %vm9114_vm2, %v11697_v2, 0 }
 0x164   : > { %v1530_v45 = vpop.permute.xlu1 %1529  ;;  %v4523_v10 = vld [vmem:[#allocation2 + $0x2f8] sm:$0xff] }
 0x165   : > { %v2641_v55 = vsel %vm2359_vm9, %v2637_v59, %v2640_v42  ;;  %v10527_v7 = vsel %vm1780_vm6, %v1695_v3, %v1530_v45  ;;  %8107 = vmatmul.mubr.msk.bf16.gmra.mrb[60].mxu0 %vm1973_vm7, %v4523_v10  ;;  %v1528_v56 = vpop.permute.xlu0 %1527  ;;  %v3452_v22 = vld [vmem:[#allocation2 + $0x108] sm:$0xff]  ;;  %v5691_v10 = vld [vmem:[#allocation2 + $0x410] sm:$0xff] }
 0x166   : > { %3001 = vst.msk [vmem:[#allocation2 + $0x300] sm:$0xff] %vm1973_vm7, %v2641_v55  ;;  %2009 = vst.msk [vmem:[#allocation2 + $0x118] sm:$0xff] %vm1973_vm7, %v10527_v7  ;;  %v2655_v41 = vshll.u32 %v10527_v7, 16  ;;  %v2659_v31 = vshrl.u32 %v10527_v7, 16  ;;  %v11670_v30 = vrot.slane %v10527_v7, 1  ;;  %v1884_v0 = vsel %vm1780_vm6, %v1692_v29, %v1528_v56  ;;  %8176 = vmatprep.mubr.msk.bf16.mxu0 %vm1973_vm7, %v5689_v11  ;;  %v3451_v13 = vld [vmem:[#allocation2 + $0x100] sm:$0xff]  ;;  %2167 = vrot.lane.b32.xlu1 %v10523_v8, %s8998_s12 }
 0x167   : > { %2008 = vst.msk [vmem:[#allocation2 + $0x110] sm:$0xff] %vm1973_vm7, %v1884_v0  ;;  %v2649_v28 = vshrl.u32 %v1884_v0, 16  ;;  %v2651_v19 = vshll.u32 %v1884_v0, 16  ;;  %v3215_v52 = vrot.slane %v1884_v0, 1  ;;  %2102 = vrot.lane.b32.xlu0 %v9754_v12, %s8999_s13  ;;  %7980 = vmatprep.mubr.msk.bf16.mxu1 %vm1973_vm7, %v3451_v13  ;;  %v5690_v59 = vld [vmem:[#allocation2 + $0x408] sm:$0xff]  ;;  %v10591_v13 = vsel %vm9114_vm2, %v9916_v15, 0 }
 0x168   : > { %v2657_v9 = vrot.slane %v2655_v41, 1  ;;  %7981 = vmatmul.mubr.msk.bf16.gmra.mrb[64].mxu1 %vm1973_vm7, %v3452_v22  ;;  %v1405_v38 = vpop.permute.xlu1 %1404 }
 0x169   : > { %v2653_v60 = vrot.slane %v2651_v19, 1  ;;  %v3217_v42 = vsel %vm3129_vm8, %v3215_v52, %v11670_v30  ;;  %v1403_v53 = vpop.permute.xlu0 %1402  ;;  %v1701_v57 = vsel %vm1587_vm5, %v9820_v37, %v1405_v38  ;;  %v5712_v30 = vld [vmem:[#allocation2 + $0x4b8] sm:$0xff] }
 0x16a   : > { %v10553_v26 = vor.u32 %v2659_v31, %v2657_v9  ;;  %3389 = vst.msk [vmem:[#allocation2 + $0x510] sm:$0xff] %vm1973_vm7, %v3217_v42  ;;  %2169 = vrot.lane.b32.xlu1 %v10547_v35, %s8998_s12  ;;  %v1698_v47 = vsel %vm1587_vm5, %v9825_v21, %v1403_v53  ;;  %v11698_v42 = vld [vmem:[#allocation12_spill] sm:$0xff] }
 0x16b   : > { %v2654_v25 = vor.u32 %v2653_v60, %v2649_v28  ;;  %2104 = vrot.lane.b32.xlu0 %v10523_v8, %s8999_s13 }
 0x16c   : > { %v1534_v3 = vpop.permute.xlu1 %1533 }
 0x16d   : > { %v2658_v29 = vsel %vm2359_vm9, %v2654_v25, %v2657_v9  ;;  %v10571_v37 = vsel %vm1780_vm6, %v1701_v57, %v1534_v3  ;;  %8177 = vmatmul.mubr.msk.bf16.vlgmr.msra.gmra.mrb[0].mxu0 %vm1973_vm7, %v5690_v59  ;;  %v1532_v45 = vpop.permute.xlu0 %1531  ;;  %v3454_v21 = vld [vmem:[#allocation2 + $0x118] sm:$0xff]  ;;  %v10611_v57 = vsel %vm9114_vm2, %v9951_v5, 0 }
 0x16e   : > { %3003 = vst.msk [vmem:[#allocation2 + $0x310] sm:$0xff] %vm1973_vm7, %v2658_v29  ;;  %2011 = vst.msk [vmem:[#allocation2 + $0x128] sm:$0xff] %vm1973_vm7, %v10571_v37  ;;  %v2672_v58 = vshll.u32 %v10571_v37, 16  ;;  %v2676_v55 = vshrl.u32 %v10571_v37, 16  ;;  %v11668_v56 = vrot.slane %v10571_v37, 1  ;;  %v1890_v11 = vsel %vm1780_vm6, %v1698_v47, %v1532_v45  ;;  %8180 = vmatprep.mubr.msk.bf16.mxu0 %vm1973_vm7, %v5691_v10  ;;  %v3453_v22 = vld [vmem:[#allocation2 + $0x110] sm:$0xff]  ;;  %2171 = vrot.lane.b32.xlu1 %v10567_v46, %s8998_s12 }
 0x16f   : > { %2010 = vst.msk [vmem:[#allocation2 + $0x120] sm:$0xff] %vm1973_vm7, %v1890_v11  ;;  %v2666_v41 = vshrl.u32 %v1890_v11, 16  ;;  %v2668_v31 = vshll.u32 %v1890_v11, 16  ;;  %v3220_v0 = vrot.slane %v1890_v11, 1  ;;  %2106 = vrot.lane.b32.xlu0 %v10547_v35, %s8999_s13  ;;  %7984 = vmatprep.mubr.msk.bf16.mxu1 %vm1973_vm7, %v3453_v22  ;;  %v5692_v47 = vld [vmem:[#allocation2 + $0x418] sm:$0xff]  ;;  %v5693_v29 = vld [vmem:[#allocation2 + $0x420] sm:$0xff] }
 0x170   : > { %v2674_v28 = vrot.slane %v2672_v58, 1  ;;  %7985 = vmatmul.mubr.msk.bf16.gmra.mrb[68].mxu1 %vm1973_vm7, %v3454_v21  ;;  %v1409_v19 = vpop.permute.xlu1 %1408 }
 0x171   : > { %v2670_v52 = vrot.slane %v2668_v31, 1  ;;  %v3222_v2 = vsel %vm3129_vm8, %v3220_v0, %v11668_v56  ;;  %v1407_v9 = vpop.permute.xlu0 %1406  ;;  %v1707_v60 = vsel %vm1587_vm5, %v9861_v48, %v1409_v19  ;;  %v10635_v31 = vsel %vm9114_vm2, %v9986_v43, 0  ;;  %v5710_v56 = vld [vmem:[#allocation2 + $0x4a8] sm:$0xff] }
 0x172   : > { %v10597_v38 = vor.u32 %v2676_v55, %v2674_v28  ;;  %3391 = vst.msk [vmem:[#allocation2 + $0x520] sm:$0xff] %vm1973_vm7, %v3222_v2  ;;  %2173 = vrot.lane.b32.xlu1 %v10591_v13, %s8998_s12  ;;  %v1704_v53 = vsel %vm1587_vm5, %v11698_v42, %v1407_v9  ;;  %v11700_v42 = vld [vmem:[#allocation14_spill] sm:$0xff] }
 0x173   : > { %v2671_v15 = vor.u32 %v2670_v52, %v2666_v41  ;;  %2108 = vrot.lane.b32.xlu0 %v10567_v46, %s8999_s13 }
 0x174   : > { %v1538_v25 = vpop.permute.xlu1 %1537 }
 0x175   : > { %v2675_v3 = vsel %vm2359_vm9, %v2671_v15, %v2674_v28  ;;  %v10615_v48 = vsel %vm1780_vm6, %v1707_v60, %v1538_v25  ;;  %8181 = vmatmul.mubr.msk.bf16.gmra.mrb[4].mxu0 %vm1973_vm7, %v5692_v47  ;;  %v1536_v59 = vpop.permute.xlu0 %1535  ;;  %v3456_v45 = vld [vmem:[#allocation2 + $0x128] sm:$0xff]  ;;  %v10659_v25 = vsel %vm9114_vm2, %v10060_v4, 0 }
 0x176   : > { %3005 = vst.msk [vmem:[#allocation2 + $0x320] sm:$0xff] %vm1973_vm7, %v2675_v3  ;;  %2013 = vst.msk [vmem:[#allocation2 + $0x138] sm:$0xff] %vm1973_vm7, %v10615_v48  ;;  %v2689_v5 = vshll.u32 %v10615_v48, 16  ;;  %v2693_v10 = vshrl.u32 %v10615_v48, 16  ;;  %v11667_v21 = vrot.slane %v10615_v48, 1  ;;  %v1896_v58 = vsel %vm1780_vm6, %v1704_v53, %v1536_v59  ;;  %8184 = vmatprep.mubr.msk.bf16.mxu0 %vm1973_vm7, %v5693_v29  ;;  %v3455_v55 = vld [vmem:[#allocation2 + $0x120] sm:$0xff]  ;;  %2175 = vrot.lane.b32.xlu1 %v10611_v57, %s8998_s12 }
 0x177   : > { %2012 = vst.msk [vmem:[#allocation2 + $0x130] sm:$0xff] %vm1973_vm7, %v1896_v58  ;;  %v2683_v11 = vshrl.u32 %v1896_v58, 16  ;;  %v2685_v22 = vshll.u32 %v1896_v58, 16  ;;  %v3225_v41 = vrot.slane %v1896_v58, 1  ;;  %2110 = vrot.lane.b32.xlu0 %v10591_v13, %s8999_s13  ;;  %7988 = vmatprep.mubr.msk.bf16.mxu1 %vm1973_vm7, %v3455_v55  ;;  %v11699_v60 = vld [vmem:[#allocation13_spill] sm:$0xff] }
 0x178   : > { %v2691_v0 = vrot.slane %v2689_v5, 1  ;;  %7989 = vmatmul.mubr.msk.bf16.gmra.mrb[72].mxu1 %vm1973_vm7, %v3456_v45  ;;  %v1413_v28 = vpop.permute.xlu1 %1412  ;;  %v5694_v3 = vld [vmem:[#allocation2 + $0x428] sm:$0xff]  ;;  %v5695_v5 = vld [vmem:[#allocation2 + $0x430] sm:$0xff] }
 0x179   : > { %v2687_v19 = vrot.slane %v2685_v22, 1  ;;  %v3227_v52 = vsel %vm3129_vm8, %v3225_v41, %v11667_v21  ;;  %v1411_v2 = vpop.permute.xlu0 %1410  ;;  %v1713_v43 = vsel %vm1587_vm5, %v11699_v60, %v1413_v28 }
 0x17a   : > { %v10644_v9 = vor.u32 %v2693_v10, %v2691_v0  ;;  %3393 = vst.msk [vmem:[#allocation2 + $0x530] sm:$0xff] %vm1973_vm7, %v3227_v52  ;;  %2177 = vrot.lane.b32.xlu1 %v10635_v31, %s8998_s12  ;;  %v1710_v53 = vsel %vm1587_vm5, %v11700_v42, %v1411_v2  ;;  %v10683_v52 = vsel %vm9114_vm2, %v10095_v39, 0 }
 0x17b   : > { %v2688_v15 = vor.u32 %v2687_v19, %v2683_v11  ;;  %2112 = vrot.lane.b32.xlu0 %v10611_v57, %s8999_s13 }
 0x17c   : > { %v1542_v47 = vpop.permute.xlu1 %1541 }
 0x17d   : > { %v2692_v59 = vsel %vm2359_vm9, %v2688_v15, %v2691_v0  ;;  %v10663_v29 = vsel %vm1780_vm6, %v1713_v43, %v1542_v47  ;;  %8185 = vmatmul.mubr.msk.bf16.gmra.mrb[8].mxu0 %vm1973_vm7, %v5694_v3  ;;  %v1540_v45 = vpop.permute.xlu0 %1539  ;;  %v3458_v10 = vld [vmem:[#allocation2 + $0x138] sm:$0xff] }
 0x17e   : > { %3007 = vst.msk [vmem:[#allocation2 + $0x330] sm:$0xff] %vm1973_vm7, %v2692_v59  ;;  %2015 = vst.msk [vmem:[#allocation2 + $0x148] sm:$0xff] %vm1973_vm7, %v10663_v29  ;;  %v2706_v4 = vshll.u32 %v10663_v29, 16  ;;  %v2710_v58 = vshrl.u32 %v10663_v29, 16  ;;  %v11666_v55 = vrot.slane %v10663_v29, 1  ;;  %v1902_v11 = vsel %vm1780_vm6, %v1710_v53, %v1540_v45  ;;  %8188 = vmatprep.mubr.msk.bf16.mxu0 %vm1973_vm7, %v5695_v5  ;;  %v3457_v22 = vld [vmem:[#allocation2 + $0x130] sm:$0xff]  ;;  %2179 = vrot.lane.b32.xlu1 %v10659_v25, %s8998_s12 }
 0x17f   : > { %2014 = vst.msk [vmem:[#allocation2 + $0x140] sm:$0xff] %vm1973_vm7, %v1902_v11  ;;  %v2700_v41 = vshrl.u32 %v1902_v11, 16  ;;  %v2702_v0 = vshll.u32 %v1902_v11, 16  ;;  %v3230_v28 = vrot.slane %v1902_v11, 1  ;;  %v7918_v19 = vpop.f32.mrb[0].mxu1  ;;  %2114 = vrot.lane.b32.xlu0 %v10635_v31, %s8999_s13  ;;  %7992 = vmatprep.mubr.msk.bf16.mxu1 %vm1973_vm7, %v3457_v22 }
 0x180   : > { %v2708_v2 = vrot.slane %v2706_v4, 1  ;;  %8306 = vst [vmem:[%s10687_s16 + $0x10] sm:$0xff] %v7918_v19  ;;  %v3724_v60 = vpop.f32.mrb[1].mxu1  ;;  %7993 = vmatmul.mubr.msk.bf16.gmra.mrb[76].mxu1 %vm1973_vm7, %v3458_v10  ;;  %v1417_v43 = vpop.permute.xlu1 %1416  ;;  %v10711_v10 = vsel %vm9114_vm2, %v10130_v33, 0 }
 0x181   : > { %v2704_v15 = vrot.slane %v2702_v0, 1  ;;  %v3232_v42 = vsel %vm3129_vm8, %v3230_v28, %v11666_v55  ;;  %8309 = vst [vmem:[%s10687_s16] sm:$0xff] %v3724_v60  ;;  %v7919_v39 = vpop.f32.mrb[2].mxu1  ;;  %v1415_v53 = vpop.permute.xlu0 %1414  ;;  %v1719_v3 = vsel %vm1587_vm5, %v9964_v63, %v1417_v43  ;;  %v5696_v63 = vld [vmem:[#allocation2 + $0x438] sm:$0xff] }
 0x182   : > { %v10695_v47 = vor.u32 %v2710_v58, %v2708_v2  ;;  %3395 = vst.msk [vmem:[#allocation2 + $0x540] sm:$0xff] %vm1973_vm7, %v3232_v42  ;;  %8312 = vst [vmem:[%s10687_s16 + $0x18] sm:$0xff] %v7919_v39  ;;  %v3727_v59 = vpop.f32.mrb[3].mxu1  ;;  %2181 = vrot.lane.b32.xlu1 %v10683_v52, %s8998_s12  ;;  %v1716_v5 = vsel %vm1587_vm5, %v9969_v17, %v1415_v53  ;;  %v5697_v17 = vld [vmem:[#allocation2 + $0x440] sm:$0xff]  ;;  %v10735_v42 = vsel %vm9114_vm2, %v10204_v23, 0 }
 0x183   : > { %v2705_v45 = vor.u32 %v2704_v15, %v2700_v41  ;;  %8315 = vst [vmem:[%s10687_s16 + $0x8] sm:$0xff] %v3727_v59  ;;  %2116 = vrot.lane.b32.xlu0 %v10659_v25, %s8999_s13 }
 0x184   : > { %v1546_v4 = vpop.permute.xlu1 %1545 }
 0x185   : > { %v2709_v58 = vsel %vm2359_vm9, %v2705_v45, %v2708_v2  ;;  %v10715_v11 = vsel %vm1780_vm6, %v1719_v3, %v1546_v4  ;;  %8189 = vmatmul.mubr.msk.bf16.gmra.mrb[12].mxu0 %vm1973_vm7, %v5696_v63  ;;  %v1544_v22 = vpop.permute.xlu0 %1543  ;;  %v3460_v41 = vld [vmem:[#allocation2 + $0x148] sm:$0xff] }
 0x186   : > { %3009 = vst.msk [vmem:[#allocation2 + $0x340] sm:$0xff] %vm1973_vm7, %v2709_v58  ;;  %2017 = vst.msk [vmem:[#allocation2 + $0x158] sm:$0xff] %vm1973_vm7, %v10715_v11  ;;  %v2723_v33 = vshll.u32 %v10715_v11, 16  ;;  %v2727_v0 = vshrl.u32 %v10715_v11, 16  ;;  %v11664_v28 = vrot.slane %v10715_v11, 1  ;;  %v1908_v19 = vsel %vm1780_vm6, %v1716_v5, %v1544_v22  ;;  %8192 = vmatprep.mubr.msk.bf16.mxu0 %vm1973_vm7, %v5697_v17  ;;  %v3459_v2 = vld [vmem:[#allocation2 + $0x140] sm:$0xff]  ;;  %2183 = vrot.lane.b32.xlu1 %v10711_v10, %s8998_s12 }
 0x187   : > { %2016 = vst.msk [vmem:[#allocation2 + $0x150] sm:$0xff] %vm1973_vm7, %v1908_v19  ;;  %v2717_v60 = vshrl.u32 %v1908_v19, 16  ;;  %v2719_v43 = vshll.u32 %v1908_v19, 16  ;;  %v3235_v15 = vrot.slane %v1908_v19, 1  ;;  %2118 = vrot.lane.b32.xlu0 %v10683_v52, %s8999_s13  ;;  %7996 = vmatprep.mubr.msk.bf16.mxu1 %vm1973_vm7, %v3459_v2  ;;  %v11701_v17 = vld [vmem:[#allocation15_spill] sm:$0xff]  ;;  %v5698_v19 = vld [vmem:[#allocation2 + $0x448] sm:$0xff] }
 0x188   : > { %v2725_v39 = vrot.slane %v2723_v33, 1  ;;  %v7922_v53 = vpop.f32.mrb[4].mxu1  ;;  %7997 = vmatmul.mubr.msk.bf16.gmra.mrb[80].mxu1 %vm1973_vm7, %v3460_v41  ;;  %v1421_v3 = vpop.permute.xlu1 %1420 }
 0x189   : > { %v2721_v59 = vrot.slane %v2719_v43, 1  ;;  %v3237_v45 = vsel %vm3129_vm8, %v3235_v15, %v11664_v28  ;;  %8318 = vst [vmem:[%s10687_s16 + $0x30] sm:$0xff] %v7922_v53  ;;  %v3740_v5 = vpop.f32.mrb[5].mxu1  ;;  %v1419_v4 = vpop.permute.xlu0 %1418  ;;  %v1725_v23 = vsel %vm1587_vm5, %v10005_v34, %v1421_v3  ;;  %v5699_v15 = vld [vmem:[#allocation2 + $0x450] sm:$0xff] }
 0x18a   : > { %v10742_v63 = vor.u32 %v2727_v0, %v2725_v39  ;;  %3397 = vst.msk [vmem:[#allocation2 + $0x550] sm:$0xff] %vm1973_vm7, %v3237_v45  ;;  %8321 = vst [vmem:[%s10687_s16 + $0x20] sm:$0xff] %v3740_v5  ;;  %v7923_v58 = vpop.f32.mrb[6].mxu1  ;;  %2185 = vrot.lane.b32.xlu1 %v10735_v42, %s8998_s12  ;;  %v1722_v41 = vsel %vm1587_vm5, %v11701_v17, %v1419_v4  ;;  %v10758_v0 = vsel %vm9114_vm2, %v10239_v54, 0 }
 0x18b   : > { %v2722_v22 = vor.u32 %v2721_v59, %v2717_v60  ;;  %8324 = vst [vmem:[%s10687_s16 + $0x38] sm:$0xff] %v7923_v58  ;;  %v3743_v33 = vpop.f32.mrb[7].mxu1  ;;  %2120 = vrot.lane.b32.xlu0 %v10711_v10, %s8999_s13  ;;  %v10783_v58 = vsel %vm9114_vm2, %v10272_v16, 0 }
 0x18c   : > { %8327 = vst [vmem:[%s10687_s16 + $0x28] sm:$0xff] %v3743_v33  ;;  %v1550_v34 = vpop.permute.xlu1 %1549 }
 0x18d   : > { %v2726_v2 = vsel %vm2359_vm9, %v2722_v22, %v2725_v39  ;;  %v10763_v60 = vsel %vm1780_vm6, %v1725_v23, %v1550_v34  ;;  %8193 = vmatmul.mubr.msk.bf16.gmra.mrb[16].mxu0 %vm1973_vm7, %v5698_v19  ;;  %v1548_v43 = vpop.permute.xlu0 %1547  ;;  %v3462_v53 = vld [vmem:[#allocation2 + $0x158] sm:$0xff] }
 0x18e   : > { %3011 = vst.msk [vmem:[#allocation2 + $0x350] sm:$0xff] %vm1973_vm7, %v2726_v2  ;;  %2019 = vst.msk [vmem:[#allocation2 + $0x168] sm:$0xff] %vm1973_vm7, %v10763_v60  ;;  %v2740_v54 = vshll.u32 %v10763_v60, 16  ;;  %v2744_v3 = vshrl.u32 %v10763_v60, 16  ;;  %v11661_v59 = vrot.slane %v10763_v60, 1  ;;  %v1914_v39 = vsel %vm1780_vm6, %v1722_v41, %v1548_v43  ;;  %8196 = vmatprep.mubr.msk.bf16.mxu0 %vm1973_vm7, %v5699_v15  ;;  %v3461_v45 = vld [vmem:[#allocation2 + $0x150] sm:$0xff]  ;;  %2187 = vrot.lane.b32.xlu1 %v10758_v0, %s8998_s12 }
 0x18f   : > { %2018 = vst.msk [vmem:[#allocation2 + $0x160] sm:$0xff] %vm1973_vm7, %v1914_v39  ;;  %v2734_v5 = vshrl.u32 %v1914_v39, 16  ;;  %v2736_v4 = vshll.u32 %v1914_v39, 16  ;;  %v3240_v23 = vrot.slane %v1914_v39, 1  ;;  %2122 = vrot.lane.b32.xlu0 %v10735_v42, %s8999_s13  ;;  %8000 = vmatprep.mubr.msk.bf16.mxu1 %vm1973_vm7, %v3461_v45  ;;  %v11702_v2 = vld [vmem:[#allocation16_spill] sm:$0xff]  ;;  %v11703_v15 = vld [vmem:[#allocation17_spill] sm:$0xff] }
 0x190   : > { %v2742_v22 = vrot.slane %v2740_v54, 1  ;;  %8001 = vmatmul.mubr.msk.bf16.gmra.mrb[84].mxu1 %vm1973_vm7, %v3462_v53  ;;  %v1425_v17 = vpop.permute.xlu1 %1424 }
 0x191   : > { %v2738_v41 = vrot.slane %v2736_v4, 1  ;;  %v3242_v33 = vsel %vm3129_vm8, %v3240_v23, %v11661_v59  ;;  %v1423_v34 = vpop.permute.xlu0 %1422  ;;  %v1731_v16 = vsel %vm1587_vm5, %v11702_v2, %v1425_v17  ;;  %v5700_v4 = vld [vmem:[#allocation2 + $0x458] sm:$0xff] }
 0x192   : > { %v10789_v19 = vor.u32 %v2744_v3, %v2742_v22  ;;  %3399 = vst.msk [vmem:[#allocation2 + $0x560] sm:$0xff] %vm1973_vm7, %v3242_v33  ;;  %2189 = vrot.lane.b32.xlu1 %v10783_v58, %s8998_s12  ;;  %v1728_v53 = vsel %vm1587_vm5, %v11703_v15, %v1423_v34  ;;  %v10803_v3 = vsel %vm9114_vm2, %v10346_v62, 0  ;;  %v5701_v33 = vld [vmem:[#allocation2 + $0x460] sm:$0xff] }
 0x193   : > { %v2739_v43 = vor.u32 %v2738_v41, %v2734_v5  ;;  %v7926_v54 = vpop.f32.mrb[8].mxu1  ;;  %2124 = vrot.lane.b32.xlu0 %v10758_v0, %s8999_s13 }
 0x194   : > { %8330 = vst [vmem:[%s10687_s16 + $0x50] sm:$0xff] %v7926_v54  ;;  %v3756_v39 = vpop.f32.mrb[9].mxu1  ;;  %v1554_v45 = vpop.permute.xlu1 %1553 }
 0x195   : > { %v2743_v23 = vsel %vm2359_vm9, %v2739_v43, %v2742_v22  ;;  %8333 = vst [vmem:[%s10687_s16 + $0x40] sm:$0xff] %v3756_v39  ;;  %v10809_v5 = vsel %vm1780_vm6, %v1731_v16, %v1554_v45  ;;  %v7927_v17 = vpop.f32.mrb[10].mxu1  ;;  %8197 = vmatmul.mubr.msk.bf16.gmra.mrb[20].mxu0 %vm1973_vm7, %v5700_v4  ;;  %v1552_v41 = vpop.permute.xlu0 %1551  ;;  %v3464_v34 = vld [vmem:[#allocation2 + $0x168] sm:$0xff] }
 0x196   : > { %3013 = vst.msk [vmem:[#allocation2 + $0x360] sm:$0xff] %vm1973_vm7, %v2743_v23  ;;  %2021 = vst.msk [vmem:[#allocation2 + $0x178] sm:$0xff] %vm1973_vm7, %v10809_v5  ;;  %v2757_v62 = vshll.u32 %v10809_v5, 16  ;;  %v2761_v22 = vshrl.u32 %v10809_v5, 16  ;;  %v11660_v2 = vrot.slane %v10809_v5, 1  ;;  %v1920_v16 = vsel %vm1780_vm6, %v1728_v53, %v1552_v41  ;;  %v3759_v43 = vpop.f32.mrb[11].mxu1  ;;  %8200 = vmatprep.mubr.msk.bf16.mxu0 %vm1973_vm7, %v5701_v33  ;;  %2191 = vrot.lane.b32.xlu1 %v10803_v3, %s8998_s12 }
 0x197   : > { %8336 = vst [vmem:[%s10687_s16 + $0x58] sm:$0xff] %v7927_v17  ;;  %v3463_v15 = vld [vmem:[#allocation2 + $0x160] sm:$0xff]  ;;  %2020 = vst.msk [vmem:[#allocation2 + $0x170] sm:$0xff] %vm1973_vm7, %v1920_v16  ;;  %v2751_v54 = vshrl.u32 %v1920_v16, 16  ;;  %v2753_v39 = vshll.u32 %v1920_v16, 16  ;;  %v3245_v45 = vrot.slane %v1920_v16, 1  ;;  %2126 = vrot.lane.b32.xlu0 %v10783_v58, %s8999_s13 }
 0x198   : > { %8339 = vst [vmem:[%s10687_s16 + $0x48] sm:$0xff] %v3759_v43  ;;  %8004 = vmatprep.mubr.msk.bf16.mxu1 %vm1973_vm7, %v3463_v15  ;;  %v10831_v53 = vsel %vm9114_vm2, %v10373_v51, 0  ;;  %v2759_v4 = vrot.slane %v2757_v62, 1  ;;  %v1429_v23 = vpop.permute.xlu1 %1428  ;;  %v1296_v62 = vsel %vm9114_vm2, %v10423_v14, 0  ;;  %v5702_v15 = vld [vmem:[#allocation2 + $0x468] sm:$0xff] }
 0x199   : > { %8005 = vmatmul.mubr.msk.bf16.gmra.mrb[88].mxu1 %vm1973_vm7, %v3464_v34  ;;  %v2755_v17 = vrot.slane %v2753_v39, 1  ;;  %v3247_v41 = vsel %vm3129_vm8, %v3245_v45, %v11660_v2  ;;  %v1427_v33 = vpop.permute.xlu0 %1426  ;;  %v1737_v43 = vsel %vm1587_vm5, %v10108_v49, %v1429_v23  ;;  %v5703_v45 = vld [vmem:[#allocation2 + $0x470] sm:$0xff] }
 0x19a   : > { %v10837_v16 = vor.u32 %v2761_v22, %v2759_v4  ;;  %3401 = vst.msk [vmem:[#allocation2 + $0x570] sm:$0xff] %vm1973_vm7, %v3247_v41  ;;  %2193 = vrot.lane.b32.xlu1 %v10831_v53, %s8998_s12  ;;  %v1734_v34 = vsel %vm1587_vm5, %v10113_v6, %v1427_v33 }
 0x19b   : > { %v2756_v51 = vor.u32 %v2755_v17, %v2751_v54  ;;  %2128 = vrot.lane.b32.xlu0 %v10803_v3, %s8999_s13 }
 0x19c   : > { %v1558_v22 = vpop.permute.xlu1 %1557 }
 0x19d   : > { %v2760_v39 = vsel %vm2359_vm9, %v2756_v51, %v2759_v4  ;;  %v10853_v49 = vsel %vm1780_vm6, %v1737_v43, %v1558_v22  ;;  %8201 = vmatmul.mubr.msk.bf16.gmra.mrb[24].mxu0 %vm1973_vm7, %v5702_v15  ;;  %v1556_v54 = vpop.permute.xlu0 %1555  ;;  %v3466_v23 = vld [vmem:[#allocation2 + $0x178] sm:$0xff] }
 0x19e   : > { %3015 = vst.msk [vmem:[#allocation2 + $0x370] sm:$0xff] %vm1973_vm7, %v2760_v39  ;;  %2023 = vst.msk [vmem:[#allocation2 + $0x188] sm:$0xff] %vm1973_vm7, %v10853_v49  ;;  %v2774_v6 = vshll.u32 %v10853_v49, 16  ;;  %v2778_v14 = vshrl.u32 %v10853_v49, 16  ;;  %v11663_v4 = vrot.slane %v10853_v49, 1  ;;  %v1926_v17 = vsel %vm1780_vm6, %v1734_v34, %v1556_v54  ;;  %8204 = vmatprep.mubr.msk.bf16.mxu0 %vm1973_vm7, %v5703_v45  ;;  %v3465_v41 = vld [vmem:[#allocation2 + $0x170] sm:$0xff]  ;;  %2195 = vrot.lane.b32.xlu1 %v1296_v62, %s8998_s12 }
 0x19f   : > { %2022 = vst.msk [vmem:[#allocation2 + $0x180] sm:$0xff] %vm1973_vm7, %v1926_v17  ;;  %v2768_v33 = vshrl.u32 %v1926_v17, 16  ;;  %v2770_v43 = vshll.u32 %v1926_v17, 16  ;;  %v3250_v51 = vrot.slane %v1926_v17, 1  ;;  %v7930_v22 = vpop.f32.mrb[12].mxu1  ;;  %2130 = vrot.lane.b32.xlu0 %v10831_v53, %s8999_s13  ;;  %8008 = vmatprep.mubr.msk.bf16.mxu1 %vm1973_vm7, %v3465_v41  ;;  %v1297_v34 = vsel %vm9114_vm2, %v10473_v40, 0 }
 0x1a0   : > { %v2776_v15 = vrot.slane %v2774_v6, 1  ;;  %8342 = vst [vmem:[%s10687_s16 + $0x70] sm:$0xff] %v7930_v22  ;;  %v3772_v39 = vpop.f32.mrb[13].mxu1  ;;  %v1433_v54 = vpop.permute.xlu1 %1432  ;;  %v11704_v6 = vld [vmem:[#allocation18_spill] sm:$0xff]  ;;  %v5704_v22 = vld [vmem:[#allocation2 + $0x478] sm:$0xff] }
 0x1a1   : > { %8009 = vmatmul.mubr.msk.bf16.gmra.mrb[92].mxu1 %vm1973_vm7, %v3466_v23  ;;  %v2772_v45 = vrot.slane %v2770_v43, 1  ;;  %v3252_v17 = vsel %vm3129_vm8, %v3250_v51, %v11663_v4  ;;  %8345 = vst [vmem:[%s10687_s16 + $0x60] sm:$0xff] %v3772_v39  ;;  %v7931_v2 = vpop.f32.mrb[14].mxu1  ;;  %v1431_v59 = vpop.permute.xlu0 %1430  ;;  %v1743_v18 = vsel %vm1587_vm5, %v10149_v32, %v1433_v54  ;;  %v11707_v4 = vld [vmem:[#allocation21_spill] sm:$0xff] }
 0x1a2   : > { %v10878_v41 = vor.u32 %v2778_v14, %v2776_v15  ;;  %3403 = vst.msk [vmem:[#allocation2 + $0x580] sm:$0xff] %vm1973_vm7, %v3252_v17  ;;  %8348 = vst [vmem:[%s10687_s16 + $0x78] sm:$0xff] %v7931_v2  ;;  %v3775_v40 = vpop.f32.mrb[15].mxu1  ;;  %2197 = vrot.lane.b32.xlu1 %v1297_v34, %s8998_s12  ;;  %v1740_v43 = vsel %vm1587_vm5, %v11704_v6, %v1431_v59  ;;  %v5705_v2 = vld [vmem:[#allocation2 + $0x480] sm:$0xff]  ;;  %s7717_s12 = sshll.u32 %s8988_s21, 14 }
 0x1a3   : > { %v2773_v23 = vor.u32 %v2772_v45, %v2768_v33  ;;  %8351 = vst [vmem:[%s10687_s16 + $0x68] sm:$0xff] %v3775_v40  ;;  %2132 = vrot.lane.b32.xlu0 %v1296_v62, %s8999_s13  ;;  %s7302_s13 = sshll.u32 %s10687_s16, 4  ;;  %s11545_s25 = scalar_lea.hbm %s11641_s4, %s7717_s12  ;;  %s11547_s13 = int_to_ptr.vmem [resolvable:$true] %s7302_s13 }
 0x1a4   : > { %v1562_v51 = vpop.permute.xlu1 %1561  ;;  %s8886_s29 = scalar_lea.vmem %s11547_s13, 16384  ;;  %p8893_p1 = scmp.lt.s32.totalorder %s11547_s13, %s8891_s9 }
 0x1a5   : > { %v2777_v14 = vsel %vm2359_vm9, %v2773_v23, %v2776_v15  ;;  %v10891_v39 = vsel %vm1780_vm6, %v1743_v18, %v1562_v51  ;;  %8205 = vmatmul.mubr.msk.bf16.gmra.mrb[28].mxu0 %vm1973_vm7, %v5704_v22  ;;  %v1560_v32 = vpop.permute.xlu0 %1559  ;;  %v3468_v54 = vld [vmem:[#allocation2 + $0x188] sm:$0xff]  ;;  %p8887_p12 = scmp.ne.s32.totalorder %s11547_s13, %s8886_s29  ;;  %p8894_p2 = scmp.lt.s32.totalorder %s8892_s8, %s8886_s29 }
 0x1a6   : > { %3017 = vst.msk [vmem:[#allocation2 + $0x380] sm:$0xff] %vm1973_vm7, %v2777_v14  ;;  %2025 = vst.msk [vmem:[#allocation2 + $0x198] sm:$0xff] %vm1973_vm7, %v10891_v39  ;;  %v2791_v59 = vshll.u32 %v10891_v39, 16  ;;  %v2795_v62 = vshrl.u32 %v10891_v39, 16  ;;  %v11662_v33 = vrot.slane %v10891_v39, 1  ;;  %v1932_v34 = vsel %vm1780_vm6, %v1740_v43, %v1560_v32  ;;  %8208 = vmatprep.mubr.msk.bf16.mxu0 %vm1973_vm7, %v5705_v2  ;;  %v3467_v15 = vld [vmem:[#allocation2 + $0x180] sm:$0xff] }
 0x1a7   : > { %2024 = vst.msk [vmem:[#allocation2 + $0x190] sm:$0xff] %vm1973_vm7, %v1932_v34  ;;  %v2785_v45 = vshrl.u32 %v1932_v34, 16  ;;  %v2787_v17 = vshll.u32 %v1932_v34, 16  ;;  %v3255_v18 = vrot.slane %v1932_v34, 1  ;;  %8012 = vmatprep.mubr.msk.bf16.mxu1 %vm1973_vm7, %v3467_v15  ;;  %v11705_v2 = vld [vmem:[#allocation19_spill] sm:$0xff]  ;;  %p8888_p13 = pnand %p8887_p12, %p9075_p4  ;;  %p8895_p3 = por %p8894_p2, %p8893_p1 }
 0x1a8   : > { %v2793_v40 = vrot.slane %v2791_v59, 1  ;;  %v1437_v23 = vpop.permute.xlu1 %1436 }
 0x1a9   : > { %8013 = vmatmul.mubr.msk.bf16.gmra.mrb[96].mxu1 %vm1973_vm7, %v3468_v54  ;;  %v2789_v6 = vrot.slane %v2787_v17, 1  ;;  %v3257_v43 = vsel %vm3129_vm8, %v3255_v18, %v11662_v33  ;;  %v1435_v51 = vpop.permute.xlu0 %1434  ;;  %v1749_v14 = vsel %vm1587_vm5, %v10182_v44, %v1437_v23  ;;  %v5706_v17 = vld [vmem:[#allocation2 + $0x488] sm:$0xff]  ;;  %p8889_p0 = pneg %p8888_p13 }
 0x1aa   : > { %v10908_v22 = vor.u32 %v2795_v62, %v2793_v40  ;;  %3405 = vst.msk [vmem:[#allocation2 + $0x590] sm:$0xff] %vm1973_vm7, %v3257_v43  ;;  %v1746_v59 = vsel %vm1587_vm5, %v11705_v2, %v1435_v51 }
 0x1ab   : > { %v2790_v32 = vor.u32 %v2789_v6, %v2785_v45  ;;  %v7934_v54 = vpop.f32.mrb[16].mxu1  ;;  %v5707_v45 = vld [vmem:[#allocation2 + $0x490] sm:$0xff]  ;;  %p8896_p5 = pnand %p8895_p3, %p8889_p0 }
 0x1ac   : > { %8354 = vst [vmem:[%s10687_s16 + $0x90] sm:$0xff] %v7934_v54  ;;  %v3788_v34 = vpop.f32.mrb[17].mxu1  ;;  %v1566_v15 = vpop.permute.xlu1 %1565 }
 0x1ad   : > { %v2794_v18 = vsel %vm2359_vm9, %v2790_v32, %v2793_v40  ;;  %8357 = vst [vmem:[%s10687_s16 + $0x80] sm:$0xff] %v3788_v34  ;;  %v10919_v62 = vsel %vm1780_vm6, %v1749_v14, %v1566_v15  ;;  %v7935_v43 = vpop.f32.mrb[18].mxu1  ;;  %8209 = vmatmul.mubr.msk.bf16.gmra.mrb[32].mxu0 %vm1973_vm7, %v5706_v17  ;;  %v1564_v44 = vpop.permute.xlu0 %1563  ;;  %v3470_v23 = vld [vmem:[#allocation2 + $0x198] sm:$0xff] }
 0x1ae   : > { %3019 = vst.msk [vmem:[#allocation2 + $0x390] sm:$0xff] %vm1973_vm7, %v2794_v18  ;;  %2027 = vst.msk [vmem:[#allocation2 + $0x1a8] sm:$0xff] %vm1973_vm7, %v10919_v62  ;;  %v2808_v6 = vshll.u32 %v10919_v62, 16  ;;  %v2812_v40 = vshrl.u32 %v10919_v62, 16  ;;  %v11665_v51 = vrot.slane %v10919_v62, 1  ;;  %v1938_v14 = vsel %vm1780_vm6, %v1746_v59, %v1564_v44  ;;  %v3791_v32 = vpop.f32.mrb[19].mxu1  ;;  %8212 = vmatprep.mubr.msk.bf16.mxu0 %vm1973_vm7, %v5707_v45 }
 0x1af   : > { %8360 = vst [vmem:[%s10687_s16 + $0x98] sm:$0xff] %v7935_v43  ;;  %v3469_v2 = vld [vmem:[#allocation2 + $0x190] sm:$0xff]  ;;  %2026 = vst.msk [vmem:[#allocation2 + $0x1a0] sm:$0xff] %vm1973_vm7, %v1938_v14  ;;  %v2802_v54 = vshrl.u32 %v1938_v14, 16  ;;  %v2804_v34 = vshll.u32 %v1938_v14, 16  ;;  %v3260_v15 = vrot.slane %v1938_v14, 1 }
 0x1b0   : > { %8363 = vst [vmem:[%s10687_s16 + $0x88] sm:$0xff] %v3791_v32  ;;  %8016 = vmatprep.mubr.msk.bf16.mxu1 %vm1973_vm7, %v3469_v2  ;;  %v2810_v17 = vrot.slane %v2808_v6, 1  ;;  %v1441_v18 = vpop.permute.xlu1 %1440  ;;  %v11706_v45 = vld [vmem:[#allocation20_spill] sm:$0xff] }
 0x1b1   : > { %8017 = vmatmul.mubr.msk.bf16.gmra.mrb[100].mxu1 %vm1973_vm7, %v3470_v23  ;;  %v2806_v33 = vrot.slane %v2804_v34, 1  ;;  %v3262_v59 = vsel %vm3129_vm8, %v3260_v15, %v11665_v51  ;;  %v1439_v43 = vpop.permute.xlu0 %1438  ;;  %v1755_v14 = vsel %vm1587_vm5, %v11706_v45, %v1441_v18  ;;  %v5708_v23 = vld [vmem:[#allocation2 + $0x498] sm:$0xff]  ;;  %v5709_v15 = vld [vmem:[#allocation2 + $0x4a0] sm:$0xff] }
 0x1b2   : > { %v10938_v44 = vor.u32 %v2812_v40, %v2810_v17  ;;  %3407 = vst.msk [vmem:[#allocation2 + $0x5a0] sm:$0xff] %vm1973_vm7, %v3262_v59  ;;  %v1752_v6 = vsel %vm1587_vm5, %v11707_v4, %v1439_v43 }
 0x1b3   : > { %v2807_v32 = vor.u32 %v2806_v33, %v2802_v54 }
 0x1b4   : > { %v1570_v2 = vpop.permute.xlu1 %1569 }
 0x1b5   : > { %v2811_v34 = vsel %vm2359_vm9, %v2807_v32, %v2810_v17  ;;  %v10947_v28 = vsel %vm1780_vm6, %v1755_v14, %v1570_v2  ;;  %8213 = vmatmul.mubr.msk.bf16.gmra.mrb[36].mxu0 %vm1973_vm7, %v5708_v23  ;;  %v1568_v40 = vpop.permute.xlu0 %1567  ;;  %v3472_v51 = vld [vmem:[#allocation2 + $0x1a8] sm:$0xff] }
 0x1b6   : > { %3021 = vst.msk [vmem:[#allocation2 + $0x3a0] sm:$0xff] %vm1973_vm7, %v2811_v34  ;;  %2029 = vst.msk [vmem:[#allocation2 + $0x1b8] sm:$0xff] %vm1973_vm7, %v10947_v28  ;;  %v2825_v4 = vshll.u32 %v10947_v28, 16  ;;  %v2829_v33 = vshrl.u32 %v10947_v28, 16  ;;  %v11669_v54 = vrot.slane %v10947_v28, 1  ;;  %v1944_v17 = vsel %vm1780_vm6, %v1752_v6, %v1568_v40  ;;  %8216 = vmatprep.mubr.msk.bf16.mxu0 %vm1973_vm7, %v5709_v15  ;;  %v3471_v18 = vld [vmem:[#allocation2 + $0x1a0] sm:$0xff] }
 0x1b7   : > { %2028 = vst.msk [vmem:[#allocation2 + $0x1b0] sm:$0xff] %vm1973_vm7, %v1944_v17  ;;  %v2819_v59 = vshrl.u32 %v1944_v17, 16  ;;  %v2821_v43 = vshll.u32 %v1944_v17, 16  ;;  %v3265_v45 = vrot.slane %v1944_v17, 1  ;;  %v7938_v14 = vpop.f32.mrb[20].mxu1  ;;  %8020 = vmatprep.mubr.msk.bf16.mxu1 %vm1973_vm7, %v3471_v18  ;;  %v11708_v18 = vld [vmem:[#allocation22_spill] sm:$0xff] }
 0x1b8   : > { %v2827_v32 = vrot.slane %v2825_v4, 1  ;;  %8366 = vst [vmem:[%s10687_s16 + $0xb0] sm:$0xff] %v7938_v14  ;;  %v3804_v2 = vpop.f32.mrb[21].mxu1  ;;  %v1445_v6 = vpop.permute.xlu1 %1444 }
 0x1b9   : > { %8021 = vmatmul.mubr.msk.bf16.gmra.mrb[104].mxu1 %vm1973_vm7, %v3472_v51  ;;  %v2823_v23 = vrot.slane %v2821_v43, 1  ;;  %v3267_v34 = vsel %vm3129_vm8, %v3265_v45, %v11669_v54  ;;  %8369 = vst [vmem:[%s10687_s16 + $0xa0] sm:$0xff] %v3804_v2  ;;  %v7939_v40 = vpop.f32.mrb[22].mxu1  ;;  %v1443_v15 = vpop.permute.xlu0 %1442  ;;  %v1761_v4 = vsel %vm1587_vm5, %v11708_v18, %v1445_v6  ;;  %v11709_v51 = vld [vmem:[#allocation23_spill] sm:$0xff] }
 0x1ba   : > { %v10966_v17 = vor.u32 %v2829_v33, %v2827_v32  ;;  %3409 = vst.msk [vmem:[#allocation2 + $0x5b0] sm:$0xff] %vm1973_vm7, %v3267_v34  ;;  %8372 = vst [vmem:[%s10687_s16 + $0xb8] sm:$0xff] %v7939_v40  ;;  %v3807_v14 = vpop.f32.mrb[23].mxu1  ;;  %v1758_v43 = vsel %vm1587_vm5, %v11709_v51, %v1443_v15  ;;  %v5711_v34 = vld [vmem:[#allocation2 + $0x4b0] sm:$0xff] }
 0x1bb   : > { %v2824_v55 = vor.u32 %v2823_v23, %v2819_v59  ;;  %8375 = vst [vmem:[%s10687_s16 + $0xa8] sm:$0xff] %v3807_v14 }
 0x1bc   : > { %v1574_v21 = vpop.permute.xlu1 %1573 }
 0x1bd   : > { %v2828_v45 = vsel %vm2359_vm9, %v2824_v55, %v2827_v32  ;;  %v10977_v2 = vsel %vm1780_vm6, %v1761_v4, %v1574_v21  ;;  %8217 = vmatmul.mubr.msk.bf16.gmra.mrb[40].mxu0 %vm1973_vm7, %v5710_v56  ;;  %v1572_v33 = vpop.permute.xlu0 %1571  ;;  %v3474_v54 = vld [vmem:[#allocation2 + $0x1b8] sm:$0xff] }
 0x1be   : > { %3023 = vst.msk [vmem:[#allocation2 + $0x3b0] sm:$0xff] %vm1973_vm7, %v2828_v45  ;;  %2031 = vst.msk [vmem:[#allocation2 + $0x1c8] sm:$0xff] %vm1973_vm7, %v10977_v2  ;;  %v2842_v59 = vshll.u32 %v10977_v2, 16  ;;  %v2846_v6 = vshrl.u32 %v10977_v2, 16  ;;  %v11671_v23 = vrot.slane %v10977_v2, 1  ;;  %v1950_v55 = vsel %vm1780_vm6, %v1758_v43, %v1572_v33  ;;  %8220 = vmatprep.mubr.msk.bf16.mxu0 %vm1973_vm7, %v5711_v34  ;;  %v3473_v21 = vld [vmem:[#allocation2 + $0x1b0] sm:$0xff] }
 0x1bf   : > { %2030 = vst.msk [vmem:[#allocation2 + $0x1c0] sm:$0xff] %vm1973_vm7, %v1950_v55  ;;  %v2836_v56 = vshrl.u32 %v1950_v55, 16  ;;  %v2838_v32 = vshll.u32 %v1950_v55, 16  ;;  %v3270_v40 = vrot.slane %v1950_v55, 1  ;;  %8024 = vmatprep.mubr.msk.bf16.mxu1 %vm1973_vm7, %v3473_v21  ;;  %v11710_v45 = vld [vmem:[#allocation24_spill] sm:$0xff]  ;;  %v11711_v55 = vld [vmem:[#allocation25_spill] sm:$0xff] }
 0x1c0   : > { %v2844_v15 = vrot.slane %v2842_v59, 1  ;;  %v1449_v18 = vpop.permute.xlu1 %1448 }
 0x1c1   : > { %8025 = vmatmul.mubr.msk.bf16.gmra.mrb[108].mxu1 %vm1973_vm7, %v3474_v54  ;;  %v2840_v4 = vrot.slane %v2838_v32, 1  ;;  %v3272_v14 = vsel %vm3129_vm8, %v3270_v40, %v11671_v23  ;;  %v1447_v51 = vpop.permute.xlu0 %1446  ;;  %v1767_v33 = vsel %vm1587_vm5, %v11710_v45, %v1449_v18 }
 0x1c2   : > { %v10994_v43 = vor.u32 %v2846_v6, %v2844_v15  ;;  %3411 = vst.msk [vmem:[#allocation2 + $0x5c0] sm:$0xff] %vm1973_vm7, %v3272_v14  ;;  %v1764_v59 = vsel %vm1587_vm5, %v11711_v55, %v1447_v51 }
 0x1c3   : > { %v2841_v34 = vor.u32 %v2840_v4, %v2836_v56  ;;  %v7942_v54 = vpop.f32.mrb[24].mxu1  ;;  %v5713_v56 = vld [vmem:[#allocation2 + $0x4c0] sm:$0xff] }
 0x1c4   : > { %8378 = vst [vmem:[%s10687_s16 + $0xd0] sm:$0xff] %v7942_v54  ;;  %v3820_v21 = vpop.f32.mrb[25].mxu1  ;;  %v1578_v32 = vpop.permute.xlu1 %1577 }
 0x1c5   : > { %v2845_v40 = vsel %vm2359_vm9, %v2841_v34, %v2844_v15  ;;  %8381 = vst [vmem:[%s10687_s16 + $0xc0] sm:$0xff] %v3820_v21  ;;  %v11005_v6 = vsel %vm1780_vm6, %v1767_v33, %v1578_v32  ;;  %v7943_v14 = vpop.f32.mrb[26].mxu1  ;;  %8221 = vmatmul.mubr.msk.bf16.gmra.mrb[44].mxu0 %vm1973_vm7, %v5712_v30  ;;  %v1576_v18 = vpop.permute.xlu0 %1575  ;;  %v3476_v4 = vld [vmem:[#allocation2 + $0x1c8] sm:$0xff] }
 0x1c6   : > { %3025 = vst.msk [vmem:[#allocation2 + $0x3c0] sm:$0xff] %vm1973_vm7, %v2845_v40  ;;  %2033 = vst.msk [vmem:[#allocation2 + $0x1d8] sm:$0xff] %vm1973_vm7, %v11005_v6  ;;  %v2859_v51 = vshll.u32 %v11005_v6, 16  ;;  %v2863_v15 = vshrl.u32 %v11005_v6, 16  ;;  %v11672_v45 = vrot.slane %v11005_v6, 1  ;;  %v1956_v33 = vsel %vm1780_vm6, %v1764_v59, %v1576_v18  ;;  %v3823_v34 = vpop.f32.mrb[27].mxu1  ;;  %8224 = vmatprep.mubr.msk.bf16.mxu0 %vm1973_vm7, %v5713_v56 }
 0x1c7   : > { %8384 = vst [vmem:[%s10687_s16 + $0xd8] sm:$0xff] %v7943_v14  ;;  %v3475_v30 = vld [vmem:[#allocation2 + $0x1c0] sm:$0xff]  ;;  %2032 = vst.msk [vmem:[#allocation2 + $0x1d0] sm:$0xff] %vm1973_vm7, %v1956_v33  ;;  %v2853_v55 = vshrl.u32 %v1956_v33, 16  ;;  %v2855_v54 = vshll.u32 %v1956_v33, 16  ;;  %v3275_v21 = vrot.slane %v1956_v33, 1 }
 0x1c8   : > { %8387 = vst [vmem:[%s10687_s16 + $0xc8] sm:$0xff] %v3823_v34  ;;  %8028 = vmatprep.mubr.msk.bf16.mxu1 %vm1973_vm7, %v3475_v30  ;;  %v2861_v32 = vrot.slane %v2859_v51, 1  ;;  %v1453_v40 = vpop.permute.xlu1 %1452 }
 0x1c9   : > { %8029 = vmatmul.mubr.msk.bf16.gmra.mrb[112].mxu1 %vm1973_vm7, %v3476_v4  ;;  %v2857_v23 = vrot.slane %v2855_v54, 1  ;;  %v3277_v59 = vsel %vm3129_vm8, %v3275_v21, %v11672_v45  ;;  %v1451_v14 = vpop.permute.xlu0 %1450  ;;  %v1773_v56 = vsel %vm1587_vm5, %v10395_v1, %v1453_v40  ;;  %v5714_v4 = vld [vmem:[#allocation2 + $0x4c8] sm:$0xff]  ;;  %v5715_v21 = vld [vmem:[#allocation2 + $0x4d0] sm:$0xff] }
 0x1ca   : > { %v11024_v18 = vor.u32 %v2863_v15, %v2861_v32  ;;  %3413 = vst.msk [vmem:[#allocation2 + $0x5d0] sm:$0xff] %vm1973_vm7, %v3277_v59  ;;  %v1770_v51 = vsel %vm1587_vm5, %v10399_v36, %v1451_v14 }
 0x1cb   : > { %v2858_v33 = vor.u32 %v2857_v23, %v2853_v55 }
 0x1cc   : > { %v1582_v34 = vpop.permute.xlu1 %1581 }
 0x1cd   : > { %v2862_v30 = vsel %vm2359_vm9, %v2858_v33, %v2861_v32  ;;  %v11033_v54 = vsel %vm1780_vm6, %v1773_v56, %v1582_v34  ;;  %8225 = vmatmul.mubr.msk.bf16.gmra.mrb[48].mxu0 %vm1973_vm7, %v5714_v4  ;;  %v1580_v15 = vpop.permute.xlu0 %1579  ;;  %v3478_v45 = vld [vmem:[#allocation2 + $0x1d8] sm:$0xff] }
 0x1ce   : > { %3027 = vst.msk [vmem:[#allocation2 + $0x3d0] sm:$0xff] %vm1973_vm7, %v2862_v30  ;;  %2035 = vst.msk [vmem:[#allocation2 + $0x1e8] sm:$0xff] %vm1973_vm7, %v11033_v54  ;;  %v2876_v1 = vshll.u32 %v11033_v54, 16  ;;  %v2880_v36 = vshrl.u32 %v11033_v54, 16  ;;  %v11674_v23 = vrot.slane %v11033_v54, 1  ;;  %v1962_v55 = vsel %vm1780_vm6, %v1770_v51, %v1580_v15  ;;  %8228 = vmatprep.mubr.msk.bf16.mxu0 %vm1973_vm7, %v5715_v21  ;;  %v3477_v32 = vld [vmem:[#allocation2 + $0x1d0] sm:$0xff] }
 0x1cf   : > { %2034 = vst.msk [vmem:[#allocation2 + $0x1e0] sm:$0xff] %vm1973_vm7, %v1962_v55  ;;  %v2870_v40 = vshrl.u32 %v1962_v55, 16  ;;  %v2872_v59 = vshll.u32 %v1962_v55, 16  ;;  %v3280_v14 = vrot.slane %v1962_v55, 1  ;;  %v7946_v56 = vpop.f32.mrb[28].mxu1  ;;  %8032 = vmatprep.mubr.msk.bf16.mxu1 %vm1973_vm7, %v3477_v32 }
 0x1d0   : > { %v2878_v33 = vrot.slane %v2876_v1, 1  ;;  %8390 = vst [vmem:[%s10687_s16 + $0xf0] sm:$0xff] %v7946_v56  ;;  %v3836_v34 = vpop.f32.mrb[29].mxu1  ;;  %v1457_v51 = vpop.permute.xlu1 %1456 }
 0x1d1   : > { %8033 = vmatmul.mubr.msk.bf16.gmra.mrb[116].mxu1 %vm1973_vm7, %v3478_v45  ;;  %v2874_v4 = vrot.slane %v2872_v59, 1  ;;  %v3282_v30 = vsel %vm3129_vm8, %v3280_v14, %v11674_v23  ;;  %8393 = vst [vmem:[%s10687_s16 + $0xe0] sm:$0xff] %v3836_v34  ;;  %v7947_v15 = vpop.f32.mrb[30].mxu1  ;;  %v1455_v21 = vpop.permute.xlu0 %1454  ;;  %v1779_v1 = vsel %vm1587_vm5, %v10431_v20, %v1457_v51 }
 0x1d2   : > { %v11052_v55 = vor.u32 %v2880_v36, %v2878_v33  ;;  %3415 = vst.msk [vmem:[#allocation2 + $0x5e0] sm:$0xff] %vm1973_vm7, %v3282_v30  ;;  %8396 = vst [vmem:[%s10687_s16 + $0xf8] sm:$0xff] %v7947_v15  ;;  %v3839_v32 = vpop.f32.mrb[31].mxu1  ;;  %v1776_v45 = vsel %vm1587_vm5, %v10441_v24, %v1455_v21  ;;  %v5717_v30 = vld [vmem:[#allocation2 + $0x4e0] sm:$0xff] }
 0x1d3   : > { %v2875_v56 = vor.u32 %v2874_v4, %v2870_v40  ;;  %8399 = vst [vmem:[%s10687_s16 + $0xe8] sm:$0xff] %v3839_v32 }
 0x1d4   : > { %11712 = vst [vmem:[#allocation9_spill] sm:$0xff] %v11052_v55  ;;  %v1586_v59 = vpop.permute.xlu1 %1585 }
 0x1d5   : > { %v2879_v14 = vsel %vm2359_vm9, %v2875_v56, %v2878_v33  ;;  %v11063_v34 = vsel %vm1780_vm6, %v1779_v1, %v1586_v59  ;;  %8229 = vmatmul.mubr.msk.bf16.gmra.mrb[52].mxu0 %vm1973_vm7, %v5716_v61  ;;  %v1584_v36 = vpop.permute.xlu0 %1583  ;;  %v3480_v23 = vld [vmem:[#allocation2 + $0x1e8] sm:$0xff] }
 0x1d6   : > { %3029 = vst.msk [vmem:[#allocation2 + $0x3e0] sm:$0xff] %vm1973_vm7, %v2879_v14  ;;  %2037 = vst.msk [vmem:[#allocation2 + $0x1f8] sm:$0xff] %vm1973_vm7, %v11063_v34  ;;  %v3286_v20 = vrot.slane %v11063_v34, 1  ;;  %v1968_v24 = vsel %vm1780_vm6, %v1776_v45, %v1584_v36  ;;  %8232 = vmatprep.mubr.msk.bf16.mxu0 %vm1973_vm7, %v5717_v30  ;;  %v3479_v40 = vld [vmem:[#allocation2 + $0x1e0] sm:$0xff]  ;;  %v2893_v33 = vshll.u32 %v11063_v34, 16  ;;  %v11713_v56 = vld [vmem:[#allocation10_spill] sm:$0xff] }
 0x1d7   : > { %2036 = vst.msk [vmem:[#allocation2 + $0x1f0] sm:$0xff] %vm1973_vm7, %v1968_v24  ;;  %v2887_v61 = vshrl.u32 %v1968_v24, 16  ;;  %v2889_v51 = vshll.u32 %v1968_v24, 16  ;;  %v3285_v4 = vrot.slane %v1968_v24, 1  ;;  %8036 = vmatprep.mubr.msk.bf16.mxu1 %vm1973_vm7, %v3479_v40 }
 0x1d8   : > { %v2168_v15 = vpop.permute.xlu1 %2167  ;;  %v11082_v59 = vrot.slane %v2893_v33, 1 }
 0x1d9   : > { %8037 = vmatmul.mubr.msk.bf16.gmra.mrb[120].mxu1 %vm1973_vm7, %v3480_v23  ;;  %v2891_v21 = vrot.slane %v2889_v51, 1  ;;  %v3287_v1 = vsel %vm3129_vm8, %v3285_v4, %v3286_v20  ;;  %v2103_v32 = vpop.permute.xlu0 %2102  ;;  %v5718_v51 = vld [vmem:[#allocation2 + $0x4e8] sm:$0xff] }
 0x1da   : > { %3417 = vst.msk [vmem:[#allocation2 + $0x5f0] sm:$0xff] %vm1973_vm7, %v3287_v1  ;;  %v2249_v45 = vsel %vm1587_vm5, %v11713_v56, %v2103_v32  ;;  %v11714_v32 = vrot.slane %v10493_v27, 1 }
 0x1db   : > { %v2892_v14 = vor.u32 %v2891_v21, %v2887_v61  ;;  %v2328_v36 = vsel %vm1780_vm6, %v2249_v45, %v2168_v15  ;;  %v7950_v30 = vpop.f32.mrb[32].mxu1  ;;  %v5719_v61 = vld [vmem:[#allocation2 + $0x4f0] sm:$0xff] }
 0x1dc   : > { %v2645_v23 = vshll.u32 %v2328_v36, 16  ;;  %v3213_v24 = vrot.slane %v2328_v36, 1  ;;  %8402 = vst [vmem:[%s10687_s16 + $0x110] sm:$0xff] %v7950_v30  ;;  %v3852_v40 = vpop.f32.mrb[33].mxu1  ;;  %v2170_v55 = vpop.permute.xlu1 %2169 }
 0x1dd   : > { %v2896_v4 = vsel %vm2359_vm9, %v2892_v14, %v11082_v59  ;;  %8405 = vst [vmem:[%s10687_s16 + $0x100] sm:$0xff] %v3852_v40  ;;  %v7951_v1 = vpop.f32.mrb[34].mxu1  ;;  %8233 = vmatmul.mubr.msk.bf16.gmra.mrb[56].mxu0 %vm1973_vm7, %v5718_v51  ;;  %v2105_v33 = vpop.permute.xlu0 %2104  ;;  %v3482_v21 = vld [vmem:[#allocation2 + $0x1f8] sm:$0xff]  ;;  %v4524_v40 = vld [vmem:[#allocation2 + $0x300] sm:$0xff] }
 0x1de   : > { %3031 = vst.msk [vmem:[#allocation2 + $0x3f0] sm:$0xff] %vm1973_vm7, %v2896_v4  ;;  %v2647_v15 = vrot.slane %v2645_v23, 1  ;;  %v3214_v56 = vsel %vm3129_vm8, %v11714_v32, %v3213_v24  ;;  %8408 = vst [vmem:[%s10687_s16 + $0x118] sm:$0xff] %v7951_v1  ;;  %v2252_v45 = vsel %vm1587_vm5, %v9754_v12, %v2105_v33  ;;  %v3855_v14 = vpop.f32.mrb[35].mxu1  ;;  %8236 = vmatprep.mubr.msk.bf16.mxu0 %vm1973_vm7, %v5719_v61  ;;  %v3481_v36 = vld [vmem:[#allocation2 + $0x1f0] sm:$0xff]  ;;  %v5720_v32 = vld [vmem:[#allocation2 + $0x4f8] sm:$0xff] }
 0x1df   : > { %3388 = vst.msk [vmem:[#allocation2 + $0x508] sm:$0xff] %vm1973_vm7, %v3214_v56  ;;  %v2330_v30 = vsel %vm1780_vm6, %v2252_v45, %v2170_v55  ;;  %8411 = vst [vmem:[%s10687_s16 + $0x108] sm:$0xff] %v3855_v14  ;;  %8040 = vmatprep.mubr.msk.bf16.mxu1 %vm1973_vm7, %v3481_v36  ;;  %v11715_v55 = vrot.slane %v10527_v7, 1  ;;  %v5721_v45 = vld [vmem:[#allocation2 + $0x500] sm:$0xff]  ;;  %v11716_v14 = vrot.slane %v10571_v37, 1 }
 0x1e0   : > { %v2648_v27 = vsel %vm2359_vm9, %v10510_v50, %v2647_v15  ;;  %v2662_v23 = vshll.u32 %v2330_v30, 16  ;;  %v3218_v24 = vrot.slane %v2330_v30, 1  ;;  %v2172_v12 = vpop.permute.xlu1 %2171 }
 0x1e1   : > { %8041 = vmatmul.mubr.msk.bf16.gmra.mrb[124].mxu1 %vm1973_vm7, %v3482_v21  ;;  %3002 = vst.msk [vmem:[#allocation2 + $0x308] sm:$0xff] %vm1973_vm7, %v2648_v27  ;;  %v2107_v51 = vpop.permute.xlu0 %2106 }
 0x1e2   : > { %8110 = vmatprep.mubr.msk.bf16.mxu1 %vm1973_vm7, %v4524_v40  ;;  %v2664_v4 = vrot.slane %v2662_v23, 1  ;;  %v3219_v1 = vsel %vm3129_vm8, %v11715_v55, %v3218_v24  ;;  %v2255_v33 = vsel %vm1587_vm5, %v10523_v8, %v2107_v51  ;;  %v4526_v55 = vld [vmem:[#allocation2 + $0x310] sm:$0xff] }
 0x1e3   : > { %3390 = vst.msk [vmem:[#allocation2 + $0x518] sm:$0xff] %vm1973_vm7, %v3219_v1  ;;  %v2332_v50 = vsel %vm1780_vm6, %v2255_v33, %v2172_v12  ;;  %v11717_v33 = vrot.slane %v10615_v48, 1 }
 0x1e4   : > { %v2665_v61 = vsel %vm2359_vm9, %v10553_v26, %v2664_v4  ;;  %v2679_v21 = vshll.u32 %v2332_v50, 16  ;;  %v3223_v15 = vrot.slane %v2332_v50, 1  ;;  %v2174_v56 = vpop.permute.xlu1 %2173 }
 0x1e5   : > { %3004 = vst.msk [vmem:[#allocation2 + $0x318] sm:$0xff] %vm1973_vm7, %v2665_v61  ;;  %8237 = vmatmul.mubr.msk.bf16.gmra.mrb[60].mxu0 %vm1973_vm7, %v5720_v32  ;;  %v2109_v7 = vpop.permute.xlu0 %2108 }
 0x1e6   : > { %v2681_v8 = vrot.slane %v2679_v21, 1  ;;  %v3224_v36 = vsel %vm3129_vm8, %v11716_v14, %v3223_v15  ;;  %v2258_v26 = vsel %vm1587_vm5, %v10547_v35, %v2109_v7  ;;  %8240 = vmatprep.mubr.msk.bf16.mxu0 %vm1973_vm7, %v5721_v45  ;;  %v5722_v48 = vld [vmem:[#allocation2 + $0x508] sm:$0xff]  ;;  %v5723_v45 = vld [vmem:[#allocation2 + $0x510] sm:$0xff]  ;;  %v11718_v14 = vrot.slane %v10663_v29, 1 }
 0x1e7   : > { %3392 = vst.msk [vmem:[#allocation2 + $0x528] sm:$0xff] %vm1973_vm7, %v3224_v36  ;;  %v2334_v30 = vsel %vm1780_vm6, %v2258_v26, %v2174_v56  ;;  %v7954_v27 = vpop.f32.mrb[36].mxu1 }
 0x1e8   : > { %v2682_v23 = vsel %vm2359_vm9, %v10597_v38, %v2681_v8  ;;  %v2696_v24 = vshll.u32 %v2334_v30, 16  ;;  %v3228_v40 = vrot.slane %v2334_v30, 1  ;;  %8414 = vst [vmem:[%s10687_s16 + $0x130] sm:$0xff] %v7954_v27  ;;  %v3868_v37 = vpop.f32.mrb[37].mxu1  ;;  %v4525_v12 = vld [vmem:[#allocation2 + $0x308] sm:$0xff]  ;;  %v2176_v51 = vpop.permute.xlu1 %2175 }
 0x1e9   : > { %3006 = vst.msk [vmem:[#allocation2 + $0x328] sm:$0xff] %vm1973_vm7, %v2682_v23  ;;  %8417 = vst [vmem:[%s10687_s16 + $0x120] sm:$0xff] %v3868_v37  ;;  %v7955_v35 = vpop.f32.mrb[38].mxu1  ;;  %8111 = vmatmul.mubr.msk.bf16.vlgmr.msra.gmra.mrb[64].mxu1 %vm1973_vm7, %v4525_v12  ;;  %v2111_v4 = vpop.permute.xlu0 %2110  ;;  %v11719_v12 = vrot.slane %v10715_v11, 1 }
 0x1ea   : > { %v2698_v1 = vrot.slane %v2696_v24, 1  ;;  %v3229_v38 = vsel %vm3129_vm8, %v11717_v33, %v3228_v40  ;;  %8420 = vst [vmem:[%s10687_s16 + $0x138] sm:$0xff] %v7955_v35  ;;  %v2261_v50 = vsel %vm1587_vm5, %v10567_v46, %v2111_v4  ;;  %v3871_v61 = vpop.f32.mrb[39].mxu1  ;;  %8114 = vmatprep.mubr.msk.bf16.mxu1 %vm1973_vm7, %v4526_v55 }
 0x1eb   : > { %3394 = vst.msk [vmem:[#allocation2 + $0x538] sm:$0xff] %vm1973_vm7, %v3229_v38  ;;  %v2336_v21 = vsel %vm1780_vm6, %v2261_v50, %v2176_v51  ;;  %8423 = vst [vmem:[%s10687_s16 + $0x128] sm:$0xff] %v3871_v61  ;;  %v5724_v38 = vld [vmem:[#allocation2 + $0x518] sm:$0xff] }
 0x1ec   : > { %v2699_v15 = vsel %vm2359_vm9, %v10644_v9, %v2698_v1  ;;  %v2713_v32 = vshll.u32 %v2336_v21, 16  ;;  %v3233_v56 = vrot.slane %v2336_v21, 1  ;;  %v2178_v7 = vpop.permute.xlu1 %2177  ;;  %v4527_v24 = vld [vmem:[#allocation2 + $0x318] sm:$0xff]  ;;  %v5725_v21 = vld [vmem:[#allocation2 + $0x520] sm:$0xff] }
 0x1ed   : > { %3008 = vst.msk [vmem:[#allocation2 + $0x338] sm:$0xff] %vm1973_vm7, %v2699_v15  ;;  %8241 = vmatmul.mubr.msk.bf16.gmra.mrb[64].mxu0 %vm1973_vm7, %v5722_v48  ;;  %v2113_v46 = vpop.permute.xlu0 %2112 }
 0x1ee   : > { %v2715_v8 = vrot.slane %v2713_v32, 1  ;;  %v3234_v36 = vsel %vm3129_vm8, %v11718_v14, %v3233_v56  ;;  %v2264_v26 = vsel %vm1587_vm5, %v10591_v13, %v2113_v46  ;;  %8244 = vmatprep.mubr.msk.bf16.mxu0 %vm1973_vm7, %v5723_v45  ;;  %v4528_v13 = vld [vmem:[#allocation2 + $0x320] sm:$0xff]  ;;  %v11720_v32 = vrot.slane %v10763_v60, 1 }
 0x1ef   : > { %3396 = vst.msk [vmem:[#allocation2 + $0x548] sm:$0xff] %vm1973_vm7, %v3234_v36  ;;  %v2338_v9 = vsel %vm1780_vm6, %v2264_v26, %v2178_v7  ;;  %v4530_v36 = vld [vmem:[#allocation2 + $0x330] sm:$0xff] }
 0x1f0   : > { %v2716_v30 = vsel %vm2359_vm9, %v10695_v47, %v2715_v8  ;;  %v2730_v27 = vshll.u32 %v2338_v9, 16  ;;  %v3238_v23 = vrot.slane %v2338_v9, 1  ;;  %v2180_v40 = vpop.permute.xlu1 %2179  ;;  %v4529_v60 = vld [vmem:[#allocation2 + $0x328] sm:$0xff]  ;;  %v11721_v9 = vrot.slane %v10809_v5, 1 }
 0x1f1   : > { %3010 = vst.msk [vmem:[#allocation2 + $0x348] sm:$0xff] %vm1973_vm7, %v2716_v30  ;;  %8115 = vmatmul.mubr.msk.bf16.gmra.mrb[68].mxu1 %vm1973_vm7, %v4527_v24  ;;  %v2115_v29 = vpop.permute.xlu0 %2114 }
 0x1f2   : > { %v2732_v37 = vrot.slane %v2730_v27, 1  ;;  %v3239_v51 = vsel %vm3129_vm8, %v11719_v12, %v3238_v23  ;;  %v2267_v47 = vsel %vm1587_vm5, %v10611_v57, %v2115_v29  ;;  %8118 = vmatprep.mubr.msk.bf16.mxu1 %vm1973_vm7, %v4528_v13  ;;  %v5726_v29 = vld [vmem:[#allocation2 + $0x528] sm:$0xff]  ;;  %v11722_v12 = vrot.slane %v10853_v49, 1 }
 0x1f3   : > { %3398 = vst.msk [vmem:[#allocation2 + $0x558] sm:$0xff] %vm1973_vm7, %v3239_v51  ;;  %v2340_v35 = vsel %vm1780_vm6, %v2267_v47, %v2180_v40  ;;  %v7958_v4 = vpop.f32.mrb[40].mxu1 }
 0x1f4   : > { %v2733_v55 = vsel %vm2359_vm9, %v10742_v63, %v2732_v37  ;;  %v2747_v1 = vshll.u32 %v2340_v35, 16  ;;  %v3243_v33 = vrot.slane %v2340_v35, 1  ;;  %8426 = vst [vmem:[%s10687_s16 + $0x150] sm:$0xff] %v7958_v4  ;;  %v3884_v11 = vpop.f32.mrb[41].mxu1  ;;  %v2182_v50 = vpop.permute.xlu1 %2181 }
 0x1f5   : > { %3012 = vst.msk [vmem:[#allocation2 + $0x358] sm:$0xff] %vm1973_vm7, %v2733_v55  ;;  %8429 = vst [vmem:[%s10687_s16 + $0x140] sm:$0xff] %v3884_v11  ;;  %v7959_v57 = vpop.f32.mrb[42].mxu1  ;;  %8245 = vmatmul.mubr.msk.bf16.gmra.mrb[68].mxu0 %vm1973_vm7, %v5724_v38  ;;  %v2117_v61 = vpop.permute.xlu0 %2116 }
 0x1f6   : > { %v2749_v15 = vrot.slane %v2747_v1, 1  ;;  %v3244_v63 = vsel %vm3129_vm8, %v11720_v32, %v3243_v33  ;;  %8432 = vst [vmem:[%s10687_s16 + $0x158] sm:$0xff] %v7959_v57  ;;  %v2270_v56 = vsel %vm1587_vm5, %v10635_v31, %v2117_v61  ;;  %v3887_v48 = vpop.f32.mrb[43].mxu1  ;;  %8248 = vmatprep.mubr.msk.bf16.mxu0 %vm1973_vm7, %v5725_v21  ;;  %v4531_v33 = vld [vmem:[#allocation2 + $0x338] sm:$0xff]  ;;  %v11723_v61 = vrot.slane %v10891_v39, 1 }
 0x1f7   : > { %3400 = vst.msk [vmem:[#allocation2 + $0x568] sm:$0xff] %vm1973_vm7, %v3244_v63  ;;  %v2342_v7 = vsel %vm1780_vm6, %v2270_v56, %v2182_v50  ;;  %8435 = vst [vmem:[%s10687_s16 + $0x148] sm:$0xff] %v3887_v48  ;;  %v4532_v50 = vld [vmem:[#allocation2 + $0x340] sm:$0xff]  ;;  %v5728_v39 = vld [vmem:[#allocation2 + $0x538] sm:$0xff] }
 0x1f8   : > { %v2750_v46 = vsel %vm2359_vm9, %v10789_v19, %v2749_v15  ;;  %v2764_v45 = vshll.u32 %v2342_v7, 16  ;;  %v3248_v8 = vrot.slane %v2342_v7, 1  ;;  %v2184_v14 = vpop.permute.xlu1 %2183 }
 0x1f9   : > { %3014 = vst.msk [vmem:[#allocation2 + $0x368] sm:$0xff] %vm1973_vm7, %v2750_v46  ;;  %8119 = vmatmul.mubr.msk.bf16.gmra.mrb[72].mxu1 %vm1973_vm7, %v4529_v60  ;;  %v2119_v31 = vpop.permute.xlu0 %2118  ;;  %v5729_v46 = vld [vmem:[#allocation2 + $0x540] sm:$0xff] }
 0x1fa   : > { %v2766_v26 = vrot.slane %v2764_v45, 1  ;;  %v3249_v30 = vsel %vm3129_vm8, %v11721_v9, %v3248_v8  ;;  %v2273_v27 = vsel %vm1587_vm5, %v10659_v25, %v2119_v31  ;;  %8122 = vmatprep.mubr.msk.bf16.mxu1 %vm1973_vm7, %v4530_v36  ;;  %v5727_v25 = vld [vmem:[#allocation2 + $0x530] sm:$0xff]  ;;  %v11724_v8 = vrot.slane %v10919_v62, 1  ;;  %v4533_v9 = vld [vmem:[#allocation2 + $0x348] sm:$0xff] }
 0x1fb   : > { %3402 = vst.msk [vmem:[#allocation2 + $0x578] sm:$0xff] %vm1973_vm7, %v3249_v30  ;;  %v2344_v19 = vsel %vm1780_vm6, %v2273_v27, %v2184_v14 }
 0x1fc   : > { %v2767_v23 = vsel %vm2359_vm9, %v10837_v16, %v2766_v26  ;;  %v2781_v24 = vshll.u32 %v2344_v19, 16  ;;  %v3253_v40 = vrot.slane %v2344_v19, 1  ;;  %v2186_v13 = vpop.permute.xlu1 %2185  ;;  %v11725_v19 = vrot.slane %v10947_v28, 1 }
 0x1fd   : > { %3016 = vst.msk [vmem:[#allocation2 + $0x378] sm:$0xff] %vm1973_vm7, %v2767_v23  ;;  %8249 = vmatmul.mubr.msk.bf16.gmra.mrb[72].mxu0 %vm1973_vm7, %v5726_v29  ;;  %v2121_v5 = vpop.permute.xlu0 %2120 }
 0x1fe   : > { %v2783_v37 = vrot.slane %v2781_v24, 1  ;;  %v3254_v51 = vsel %vm3129_vm8, %v11722_v12, %v3253_v40  ;;  %v2276_v16 = vsel %vm1587_vm5, %v10683_v52, %v2121_v5  ;;  %8252 = vmatprep.mubr.msk.bf16.mxu0 %vm1973_vm7, %v5727_v25  ;;  %v5730_v25 = vld [vmem:[#allocation2 + $0x548] sm:$0xff] }
 0x1ff   : > { %3404 = vst.msk [vmem:[#allocation2 + $0x588] sm:$0xff] %vm1973_vm7, %v3254_v51  ;;  %v2346_v47 = vsel %vm1780_vm6, %v2276_v16, %v2186_v13  ;;  %v7962_v35 = vpop.f32.mrb[44].mxu1  ;;  %v5731_v51 = vld [vmem:[#allocation2 + $0x550] sm:$0xff] }
 0x200   : > { %v2784_v4 = vsel %vm2359_vm9, %v10878_v41, %v2783_v37  ;;  %v2798_v55 = vshll.u32 %v2346_v47, 16  ;;  %v3258_v1 = vrot.slane %v2346_v47, 1  ;;  %8438 = vst [vmem:[%s10687_s16 + $0x170] sm:$0xff] %v7962_v35  ;;  %v3900_v49 = vpop.f32.mrb[45].mxu1  ;;  %v2188_v11 = vpop.permute.xlu1 %2187  ;;  %v11726_v47 = vrot.slane %v10977_v2, 1  ;;  %v4535_v2 = vld [vmem:[#allocation2 + $0x358] sm:$0xff] }
 0x201   : > { %3018 = vst.msk [vmem:[#allocation2 + $0x388] sm:$0xff] %vm1973_vm7, %v2784_v4  ;;  %8441 = vst [vmem:[%s10687_s16 + $0x160] sm:$0xff] %v3900_v49  ;;  %v7963_v52 = vpop.f32.mrb[46].mxu1  ;;  %8123 = vmatmul.mubr.msk.bf16.gmra.mrb[76].mxu1 %vm1973_vm7, %v4531_v33  ;;  %v2123_v38 = vpop.permute.xlu0 %2122 }
 0x202   : > { %v2800_v57 = vrot.slane %v2798_v55, 1  ;;  %v3259_v41 = vsel %vm3129_vm8, %v11723_v61, %v3258_v1  ;;  %8444 = vst [vmem:[%s10687_s16 + $0x178] sm:$0xff] %v7963_v52  ;;  %v2279_v21 = vsel %vm1587_vm5, %v10711_v10, %v2123_v38  ;;  %v3903_v15 = vpop.f32.mrb[47].mxu1  ;;  %8126 = vmatprep.mubr.msk.bf16.mxu1 %vm1973_vm7, %v4532_v50  ;;  %v4536_v52 = vld [vmem:[#allocation2 + $0x360] sm:$0xff]  ;;  %v11727_v50 = vrot.slane %v11005_v6, 1 }
 0x203   : > { %3406 = vst.msk [vmem:[#allocation2 + $0x598] sm:$0xff] %vm1973_vm7, %v3259_v41  ;;  %v2348_v32 = vsel %vm1780_vm6, %v2279_v21, %v2188_v11  ;;  %8447 = vst [vmem:[%s10687_s16 + $0x168] sm:$0xff] %v3903_v15 }
 0x204   : > { %v2801_v63 = vsel %vm2359_vm9, %v10908_v22, %v2800_v57  ;;  %v2815_v56 = vshll.u32 %v2348_v32, 16  ;;  %v3263_v48 = vrot.slane %v2348_v32, 1  ;;  %v2190_v7 = vpop.permute.xlu1 %2189  ;;  %v5732_v32 = vld [vmem:[#allocation2 + $0x558] sm:$0xff] }
 0x205   : > { %3020 = vst.msk [vmem:[#allocation2 + $0x398] sm:$0xff] %vm1973_vm7, %v2801_v63  ;;  %8253 = vmatmul.mubr.msk.bf16.gmra.mrb[76].mxu0 %vm1973_vm7, %v5728_v39  ;;  %v2125_v10 = vpop.permute.xlu0 %2124  ;;  %v11728_v39 = vrot.slane %v11033_v54, 1 }
 0x206   : > { %v2817_v45 = vrot.slane %v2815_v56, 1  ;;  %v3264_v60 = vsel %vm3129_vm8, %v11724_v8, %v3263_v48  ;;  %v2282_v14 = vsel %vm1587_vm5, %v10735_v42, %v2125_v10  ;;  %8256 = vmatprep.mubr.msk.bf16.mxu0 %vm1973_vm7, %v5729_v46  ;;  %v4534_v42 = vld [vmem:[#allocation2 + $0x350] sm:$0xff]  ;;  %v2897_v56 = vshrl.u32 %v11063_v34, 16 }
 0x207   : > { %3408 = vst.msk [vmem:[#allocation2 + $0x5a8] sm:$0xff] %vm1973_vm7, %v3264_v60  ;;  %v2350_v22 = vsel %vm1780_vm6, %v2282_v14, %v2190_v7  ;;  %v5735_v34 = vld [vmem:[#allocation2 + $0x570] sm:$0xff] }
 0x208   : > { %v2818_v31 = vsel %vm2359_vm9, %v10938_v44, %v2817_v45  ;;  %v2832_v36 = vshll.u32 %v2350_v22, 16  ;;  %v3268_v26 = vrot.slane %v2350_v22, 1  ;;  %v2192_v30 = vpop.permute.xlu1 %2191  ;;  %v11729_v45 = vld [vmem:[#allocation9_spill] sm:$0xff] }
 0x209   : > { %3022 = vst.msk [vmem:[#allocation2 + $0x3a8] sm:$0xff] %vm1973_vm7, %v2818_v31  ;;  %8127 = vmatmul.mubr.msk.bf16.gmra.mrb[80].mxu1 %vm1973_vm7, %v4533_v9  ;;  %v2127_v62 = vpop.permute.xlu0 %2126  ;;  %v4537_v22 = vld [vmem:[#allocation2 + $0x368] sm:$0xff]  ;;  %v4538_v31 = vld [vmem:[#allocation2 + $0x370] sm:$0xff] }
 0x20a   : > { %v2834_v27 = vrot.slane %v2832_v36, 1  ;;  %v3269_v23 = vsel %vm3129_vm8, %v11725_v19, %v3268_v26  ;;  %v2285_v44 = vsel %vm1587_vm5, %v10758_v0, %v2127_v62  ;;  %8130 = vmatprep.mubr.msk.bf16.mxu1 %vm1973_vm7, %v4534_v42  ;;  %v2899_v36 = vor.u32 %v2897_v56, %v11082_v59  ;;  %v5734_v42 = vld [vmem:[#allocation2 + $0x568] sm:$0xff]  ;;  %v4540_v59 = vld [vmem:[#allocation2 + $0x380] sm:$0xff] }
 0x20b   : > { %3410 = vst.msk [vmem:[#allocation2 + $0x5b8] sm:$0xff] %vm1973_vm7, %v3269_v23  ;;  %v2352_v24 = vsel %vm1780_vm6, %v2285_v44, %v2192_v30  ;;  %v7966_v40 = vpop.f32.mrb[48].mxu1  ;;  %v5736_v23 = vld [vmem:[#allocation2 + $0x578] sm:$0xff] }
 0x20c   : > { %v2835_v29 = vsel %vm2359_vm9, %v10966_v17, %v2834_v27  ;;  %v2849_v13 = vshll.u32 %v2352_v24, 16  ;;  %v3273_v5 = vrot.slane %v2352_v24, 1  ;;  %8450 = vst [vmem:[%s10687_s16 + $0x190] sm:$0xff] %v7966_v40  ;;  %v3916_v28 = vpop.f32.mrb[49].mxu1  ;;  %v2194_v37 = vpop.permute.xlu1 %2193  ;;  %v5737_v24 = vld [vmem:[#allocation2 + $0x580] sm:$0xff] }
 0x20d   : > { %3024 = vst.msk [vmem:[#allocation2 + $0x3b8] sm:$0xff] %vm1973_vm7, %v2835_v29  ;;  %8453 = vst [vmem:[%s10687_s16 + $0x180] sm:$0xff] %v3916_v28  ;;  %v7967_v0 = vpop.f32.mrb[50].mxu1  ;;  %8257 = vmatmul.mubr.msk.bf16.gmra.mrb[80].mxu0 %vm1973_vm7, %v5730_v25  ;;  %v2129_v12 = vpop.permute.xlu0 %2128  ;;  %v4541_v29 = vld [vmem:[#allocation2 + $0x388] sm:$0xff]  ;;  %v5739_v28 = vld [vmem:[#allocation2 + $0x590] sm:$0xff] }
 0x20e   : > { %v2851_v16 = vrot.slane %v2849_v13, 1  ;;  %v3274_v17 = vsel %vm3129_vm8, %v11726_v47, %v3273_v5  ;;  %8456 = vst [vmem:[%s10687_s16 + $0x198] sm:$0xff] %v7967_v0  ;;  %v2288_v35 = vsel %vm1587_vm5, %v10783_v58, %v2129_v12  ;;  %v3919_v4 = vpop.f32.mrb[51].mxu1  ;;  %8260 = vmatprep.mubr.msk.bf16.mxu0 %vm1973_vm7, %v5731_v51  ;;  %v4542_v13 = vld [vmem:[#allocation2 + $0x390] sm:$0xff]  ;;  %v5738_v5 = vld [vmem:[#allocation2 + $0x588] sm:$0xff]  ;;  %v4543_v0 = vld [vmem:[#allocation2 + $0x398] sm:$0xff] }
 0x20f   : > { %3412 = vst.msk [vmem:[#allocation2 + $0x5c8] sm:$0xff] %vm1973_vm7, %v3274_v17  ;;  %v2354_v55 = vsel %vm1780_vm6, %v2288_v35, %v2194_v37  ;;  %8459 = vst [vmem:[%s10687_s16 + $0x188] sm:$0xff] %v3919_v4  ;;  %v4544_v51 = vld [vmem:[#allocation2 + $0x3a0] sm:$0xff]  ;;  %v5740_v47 = vld [vmem:[#allocation2 + $0x598] sm:$0xff] }
 0x210   : > { %v2852_v1 = vsel %vm2359_vm9, %v10994_v43, %v2851_v16  ;;  %v2866_v49 = vshll.u32 %v2354_v55, 16  ;;  %v3278_v33 = vrot.slane %v2354_v55, 1  ;;  %v2196_v11 = vpop.permute.xlu1 %2195  ;;  %v5741_v17 = vld [vmem:[#allocation2 + $0x5a0] sm:$0xff]  ;;  %v4545_v35 = vld [vmem:[#allocation2 + $0x3a8] sm:$0xff]  ;;  %v4546_v4 = vld [vmem:[#allocation2 + $0x3b0] sm:$0xff] }
 0x211   : > { %3026 = vst.msk [vmem:[#allocation2 + $0x3c8] sm:$0xff] %vm1973_vm7, %v2852_v1  ;;  %8131 = vmatmul.mubr.msk.bf16.gmra.mrb[84].mxu1 %vm1973_vm7, %v4535_v2  ;;  %v2131_v58 = vpop.permute.xlu0 %2130  ;;  %v5742_v55 = vld [vmem:[#allocation2 + $0x5a8] sm:$0xff]  ;;  %v5743_v1 = vld [vmem:[#allocation2 + $0x5b0] sm:$0xff] }
 0x212   : > { %v2868_v38 = vrot.slane %v2866_v49, 1  ;;  %v3279_v57 = vsel %vm3129_vm8, %v11727_v50, %v3278_v33  ;;  %v2291_v61 = vsel %vm1587_vm5, %v10803_v3, %v2131_v58  ;;  %8134 = vmatprep.mubr.msk.bf16.mxu1 %vm1973_vm7, %v4536_v52  ;;  %v5733_v3 = vld [vmem:[#allocation2 + $0x560] sm:$0xff]  ;;  %v8307_v33 = vld [vmem:[%s10687_s16 + $0x10] sm:$0xff] }
 0x213   : > { %3414 = vst.msk [vmem:[#allocation2 + $0x5d8] sm:$0xff] %vm1973_vm7, %v3279_v57  ;;  %v2356_v43 = vsel %vm1780_vm6, %v2291_v61, %v2196_v11  ;;  %v8310_v52 = vld [vmem:[%s10687_s16] sm:$0xff]  ;;  %v8313_v61 = vld [vmem:[%s10687_s16 + $0x18] sm:$0xff] }
 0x214   : > { %v2869_v41 = vsel %vm2359_vm9, %v11024_v18, %v2868_v38  ;;  %v2883_v21 = vshll.u32 %v2356_v43, 16  ;;  %v3283_v15 = vrot.slane %v2356_v43, 1  ;;  %v2198_v63 = vpop.permute.xlu1 %2197  ;;  %v4547_v2 = vld [vmem:[#allocation2 + $0x3b8] sm:$0xff]  ;;  %v4548_v38 = vld [vmem:[#allocation2 + $0x3c0] sm:$0xff] }
 0x215   : > { %3028 = vst.msk [vmem:[#allocation2 + $0x3d8] sm:$0xff] %vm1973_vm7, %v2869_v41  ;;  %8261 = vmatmul.mubr.msk.bf16.gmra.mrb[84].mxu0 %vm1973_vm7, %v5732_v32  ;;  %v2133_v6 = vpop.permute.xlu0 %2132  ;;  %v5744_v32 = vld [vmem:[#allocation2 + $0x5b8] sm:$0xff] }
 0x216   : > { %v2885_v48 = vrot.slane %v2883_v21, 1  ;;  %v3284_v7 = vsel %vm3129_vm8, %v11728_v39, %v3283_v15  ;;  %v2294_v18 = vsel %vm1587_vm5, %v10831_v53, %v2133_v6  ;;  %8264 = vmatprep.mubr.msk.bf16.mxu0 %vm1973_vm7, %v5733_v3  ;;  %v8316_v21 = vld [vmem:[%s10687_s16 + $0x8] sm:$0xff] }
 0x217   : > { %3416 = vst.msk [vmem:[#allocation2 + $0x5e8] sm:$0xff] %vm1973_vm7, %v3284_v7  ;;  %v2358_v10 = vsel %vm1780_vm6, %v2294_v18, %v2198_v63  ;;  %v7970_v46 = vpop.f32.mrb[52].mxu1  ;;  %v5745_v63 = vld [vmem:[#allocation2 + $0x5c0] sm:$0xff] }
 0x218   : > { %v2886_v8 = vsel %vm2359_vm9, %v11729_v45, %v2885_v48  ;;  %v2900_v60 = vshll.u32 %v2358_v10, 16  ;;  %v3288_v14 = vrot.slane %v2358_v10, 1  ;;  %8462 = vst [vmem:[%s10687_s16 + $0x1b0] sm:$0xff] %v7970_v46  ;;  %v3932_v54 = vpop.f32.mrb[53].mxu1  ;;  %v8319_v10 = vld [vmem:[%s10687_s16 + $0x30] sm:$0xff]  ;;  %v4549_v46 = vld [vmem:[#allocation2 + $0x3c8] sm:$0xff] }
 0x219   : > { %3030 = vst.msk [vmem:[#allocation2 + $0x3e8] sm:$0xff] %vm1973_vm7, %v2886_v8  ;;  %8465 = vst [vmem:[%s10687_s16 + $0x1a0] sm:$0xff] %v3932_v54  ;;  %v7971_v53 = vpop.f32.mrb[54].mxu1  ;;  %8135 = vmatmul.mubr.msk.bf16.gmra.mrb[88].mxu1 %vm1973_vm7, %v4537_v22 }
 0x21a   : > { %v2902_v26 = vrot.slane %v2900_v60, 1  ;;  %v3289_v9 = vsel %vm3129_vm8, %v3286_v20, %v3288_v14  ;;  %8468 = vst [vmem:[%s10687_s16 + $0x1b8] sm:$0xff] %v7971_v53  ;;  %v3935_v30 = vpop.f32.mrb[55].mxu1  ;;  %8138 = vmatprep.mubr.msk.bf16.mxu1 %vm1973_vm7, %v4538_v31  ;;  %v4539_v20 = vld [vmem:[#allocation2 + $0x378] sm:$0xff]  ;;  %v8322_v60 = vld [vmem:[%s10687_s16 + $0x20] sm:$0xff]  ;;  %v4550_v14 = vld [vmem:[#allocation2 + $0x3d0] sm:$0xff] }
 0x21b   : > { %3418 = vst.msk [vmem:[#allocation2 + $0x5f8] sm:$0xff] %vm1973_vm7, %v3289_v9  ;;  %8471 = vst [vmem:[%s10687_s16 + $0x1a8] sm:$0xff] %v3935_v30 }
 0x21c   : > { %v2903_v62 = vsel %vm2359_vm9, %v2899_v36, %v2902_v26  ;;  %v8325_v26 = vld [vmem:[%s10687_s16 + $0x38] sm:$0xff] }
 0x21d   : > { %3032 = vst.msk [vmem:[#allocation2 + $0x3f8] sm:$0xff] %vm1973_vm7, %v2903_v62  ;;  %8265 = vmatmul.mubr.msk.bf16.gmra.mrb[88].mxu0 %vm1973_vm7, %v5734_v42  ;;  %v8328_v62 = vld [vmem:[%s10687_s16 + $0x28] sm:$0xff] }
 0x21e   : > { %8268 = vmatprep.mubr.msk.bf16.mxu0 %vm1973_vm7, %v5735_v34 }
 0x221   : > { %8139 = vmatmul.mubr.msk.bf16.gmra.mrb[92].mxu1 %vm1973_vm7, %v4539_v20 }
 0x222   : > { %8142 = vmatprep.mubr.msk.bf16.mxu1 %vm1973_vm7, %v4540_v59 }
 0x223   : > { %v7974_v27 = vpop.f32.mrb[56].mxu1 }
 0x224   : > { %8474 = vst [vmem:[%s10687_s16 + $0x1d0] sm:$0xff] %v7974_v27  ;;  %v3948_v19 = vpop.f32.mrb[57].mxu1  ;;  %v5746_v27 = vld [vmem:[#allocation2 + $0x5c8] sm:$0xff] }
 0x225   : > { %8477 = vst [vmem:[%s10687_s16 + $0x1c0] sm:$0xff] %v3948_v19  ;;  %v7975_v44 = vpop.f32.mrb[58].mxu1  ;;  %8269 = vmatmul.mubr.msk.bf16.gmra.mrb[92].mxu0 %vm1973_vm7, %v5736_v23  ;;  %v5747_v19 = vld [vmem:[#allocation2 + $0x5d0] sm:$0xff] }
 0x226   : > { %8480 = vst [vmem:[%s10687_s16 + $0x1d8] sm:$0xff] %v7975_v44  ;;  %v3951_v40 = vpop.f32.mrb[59].mxu1  ;;  %8272 = vmatprep.mubr.msk.bf16.mxu0 %vm1973_vm7, %v5737_v24 }
 0x227   : > { %8483 = vst [vmem:[%s10687_s16 + $0x1c8] sm:$0xff] %v3951_v40 }
 0x229   : > { %8143 = vmatmul.mubr.msk.bf16.gmra.mrb[96].mxu1 %vm1973_vm7, %v4541_v29 }
 0x22a   : > { %8146 = vmatprep.mubr.msk.bf16.mxu1 %vm1973_vm7, %v4542_v13 }
 0x22d   : > { %8273 = vmatmul.mubr.msk.bf16.gmra.mrb[96].mxu0 %vm1973_vm7, %v5738_v5 }
 0x22e   : > { %8276 = vmatprep.mubr.msk.bf16.mxu0 %vm1973_vm7, %v5739_v28  ;;  %v8331_v28 = vld [vmem:[%s10687_s16 + $0x50] sm:$0xff] }
 0x22f   : > { %v7978_v25 = vpop.f32.mrb[60].mxu1 }
 0x230   : > { %8486 = vst [vmem:[%s10687_s16 + $0x1f0] sm:$0xff] %v7978_v25  ;;  %v3964_v37 = vpop.f32.mrb[61].mxu1  ;;  %v4551_v25 = vld [vmem:[#allocation2 + $0x3d8] sm:$0xff] }
 0x231   : > { %8489 = vst [vmem:[%s10687_s16 + $0x1e0] sm:$0xff] %v3964_v37  ;;  %v7979_v12 = vpop.f32.mrb[62].mxu1  ;;  %8147 = vmatmul.mubr.msk.bf16.gmra.mrb[100].mxu1 %vm1973_vm7, %v4543_v0 }
 0x232   : > { %8492 = vst [vmem:[%s10687_s16 + $0x1f8] sm:$0xff] %v7979_v12  ;;  %v3967_v16 = vpop.f32.mrb[63].mxu1  ;;  %8150 = vmatprep.mubr.msk.bf16.mxu1 %vm1973_vm7, %v4544_v51  ;;  %v8334_v12 = vld [vmem:[%s10687_s16 + $0x40] sm:$0xff] }
 0x233   : > { %8495 = vst [vmem:[%s10687_s16 + $0x1e8] sm:$0xff] %v3967_v16  ;;  %v4552_v51 = vld [vmem:[#allocation2 + $0x3e0] sm:$0xff] }
 0x235   : > { %8277 = vmatmul.mubr.msk.bf16.gmra.mrb[100].mxu0 %vm1973_vm7, %v5740_v47 }
 0x236   : > { %8280 = vmatprep.mubr.msk.bf16.mxu0 %vm1973_vm7, %v5741_v17 }
 0x239   : > { %8151 = vmatmul.mubr.msk.bf16.gmra.mrb[104].mxu1 %vm1973_vm7, %v4545_v35 }
 0x23a   : > { %8154 = vmatprep.mubr.msk.bf16.mxu1 %vm1973_vm7, %v4546_v4 }
 0x23d   : > { %8281 = vmatmul.mubr.msk.bf16.gmra.mrb[104].mxu0 %vm1973_vm7, %v5742_v55  ;;  %v8337_v55 = vld [vmem:[%s10687_s16 + $0x58] sm:$0xff] }
 0x23e   : > { %8284 = vmatprep.mubr.msk.bf16.mxu0 %vm1973_vm7, %v5743_v1 }
 0x240   : > { %v8178_v49 = vpop.f32.mrb[0].mxu0 }
 0x241   : > { %v8308_v11 = vadd.f32 %v8307_v33, %v8178_v49  ;;  %8155 = vmatmul.mubr.msk.bf16.gmra.mrb[108].mxu1 %vm1973_vm7, %v4547_v2  ;;  %v5990_v58 = vpop.f32.mrb[1].mxu0  ;;  %v8340_v33 = vld [vmem:[%s10687_s16 + $0x48] sm:$0xff] }
 0x242   : > { %v8311_v50 = vadd.f32 %v8310_v52, %v5990_v58  ;;  %8158 = vmatprep.mubr.msk.bf16.mxu1 %vm1973_vm7, %v4548_v38  ;;  %v8179_v57 = vpop.f32.mrb[2].mxu0  ;;  %v5748_v38 = vld [vmem:[#allocation2 + $0x5d8] sm:$0xff] }
 0x243   : > { %6631 = vst [vmem:[%s10687_s16 + $0x10] sm:$0xff] %v8308_v11  ;;  %v8314_v43 = vadd.f32 %v8313_v61, %v8179_v57  ;;  %v5993_v41 = vpop.f32.mrb[3].mxu0  ;;  %v7021_v48 = vmul.f32 %v8308_v11, %v8308_v11 }
 0x244   : > { %6629 = vst [vmem:[%s10687_s16] sm:$0xff] %v8311_v50  ;;  %v8317_v15 = vadd.f32 %v8316_v21, %v5993_v41  ;;  %v7019_v6 = vmul.f32 %v8311_v50, %v8311_v50 }
 0x245   : > { %6632 = vst [vmem:[%s10687_s16 + $0x18] sm:$0xff] %v8314_v43  ;;  %8285 = vmatmul.mubr.msk.bf16.gmra.mrb[108].mxu0 %vm1973_vm7, %v5744_v32  ;;  %v7022_v54 = vmul.f32 %v8314_v43, %v8314_v43 }
 0x246   : > { %6630 = vst [vmem:[%s10687_s16 + $0x8] sm:$0xff] %v8317_v15  ;;  %v6885_v3 = vadd.f32 %v8317_v15, %v8311_v50  ;;  %v7020_v56 = vmul.f32 %v8317_v15, %v8317_v15  ;;  %8288 = vmatprep.mubr.msk.bf16.mxu0 %vm1973_vm7, %v5745_v63  ;;  %v5749_v50 = vld [vmem:[#allocation2 + $0x5e0] sm:$0xff]  ;;  %v8343_v63 = vld [vmem:[%s10687_s16 + $0x70] sm:$0xff] }
 0x248   : > { %v6886_v39 = vadd.f32 %v8308_v11, %v6885_v3  ;;  %v7147_v7 = vadd.f32 %v7020_v56, %v7019_v6  ;;  %v8182_v18 = vpop.f32.mrb[4].mxu0  ;;  %v4553_v6 = vld [vmem:[#allocation2 + $0x3e8] sm:$0xff] }
 0x249   : > { %v8320_v45 = vadd.f32 %v8319_v10, %v8182_v18  ;;  %8159 = vmatmul.mubr.msk.bf16.gmra.mrb[112].mxu1 %vm1973_vm7, %v4549_v46  ;;  %v6006_v8 = vpop.f32.mrb[5].mxu0 }
 0x24a   : > { %v6887_v22 = vadd.f32 %v8314_v43, %v6886_v39  ;;  %v7148_v53 = vadd.f32 %v7147_v7, %v7021_v48  ;;  %v8323_v31 = vadd.f32 %v8322_v60, %v6006_v8  ;;  %8162 = vmatprep.mubr.msk.bf16.mxu1 %vm1973_vm7, %v4550_v14  ;;  %v8183_v36 = vpop.f32.mrb[6].mxu0  ;;  %v8346_v48 = vld [vmem:[%s10687_s16 + $0x60] sm:$0xff]  ;;  %v4554_v39 = vld [vmem:[#allocation2 + $0x3f0] sm:$0xff]  ;;  %v8349_v8 = vld [vmem:[%s10687_s16 + $0x78] sm:$0xff] }
 0x24b   : > { %6635 = vst [vmem:[%s10687_s16 + $0x30] sm:$0xff] %v8320_v45  ;;  %v8326_v9 = vadd.f32 %v8325_v26, %v8183_v36  ;;  %v6009_v30 = vpop.f32.mrb[7].mxu0  ;;  %v7025_v40 = vmul.f32 %v8320_v45, %v8320_v45  ;;  %v5750_v26 = vld [vmem:[#allocation2 + $0x5e8] sm:$0xff] }
 0x24c   : > { %v7149_v42 = vadd.f32 %v7148_v53, %v7022_v54  ;;  %6633 = vst [vmem:[%s10687_s16 + $0x20] sm:$0xff] %v8323_v31  ;;  %v6888_v34 = vadd.f32 %v8323_v31, %v6887_v22  ;;  %v7023_v20 = vmul.f32 %v8323_v31, %v8323_v31  ;;  %v8329_v59 = vadd.f32 %v8328_v62, %v6009_v30  ;;  %v8352_v54 = vld [vmem:[%s10687_s16 + $0x68] sm:$0xff] }
 0x24d   : > { %6636 = vst [vmem:[%s10687_s16 + $0x38] sm:$0xff] %v8326_v9  ;;  %8289 = vmatmul.mubr.msk.bf16.gmra.mrb[112].mxu0 %vm1973_vm7, %v5746_v27  ;;  %v7026_v16 = vmul.f32 %v8326_v9, %v8326_v9 }
 0x24e   : > { %v7150_v23 = vadd.f32 %v7149_v42, %v7023_v20  ;;  %6634 = vst [vmem:[%s10687_s16 + $0x28] sm:$0xff] %v8329_v59  ;;  %v6889_v44 = vadd.f32 %v8329_v59, %v6888_v34  ;;  %v7024_v24 = vmul.f32 %v8329_v59, %v8329_v59  ;;  %8292 = vmatprep.mubr.msk.bf16.mxu0 %vm1973_vm7, %v5747_v19  ;;  %v8355_v19 = vld [vmem:[%s10687_s16 + $0x90] sm:$0xff] }
 0x250   : > { %v6890_v29 = vadd.f32 %v8320_v45, %v6889_v44  ;;  %v7151_v13 = vadd.f32 %v7150_v23, %v7024_v24  ;;  %v8186_v5 = vpop.f32.mrb[8].mxu0  ;;  %v4555_v23 = vld [vmem:[#allocation2 + $0x3f8] sm:$0xff] }
 0x251   : > { %v8332_v37 = vadd.f32 %v8331_v28, %v8186_v5  ;;  %8163 = vmatmul.mubr.msk.bf16.gmra.mrb[116].mxu1 %vm1973_vm7, %v4551_v25  ;;  %v6022_v0 = vpop.f32.mrb[9].mxu0 }
 0x252   : > { %v6891_v47 = vadd.f32 %v8326_v9, %v6890_v29  ;;  %v7152_v17 = vadd.f32 %v7151_v13, %v7025_v40  ;;  %v8335_v35 = vadd.f32 %v8334_v12, %v6022_v0  ;;  %8166 = vmatprep.mubr.msk.bf16.mxu1 %vm1973_vm7, %v4552_v51  ;;  %v8187_v4 = vpop.f32.mrb[10].mxu0  ;;  %v5751_v9 = vld [vmem:[#allocation2 + $0x5f0] sm:$0xff]  ;;  %v8358_v40 = vld [vmem:[%s10687_s16 + $0x80] sm:$0xff]  ;;  %v8364_v51 = vld [vmem:[%s10687_s16 + $0x88] sm:$0xff] }
 0x253   : > { %6639 = vst [vmem:[%s10687_s16 + $0x50] sm:$0xff] %v8332_v37  ;;  %v8338_v1 = vadd.f32 %v8337_v55, %v8187_v4  ;;  %v6025_v49 = vpop.f32.mrb[11].mxu0  ;;  %v7029_v41 = vmul.f32 %v8332_v37, %v8332_v37  ;;  %v5752_v4 = vld [vmem:[#allocation2 + $0x5f8] sm:$0xff] }
 0x254   : > { %v7153_v2 = vadd.f32 %v7152_v17, %v7026_v16  ;;  %6637 = vst [vmem:[%s10687_s16 + $0x40] sm:$0xff] %v8335_v35  ;;  %v6892_v11 = vadd.f32 %v8335_v35, %v6891_v47  ;;  %v7027_v58 = vmul.f32 %v8335_v35, %v8335_v35  ;;  %v8341_v52 = vadd.f32 %v8340_v33, %v6025_v49 }
 0x255   : > { %6640 = vst [vmem:[%s10687_s16 + $0x58] sm:$0xff] %v8338_v1  ;;  %8293 = vmatmul.mubr.msk.bf16.gmra.mrb[116].mxu0 %vm1973_vm7, %v5748_v38  ;;  %v7030_v7 = vmul.f32 %v8338_v1, %v8338_v1 }
 0x256   : > { %v7154_v57 = vadd.f32 %v7153_v2, %v7027_v58  ;;  %6638 = vst [vmem:[%s10687_s16 + $0x48] sm:$0xff] %v8341_v52  ;;  %v6893_v61 = vadd.f32 %v8341_v52, %v6892_v11  ;;  %v7028_v43 = vmul.f32 %v8341_v52, %v8341_v52  ;;  %8296 = vmatprep.mubr.msk.bf16.mxu0 %vm1973_vm7, %v5749_v50  ;;  %v8367_v52 = vld [vmem:[%s10687_s16 + $0xb0] sm:$0xff] }
 0x258   : > { %v6894_v21 = vadd.f32 %v8332_v37, %v6893_v61  ;;  %v7155_v15 = vadd.f32 %v7154_v57, %v7028_v43  ;;  %v8190_v32 = vpop.f32.mrb[12].mxu0  ;;  %v8361_v37 = vld [vmem:[%s10687_s16 + $0x98] sm:$0xff]  ;;  %v8370_v57 = vld [vmem:[%s10687_s16 + $0xa0] sm:$0xff] }
 0x259   : > { %v8344_v3 = vadd.f32 %v8343_v63, %v8190_v32  ;;  %8167 = vmatmul.mubr.msk.bf16.gmra.mrb[120].mxu1 %vm1973_vm7, %v4553_v6  ;;  %v6038_v56 = vpop.f32.mrb[13].mxu0  ;;  %v8373_v32 = vld [vmem:[%s10687_s16 + $0xb8] sm:$0xff] }
 0x25a   : > { %v6895_v18 = vadd.f32 %v8338_v1, %v6894_v21  ;;  %v7156_v10 = vadd.f32 %v7155_v15, %v7029_v41  ;;  %v8347_v46 = vadd.f32 %v8346_v48, %v6038_v56  ;;  %8170 = vmatprep.mubr.msk.bf16.mxu1 %vm1973_vm7, %v4554_v39  ;;  %v8191_v45 = vpop.f32.mrb[14].mxu0 }
 0x25b   : > { %6643 = vst [vmem:[%s10687_s16 + $0x70] sm:$0xff] %v8344_v3  ;;  %v8350_v60 = vadd.f32 %v8349_v8, %v8191_v45  ;;  %v6041_v14 = vpop.f32.mrb[15].mxu0  ;;  %v7033_v34 = vmul.f32 %v8344_v3, %v8344_v3 }
 0x25c   : > { %v7157_v22 = vadd.f32 %v7156_v10, %v7030_v7  ;;  %6641 = vst [vmem:[%s10687_s16 + $0x60] sm:$0xff] %v8347_v46  ;;  %v6896_v53 = vadd.f32 %v8347_v46, %v6895_v18  ;;  %v7031_v31 = vmul.f32 %v8347_v46, %v8347_v46  ;;  %v8353_v36 = vadd.f32 %v8352_v54, %v6041_v14  ;;  %v8379_v54 = vld [vmem:[%s10687_s16 + $0xd0] sm:$0xff] }
 0x25d   : > { %6644 = vst [vmem:[%s10687_s16 + $0x78] sm:$0xff] %v8350_v60  ;;  %8297 = vmatmul.mubr.msk.bf16.gmra.mrb[120].mxu0 %vm1973_vm7, %v5750_v26  ;;  %v7034_v29 = vmul.f32 %v8350_v60, %v8350_v60 }
 0x25e   : > { %v7158_v30 = vadd.f32 %v7157_v22, %v7031_v31  ;;  %6642 = vst [vmem:[%s10687_s16 + $0x68] sm:$0xff] %v8353_v36  ;;  %v6897_v62 = vadd.f32 %v8353_v36, %v6896_v53  ;;  %v7032_v42 = vmul.f32 %v8353_v36, %v8353_v36  ;;  %8300 = vmatprep.mubr.msk.bf16.mxu0 %vm1973_vm7, %v5751_v9  ;;  %v8382_v31 = vld [vmem:[%s10687_s16 + $0xc0] sm:$0xff] }
 0x260   : > { %v6898_v20 = vadd.f32 %v8344_v3, %v6897_v62  ;;  %v7159_v59 = vadd.f32 %v7158_v30, %v7032_v42  ;;  %v8194_v27 = vpop.f32.mrb[16].mxu0  ;;  %v8376_v3 = vld [vmem:[%s10687_s16 + $0xa8] sm:$0xff]  ;;  %v8385_v42 = vld [vmem:[%s10687_s16 + $0xd8] sm:$0xff] }
 0x261   : > { %v8356_v44 = vadd.f32 %v8355_v19, %v8194_v27  ;;  %8171 = vmatmul.mubr.msk.bf16.gmra.mrb[124].mxu1 %vm1973_vm7, %v4555_v23  ;;  %v6054_v24 = vpop.f32.mrb[17].mxu0 }
 0x262   : > { %v6899_v13 = vadd.f32 %v8350_v60, %v6898_v20  ;;  %v7160_v5 = vadd.f32 %v7159_v59, %v7033_v34  ;;  %v8359_v28 = vadd.f32 %v8358_v40, %v6054_v24  ;;  %v8195_v25 = vpop.f32.mrb[18].mxu0  ;;  %v8388_v59 = vld [vmem:[%s10687_s16 + $0xc8] sm:$0xff] }
 0x263   : > { %6647 = vst [vmem:[%s10687_s16 + $0x90] sm:$0xff] %v8356_v44  ;;  %v8362_v0 = vadd.f32 %v8361_v37, %v8195_v25  ;;  %v6057_v12 = vpop.f32.mrb[19].mxu0  ;;  %v7037_v33 = vmul.f32 %v8356_v44, %v8356_v44  ;;  %v8391_v37 = vld [vmem:[%s10687_s16 + $0xf0] sm:$0xff] }
 0x264   : > { %v7161_v16 = vadd.f32 %v7160_v5, %v7034_v29  ;;  %6645 = vst [vmem:[%s10687_s16 + $0x80] sm:$0xff] %v8359_v28  ;;  %v6900_v47 = vadd.f32 %v8359_v28, %v6899_v13  ;;  %v7035_v17 = vmul.f32 %v8359_v28, %v8359_v28  ;;  %v8365_v35 = vadd.f32 %v8364_v51, %v6057_v12  ;;  %v8394_v51 = vld [vmem:[%s10687_s16 + $0xe0] sm:$0xff] }
 0x265   : > { %6648 = vst [vmem:[%s10687_s16 + $0x98] sm:$0xff] %v8362_v0  ;;  %8301 = vmatmul.mubr.msk.bf16.gmra.mrb[124].mxu0 %vm1973_vm7, %v5752_v4  ;;  %v7038_v61 = vmul.f32 %v8362_v0, %v8362_v0 }
 0x266   : > { %v7162_v55 = vadd.f32 %v7161_v16, %v7035_v17  ;;  %6646 = vst [vmem:[%s10687_s16 + $0x88] sm:$0xff] %v8365_v35  ;;  %v6901_v1 = vadd.f32 %v8365_v35, %v6900_v47  ;;  %v7036_v49 = vmul.f32 %v8365_v35, %v8365_v35 }
 0x268   : > { %v6902_v2 = vadd.f32 %v8356_v44, %v6901_v1  ;;  %v7163_v11 = vadd.f32 %v7162_v55, %v7036_v49  ;;  %v8198_v58 = vpop.f32.mrb[20].mxu0  ;;  %v8397_v55 = vld [vmem:[%s10687_s16 + $0xf8] sm:$0xff] }
 0x269   : > { %v8368_v38 = vadd.f32 %v8367_v52, %v8198_v58  ;;  %v6070_v50 = vpop.f32.mrb[21].mxu0 }
 0x26a   : > { %v6903_v43 = vadd.f32 %v8362_v0, %v6902_v2  ;;  %v7164_v41 = vadd.f32 %v7163_v11, %v7037_v33  ;;  %v8371_v21 = vadd.f32 %v8370_v57, %v6070_v50  ;;  %v8199_v15 = vpop.f32.mrb[22].mxu0  ;;  %v8400_v33 = vld [vmem:[%s10687_s16 + $0xe8] sm:$0xff] }
 0x26b   : > { %6651 = vst [vmem:[%s10687_s16 + $0xb0] sm:$0xff] %v8368_v38  ;;  %v8374_v63 = vadd.f32 %v8373_v32, %v8199_v15  ;;  %v6073_v6 = vpop.f32.mrb[23].mxu0  ;;  %v7041_v45 = vmul.f32 %v8368_v38, %v8368_v38  ;;  %v8403_v15 = vld [vmem:[%s10687_s16 + $0x110] sm:$0xff] }
 0x26c   : > { %v7165_v56 = vadd.f32 %v7164_v41, %v7038_v61  ;;  %6649 = vst [vmem:[%s10687_s16 + $0xa0] sm:$0xff] %v8371_v21  ;;  %v6904_v48 = vadd.f32 %v8371_v21, %v6903_v43  ;;  %v7039_v39 = vmul.f32 %v8371_v21, %v8371_v21  ;;  %v8377_v7 = vadd.f32 %v8376_v3, %v6073_v6  ;;  %v8406_v6 = vld [vmem:[%s10687_s16 + $0x100] sm:$0xff] }
 0x26d   : > { %6652 = vst [vmem:[%s10687_s16 + $0xb8] sm:$0xff] %v8374_v63  ;;  %v7042_v36 = vmul.f32 %v8374_v63, %v8374_v63 }
 0x26e   : > { %v7166_v18 = vadd.f32 %v7165_v56, %v7039_v39  ;;  %6650 = vst [vmem:[%s10687_s16 + $0xa8] sm:$0xff] %v8377_v7  ;;  %v6905_v10 = vadd.f32 %v8377_v7, %v6904_v48  ;;  %v7040_v46 = vmul.f32 %v8377_v7, %v8377_v7 }
 0x270   : > { %v6906_v8 = vadd.f32 %v8368_v38, %v6905_v10  ;;  %v7167_v60 = vadd.f32 %v7166_v18, %v7040_v46  ;;  %v8202_v14 = vpop.f32.mrb[24].mxu0  ;;  %v8409_v18 = vld [vmem:[%s10687_s16 + $0x118] sm:$0xff] }
 0x271   : > { %v8380_v22 = vadd.f32 %v8379_v54, %v8202_v14  ;;  %v6086_v53 = vpop.f32.mrb[25].mxu0 }
 0x272   : > { %v6907_v26 = vadd.f32 %v8374_v63, %v6906_v8  ;;  %v7168_v9 = vadd.f32 %v7167_v60, %v7041_v45  ;;  %v8383_v30 = vadd.f32 %v8382_v31, %v6086_v53  ;;  %v8203_v62 = vpop.f32.mrb[26].mxu0  ;;  %v8412_v45 = vld [vmem:[%s10687_s16 + $0x108] sm:$0xff] }
 0x273   : > { %6655 = vst [vmem:[%s10687_s16 + $0xd0] sm:$0xff] %v8380_v22  ;;  %v8386_v34 = vadd.f32 %v8385_v42, %v8203_v62  ;;  %v6089_v20 = vpop.f32.mrb[27].mxu0  ;;  %v7045_v13 = vmul.f32 %v8380_v22, %v8380_v22  ;;  %v8415_v62 = vld [vmem:[%s10687_s16 + $0x130] sm:$0xff] }
 0x274   : > { %v7169_v27 = vadd.f32 %v7168_v9, %v7042_v36  ;;  %6653 = vst [vmem:[%s10687_s16 + $0xc0] sm:$0xff] %v8383_v30  ;;  %v6908_v19 = vadd.f32 %v8383_v30, %v6907_v26  ;;  %v7043_v23 = vmul.f32 %v8383_v30, %v8383_v30  ;;  %v8389_v44 = vadd.f32 %v8388_v59, %v6089_v20  ;;  %v8418_v20 = vld [vmem:[%s10687_s16 + $0x120] sm:$0xff] }
 0x275   : > { %6656 = vst [vmem:[%s10687_s16 + $0xd8] sm:$0xff] %v8386_v34  ;;  %v7046_v16 = vmul.f32 %v8386_v34, %v8386_v34 }
 0x276   : > { %v7170_v24 = vadd.f32 %v7169_v27, %v7043_v23  ;;  %6654 = vst [vmem:[%s10687_s16 + $0xc8] sm:$0xff] %v8389_v44  ;;  %v6909_v40 = vadd.f32 %v8389_v44, %v6908_v19  ;;  %v7044_v29 = vmul.f32 %v8389_v44, %v8389_v44 }
 0x278   : > { %v6910_v5 = vadd.f32 %v8380_v22, %v6909_v40  ;;  %v7171_v28 = vadd.f32 %v7170_v24, %v7044_v29  ;;  %v8206_v25 = vpop.f32.mrb[28].mxu0  ;;  %v8421_v24 = vld [vmem:[%s10687_s16 + $0x138] sm:$0xff] }
 0x279   : > { %v8392_v0 = vadd.f32 %v8391_v37, %v8206_v25  ;;  %v6102_v12 = vpop.f32.mrb[29].mxu0 }
 0x27a   : > { %v6911_v47 = vadd.f32 %v8386_v34, %v6910_v5  ;;  %v7172_v17 = vadd.f32 %v7171_v28, %v7045_v13  ;;  %v8395_v35 = vadd.f32 %v8394_v51, %v6102_v12  ;;  %v8207_v4 = vpop.f32.mrb[30].mxu0  ;;  %v8424_v13 = vld [vmem:[%s10687_s16 + $0x128] sm:$0xff] }
 0x27b   : > { %6659 = vst [vmem:[%s10687_s16 + $0xf0] sm:$0xff] %v8392_v0  ;;  %v8398_v1 = vadd.f32 %v8397_v55, %v8207_v4  ;;  %v6105_v49 = vpop.f32.mrb[31].mxu0  ;;  %v7049_v61 = vmul.f32 %v8392_v0, %v8392_v0  ;;  %v8427_v4 = vld [vmem:[%s10687_s16 + $0x150] sm:$0xff] }
 0x27c   : > { %v7173_v2 = vadd.f32 %v7172_v17, %v7046_v16  ;;  %6657 = vst [vmem:[%s10687_s16 + $0xe0] sm:$0xff] %v8395_v35  ;;  %v6912_v11 = vadd.f32 %v8395_v35, %v6911_v47  ;;  %v7047_v58 = vmul.f32 %v8395_v35, %v8395_v35  ;;  %v8401_v52 = vadd.f32 %v8400_v33, %v6105_v49  ;;  %v8430_v49 = vld [vmem:[%s10687_s16 + $0x140] sm:$0xff] }
 0x27d   : > { %6660 = vst [vmem:[%s10687_s16 + $0xf8] sm:$0xff] %v8398_v1  ;;  %v7050_v3 = vmul.f32 %v8398_v1, %v8398_v1 }
 0x27e   : > { %v7174_v38 = vadd.f32 %v7173_v2, %v7047_v58  ;;  %6658 = vst [vmem:[%s10687_s16 + $0xe8] sm:$0xff] %v8401_v52  ;;  %v6913_v50 = vadd.f32 %v8401_v52, %v6912_v11  ;;  %v7048_v57 = vmul.f32 %v8401_v52, %v8401_v52 }
 0x280   : > { %v6914_v43 = vadd.f32 %v8392_v0, %v6913_v50  ;;  %v7175_v41 = vadd.f32 %v7174_v38, %v7048_v57  ;;  %v8210_v21 = vpop.f32.mrb[32].mxu0  ;;  %v8433_v38 = vld [vmem:[%s10687_s16 + $0x158] sm:$0xff] }
 0x281   : > { %v8404_v32 = vadd.f32 %v8403_v15, %v8210_v21  ;;  %v6118_v63 = vpop.f32.mrb[33].mxu0 }
 0x282   : > { %v6915_v56 = vadd.f32 %v8398_v1, %v6914_v43  ;;  %v7176_v48 = vadd.f32 %v7175_v41, %v7049_v61  ;;  %v8407_v39 = vadd.f32 %v8406_v6, %v6118_v63  ;;  %v8211_v7 = vpop.f32.mrb[34].mxu0  ;;  %v8436_v61 = vld [vmem:[%s10687_s16 + $0x148] sm:$0xff] }
 0x283   : > { %6663 = vst [vmem:[%s10687_s16 + $0x110] sm:$0xff] %v8404_v32  ;;  %v8410_v10 = vadd.f32 %v8409_v18, %v8211_v7  ;;  %v6121_v46 = vpop.f32.mrb[35].mxu0  ;;  %v7053_v36 = vmul.f32 %v8404_v32, %v8404_v32  ;;  %v8439_v7 = vld [vmem:[%s10687_s16 + $0x170] sm:$0xff] }
 0x284   : > { %v7177_v8 = vadd.f32 %v7176_v48, %v7050_v3  ;;  %6661 = vst [vmem:[%s10687_s16 + $0x100] sm:$0xff] %v8407_v39  ;;  %v6916_v60 = vadd.f32 %v8407_v39, %v6915_v56  ;;  %v7051_v14 = vmul.f32 %v8407_v39, %v8407_v39  ;;  %v8413_v54 = vadd.f32 %v8412_v45, %v6121_v46  ;;  %v8442_v46 = vld [vmem:[%s10687_s16 + $0x160] sm:$0xff] }
 0x285   : > { %6664 = vst [vmem:[%s10687_s16 + $0x118] sm:$0xff] %v8410_v10  ;;  %v7054_v59 = vmul.f32 %v8410_v10, %v8410_v10 }
 0x286   : > { %v7178_v22 = vadd.f32 %v7177_v8, %v7051_v14  ;;  %6662 = vst [vmem:[%s10687_s16 + $0x108] sm:$0xff] %v8413_v54  ;;  %v6917_v53 = vadd.f32 %v8413_v54, %v6916_v60  ;;  %v7052_v31 = vmul.f32 %v8413_v54, %v8413_v54 }
 0x288   : > { %v6918_v26 = vadd.f32 %v8404_v32, %v6917_v53  ;;  %v7179_v9 = vadd.f32 %v7178_v22, %v7052_v31  ;;  %v8214_v30 = vpop.f32.mrb[36].mxu0  ;;  %v8445_v22 = vld [vmem:[%s10687_s16 + $0x178] sm:$0xff] }
 0x289   : > { %v8416_v42 = vadd.f32 %v8415_v62, %v8214_v30  ;;  %v6134_v34 = vpop.f32.mrb[37].mxu0 }
 0x28a   : > { %v6919_v27 = vadd.f32 %v8410_v10, %v6918_v26  ;;  %v7180_v19 = vadd.f32 %v7179_v9, %v7053_v36  ;;  %v8419_v23 = vadd.f32 %v8418_v20, %v6134_v34  ;;  %v8215_v44 = vpop.f32.mrb[38].mxu0  ;;  %v8448_v36 = vld [vmem:[%s10687_s16 + $0x168] sm:$0xff] }
 0x28b   : > { %6667 = vst [vmem:[%s10687_s16 + $0x130] sm:$0xff] %v8416_v42  ;;  %v8422_v40 = vadd.f32 %v8421_v24, %v8215_v44  ;;  %v6137_v29 = vpop.f32.mrb[39].mxu0  ;;  %v7057_v16 = vmul.f32 %v8416_v42, %v8416_v42  ;;  %v8451_v44 = vld [vmem:[%s10687_s16 + $0x190] sm:$0xff] }
 0x28c   : > { %v7181_v5 = vadd.f32 %v7180_v19, %v7054_v59  ;;  %6665 = vst [vmem:[%s10687_s16 + $0x120] sm:$0xff] %v8419_v23  ;;  %v6920_v28 = vadd.f32 %v8419_v23, %v6919_v27  ;;  %v7055_v25 = vmul.f32 %v8419_v23, %v8419_v23  ;;  %v8425_v37 = vadd.f32 %v8424_v13, %v6137_v29  ;;  %v8454_v29 = vld [vmem:[%s10687_s16 + $0x180] sm:$0xff] }
 0x28d   : > { %6668 = vst [vmem:[%s10687_s16 + $0x138] sm:$0xff] %v8422_v40  ;;  %v7058_v33 = vmul.f32 %v8422_v40, %v8422_v40 }
 0x28e   : > { %v7182_v0 = vadd.f32 %v7181_v5, %v7055_v25  ;;  %6666 = vst [vmem:[%s10687_s16 + $0x128] sm:$0xff] %v8425_v37  ;;  %v6921_v12 = vadd.f32 %v8425_v37, %v6920_v28  ;;  %v7056_v51 = vmul.f32 %v8425_v37, %v8425_v37 }
 0x290   : > { %v6922_v47 = vadd.f32 %v8416_v42, %v6921_v12  ;;  %v7183_v17 = vadd.f32 %v7182_v0, %v7056_v51  ;;  %v8218_v35 = vpop.f32.mrb[40].mxu0  ;;  %v8457_v0 = vld [vmem:[%s10687_s16 + $0x198] sm:$0xff] }
 0x291   : > { %v8428_v55 = vadd.f32 %v8427_v4, %v8218_v35  ;;  %v6150_v1 = vpop.f32.mrb[41].mxu0 }
 0x292   : > { %v6923_v2 = vadd.f32 %v8422_v40, %v6922_v47  ;;  %v7184_v11 = vadd.f32 %v7183_v17, %v7057_v16  ;;  %v8431_v58 = vadd.f32 %v8430_v49, %v6150_v1  ;;  %v8219_v52 = vpop.f32.mrb[42].mxu0  ;;  %v8460_v16 = vld [vmem:[%s10687_s16 + $0x188] sm:$0xff] }
 0x293   : > { %6671 = vst [vmem:[%s10687_s16 + $0x150] sm:$0xff] %v8428_v55  ;;  %v8434_v50 = vadd.f32 %v8433_v38, %v8219_v52  ;;  %v6153_v57 = vpop.f32.mrb[43].mxu0  ;;  %v7061_v3 = vmul.f32 %v8428_v55, %v8428_v55  ;;  %v8463_v52 = vld [vmem:[%s10687_s16 + $0x1b0] sm:$0xff] }
 0x294   : > { %v7185_v43 = vadd.f32 %v7184_v11, %v7058_v33  ;;  %6669 = vst [vmem:[%s10687_s16 + $0x140] sm:$0xff] %v8431_v58  ;;  %v6924_v41 = vadd.f32 %v8431_v58, %v6923_v2  ;;  %v7059_v21 = vmul.f32 %v8431_v58, %v8431_v58  ;;  %v8437_v15 = vadd.f32 %v8436_v61, %v6153_v57  ;;  %v8466_v57 = vld [vmem:[%s10687_s16 + $0x1a0] sm:$0xff] }
 0x295   : > { %6672 = vst [vmem:[%s10687_s16 + $0x158] sm:$0xff] %v8434_v50  ;;  %v7062_v45 = vmul.f32 %v8434_v50, %v8434_v50 }
 0x296   : > { %v7186_v32 = vadd.f32 %v7185_v43, %v7059_v21  ;;  %6670 = vst [vmem:[%s10687_s16 + $0x148] sm:$0xff] %v8437_v15  ;;  %v6925_v63 = vadd.f32 %v8437_v15, %v6924_v41  ;;  %v7060_v6 = vmul.f32 %v8437_v15, %v8437_v15 }
 0x298   : > { %v6926_v56 = vadd.f32 %v8428_v55, %v6925_v63  ;;  %v7187_v48 = vadd.f32 %v7186_v32, %v7060_v6  ;;  %v8222_v39 = vpop.f32.mrb[44].mxu0  ;;  %v8469_v32 = vld [vmem:[%s10687_s16 + $0x1b8] sm:$0xff] }
 0x299   : > { %v8440_v18 = vadd.f32 %v8439_v7, %v8222_v39  ;;  %v6166_v10 = vpop.f32.mrb[45].mxu0 }
 0x29a   : > { %v6927_v8 = vadd.f32 %v8434_v50, %v6926_v56  ;;  %v7188_v60 = vadd.f32 %v7187_v48, %v7061_v3  ;;  %v8443_v14 = vadd.f32 %v8442_v46, %v6166_v10  ;;  %v8223_v54 = vpop.f32.mrb[46].mxu0  ;;  %v8472_v3 = vld [vmem:[%s10687_s16 + $0x1a8] sm:$0xff] }
 0x29b   : > { %6675 = vst [vmem:[%s10687_s16 + $0x170] sm:$0xff] %v8440_v18  ;;  %v8446_v53 = vadd.f32 %v8445_v22, %v8223_v54  ;;  %v6169_v31 = vpop.f32.mrb[47].mxu0  ;;  %v7065_v59 = vmul.f32 %v8440_v18, %v8440_v18  ;;  %v8475_v54 = vld [vmem:[%s10687_s16 + $0x1d0] sm:$0xff] }
 0x29c   : > { %v7189_v26 = vadd.f32 %v7188_v60, %v7062_v45  ;;  %6673 = vst [vmem:[%s10687_s16 + $0x160] sm:$0xff] %v8443_v14  ;;  %v6928_v9 = vadd.f32 %v8443_v14, %v6927_v8  ;;  %v7063_v30 = vmul.f32 %v8443_v14, %v8443_v14  ;;  %v8449_v62 = vadd.f32 %v8448_v36, %v6169_v31  ;;  %v8478_v31 = vld [vmem:[%s10687_s16 + $0x1c0] sm:$0xff] }
 0x29d   : > { %6676 = vst [vmem:[%s10687_s16 + $0x178] sm:$0xff] %v8446_v53  ;;  %v7066_v13 = vmul.f32 %v8446_v53, %v8446_v53 }
 0x29e   : > { %v7190_v42 = vadd.f32 %v7189_v26, %v7063_v30  ;;  %6674 = vst [vmem:[%s10687_s16 + $0x168] sm:$0xff] %v8449_v62  ;;  %v6929_v34 = vadd.f32 %v8449_v62, %v6928_v9  ;;  %v7064_v20 = vmul.f32 %v8449_v62, %v8449_v62 }
 0x2a0   : > { %v6930_v27 = vadd.f32 %v8440_v18, %v6929_v34  ;;  %v7191_v19 = vadd.f32 %v7190_v42, %v7064_v20  ;;  %v8226_v23 = vpop.f32.mrb[48].mxu0  ;;  %v8481_v42 = vld [vmem:[%s10687_s16 + $0x1d8] sm:$0xff] }
 0x2a1   : > { %v8452_v24 = vadd.f32 %v8451_v44, %v8226_v23  ;;  %v6182_v40 = vpop.f32.mrb[49].mxu0 }
 0x2a2   : > { %v6931_v5 = vadd.f32 %v8446_v53, %v6930_v27  ;;  %v7192_v28 = vadd.f32 %v7191_v19, %v7065_v59  ;;  %v8455_v25 = vadd.f32 %v8454_v29, %v6182_v40  ;;  %v8227_v37 = vpop.f32.mrb[50].mxu0  ;;  %v8484_v59 = vld [vmem:[%s10687_s16 + $0x1c8] sm:$0xff] }
 0x2a3   : > { %6679 = vst [vmem:[%s10687_s16 + $0x190] sm:$0xff] %v8452_v24  ;;  %v8458_v12 = vadd.f32 %v8457_v0, %v8227_v37  ;;  %v6185_v51 = vpop.f32.mrb[51].mxu0  ;;  %v7069_v33 = vmul.f32 %v8452_v24, %v8452_v24  ;;  %v8487_v37 = vld [vmem:[%s10687_s16 + $0x1f0] sm:$0xff] }
 0x2a4   : > { %v7193_v47 = vadd.f32 %v7192_v28, %v7066_v13  ;;  %6677 = vst [vmem:[%s10687_s16 + $0x180] sm:$0xff] %v8455_v25  ;;  %v6932_v17 = vadd.f32 %v8455_v25, %v6931_v5  ;;  %v7067_v35 = vmul.f32 %v8455_v25, %v8455_v25  ;;  %v8461_v4 = vadd.f32 %v8460_v16, %v6185_v51  ;;  %v8490_v51 = vld [vmem:[%s10687_s16 + $0x1e0] sm:$0xff] }
 0x2a5   : > { %6680 = vst [vmem:[%s10687_s16 + $0x198] sm:$0xff] %v8458_v12  ;;  %v7070_v61 = vmul.f32 %v8458_v12, %v8458_v12 }
 0x2a6   : > { %v7194_v55 = vadd.f32 %v7193_v47, %v7067_v35  ;;  %6678 = vst [vmem:[%s10687_s16 + $0x188] sm:$0xff] %v8461_v4  ;;  %v6933_v1 = vadd.f32 %v8461_v4, %v6932_v17  ;;  %v7068_v49 = vmul.f32 %v8461_v4, %v8461_v4 }
 0x2a8   : > { %v6934_v2 = vadd.f32 %v8452_v24, %v6933_v1  ;;  %v7195_v11 = vadd.f32 %v7194_v55, %v7068_v49  ;;  %v8230_v58 = vpop.f32.mrb[52].mxu0  ;;  %v8493_v55 = vld [vmem:[%s10687_s16 + $0x1f8] sm:$0xff] }
 0x2a9   : > { %v8464_v38 = vadd.f32 %v8463_v52, %v8230_v58  ;;  %v6198_v50 = vpop.f32.mrb[53].mxu0 }
 0x2aa   : > { %v6935_v43 = vadd.f32 %v8458_v12, %v6934_v2  ;;  %v7196_v41 = vadd.f32 %v7195_v11, %v7069_v33  ;;  %v8467_v21 = vadd.f32 %v8466_v57, %v6198_v50  ;;  %v8231_v15 = vpop.f32.mrb[54].mxu0  ;;  %v8496_v33 = vld [vmem:[%s10687_s16 + $0x1e8] sm:$0xff] }
 0x2ab   : > { %6683 = vst [vmem:[%s10687_s16 + $0x1b0] sm:$0xff] %v8464_v38  ;;  %v8470_v63 = vadd.f32 %v8469_v32, %v8231_v15  ;;  %v6201_v6 = vpop.f32.mrb[55].mxu0  ;;  %v7073_v45 = vmul.f32 %v8464_v38, %v8464_v38 }
 0x2ac   : > { %v7197_v56 = vadd.f32 %v7196_v41, %v7070_v61  ;;  %6681 = vst [vmem:[%s10687_s16 + $0x1a0] sm:$0xff] %v8467_v21  ;;  %v6936_v48 = vadd.f32 %v8467_v21, %v6935_v43  ;;  %v7071_v39 = vmul.f32 %v8467_v21, %v8467_v21  ;;  %v8473_v7 = vadd.f32 %v8472_v3, %v6201_v6 }
 0x2ad   : > { %6684 = vst [vmem:[%s10687_s16 + $0x1b8] sm:$0xff] %v8470_v63  ;;  %v7074_v36 = vmul.f32 %v8470_v63, %v8470_v63 }
 0x2ae   : > { %v7198_v18 = vadd.f32 %v7197_v56, %v7071_v39  ;;  %6682 = vst [vmem:[%s10687_s16 + $0x1a8] sm:$0xff] %v8473_v7  ;;  %v6937_v10 = vadd.f32 %v8473_v7, %v6936_v48  ;;  %v7072_v46 = vmul.f32 %v8473_v7, %v8473_v7 }
 0x2b0   : > { %v6938_v8 = vadd.f32 %v8464_v38, %v6937_v10  ;;  %v7199_v60 = vadd.f32 %v7198_v18, %v7072_v46  ;;  %v8234_v14 = vpop.f32.mrb[56].mxu0 }
 0x2b1   : > { %v8476_v22 = vadd.f32 %v8475_v54, %v8234_v14  ;;  %v6214_v53 = vpop.f32.mrb[57].mxu0 }
 0x2b2   : > { %v6939_v26 = vadd.f32 %v8470_v63, %v6938_v8  ;;  %v7200_v9 = vadd.f32 %v7199_v60, %v7073_v45  ;;  %v8479_v30 = vadd.f32 %v8478_v31, %v6214_v53  ;;  %v8235_v62 = vpop.f32.mrb[58].mxu0 }
 0x2b3   : > { %6687 = vst [vmem:[%s10687_s16 + $0x1d0] sm:$0xff] %v8476_v22  ;;  %v8482_v34 = vadd.f32 %v8481_v42, %v8235_v62  ;;  %v6217_v20 = vpop.f32.mrb[59].mxu0  ;;  %v7077_v13 = vmul.f32 %v8476_v22, %v8476_v22 }
 0x2b4   : > { %v7201_v27 = vadd.f32 %v7200_v9, %v7074_v36  ;;  %6685 = vst [vmem:[%s10687_s16 + $0x1c0] sm:$0xff] %v8479_v30  ;;  %v6940_v19 = vadd.f32 %v8479_v30, %v6939_v26  ;;  %v7075_v23 = vmul.f32 %v8479_v30, %v8479_v30  ;;  %v8485_v44 = vadd.f32 %v8484_v59, %v6217_v20 }
 0x2b5   : > { %6688 = vst [vmem:[%s10687_s16 + $0x1d8] sm:$0xff] %v8482_v34  ;;  %v7078_v16 = vmul.f32 %v8482_v34, %v8482_v34 }
 0x2b6   : > { %v7202_v24 = vadd.f32 %v7201_v27, %v7075_v23  ;;  %6686 = vst [vmem:[%s10687_s16 + $0x1c8] sm:$0xff] %v8485_v44  ;;  %v6941_v40 = vadd.f32 %v8485_v44, %v6940_v19  ;;  %v7076_v29 = vmul.f32 %v8485_v44, %v8485_v44 }
 0x2b8   : > { %v6942_v5 = vadd.f32 %v8476_v22, %v6941_v40  ;;  %v7203_v28 = vadd.f32 %v7202_v24, %v7076_v29  ;;  %v8238_v25 = vpop.f32.mrb[60].mxu0 }
 0x2b9   : > { %v8488_v0 = vadd.f32 %v8487_v37, %v8238_v25  ;;  %v6230_v12 = vpop.f32.mrb[61].mxu0 }
 0x2ba   : > { %v7204_v47 = vadd.f32 %v7203_v28, %v7077_v13  ;;  %v8491_v17 = vadd.f32 %v8490_v51, %v6230_v12  ;;  %v6943_v35 = vadd.f32 %v8482_v34, %v6942_v5  ;;  %v8239_v4 = vpop.f32.mrb[62].mxu0 }
 0x2bb   : > { %6691 = vst [vmem:[%s10687_s16 + $0x1f0] sm:$0xff] %v8488_v0  ;;  %v8494_v1 = vadd.f32 %v8493_v55, %v8239_v4  ;;  %v6233_v49 = vpop.f32.mrb[63].mxu0  ;;  %v7081_v15 = vmul.f32 %v8488_v0, %v8488_v0 }
 0x2bc   : > { %6689 = vst [vmem:[%s10687_s16 + $0x1e0] sm:$0xff] %v8491_v17  ;;  %v6944_v2 = vadd.f32 %v8491_v17, %v6943_v35  ;;  %v7079_v11 = vmul.f32 %v8491_v17, %v8491_v17  ;;  %v7205_v58 = vadd.f32 %v7204_v47, %v7078_v16  ;;  %v8497_v52 = vadd.f32 %v8496_v33, %v6233_v49  ;;  %v8112_v38 = vpop.f32.mrb[64].mxu1 }
 0x2bd   : > { %6692 = vst [vmem:[%s10687_s16 + $0x1f8] sm:$0xff] %v8494_v1  ;;  %v5049_v50 = vpop.f32.mrb[65].mxu1  ;;  %v7082_v48 = vmul.f32 %v8494_v1, %v8494_v1 }
 0x2be   : > { %v7206_v57 = vadd.f32 %v7205_v58, %v7079_v11  ;;  %6690 = vst [vmem:[%s10687_s16 + $0x1e8] sm:$0xff] %v8497_v52  ;;  %v6945_v61 = vadd.f32 %v8497_v52, %v6944_v2  ;;  %v7080_v43 = vmul.f32 %v8497_v52, %v8497_v52  ;;  %v8113_v41 = vpop.f32.mrb[66].mxu1 }
 0x2bf   : > { %v5052_v21 = vpop.f32.mrb[67].mxu1 }
 0x2c0   : > { %v6946_v32 = vadd.f32 %v8488_v0, %v6945_v61  ;;  %v7207_v63 = vadd.f32 %v7206_v57, %v7080_v43  ;;  %v8242_v6 = vpop.f32.mrb[64].mxu0 }
 0x2c1   : > { %v8500_v3 = vadd.f32 %v8242_v6, %v8112_v38  ;;  %v6246_v56 = vpop.f32.mrb[65].mxu0 }
 0x2c2   : > { %v7208_v39 = vadd.f32 %v7207_v63, %v7081_v15  ;;  %v8503_v7 = vadd.f32 %v6246_v56, %v5049_v50  ;;  %v6947_v18 = vadd.f32 %v8494_v1, %v6946_v32  ;;  %v8243_v10 = vpop.f32.mrb[66].mxu0 }
 0x2c3   : > { %6695 = vst [vmem:[%s10687_s16 + $0x210] sm:$0xff] %v8500_v3  ;;  %v8506_v46 = vadd.f32 %v8243_v10, %v8113_v41  ;;  %v6249_v45 = vpop.f32.mrb[67].mxu0  ;;  %v7085_v62 = vmul.f32 %v8500_v3, %v8500_v3 }
 0x2c4   : > { %6693 = vst [vmem:[%s10687_s16 + $0x200] sm:$0xff] %v8503_v7  ;;  %v6948_v8 = vadd.f32 %v8503_v7, %v6947_v18  ;;  %v7083_v60 = vmul.f32 %v8503_v7, %v8503_v7  ;;  %v7209_v14 = vadd.f32 %v7208_v39, %v7082_v48  ;;  %v8509_v54 = vadd.f32 %v6249_v45, %v5052_v21  ;;  %v8116_v22 = vpop.f32.mrb[68].mxu1 }
 0x2c5   : > { %6696 = vst [vmem:[%s10687_s16 + $0x218] sm:$0xff] %v8506_v46  ;;  %v5065_v53 = vpop.f32.mrb[69].mxu1  ;;  %v7086_v19 = vmul.f32 %v8506_v46, %v8506_v46 }
 0x2c6   : > { %v7210_v31 = vadd.f32 %v7209_v14, %v7083_v60  ;;  %6694 = vst [vmem:[%s10687_s16 + $0x208] sm:$0xff] %v8509_v54  ;;  %v6949_v36 = vadd.f32 %v8509_v54, %v6948_v8  ;;  %v7084_v26 = vmul.f32 %v8509_v54, %v8509_v54  ;;  %v8117_v9 = vpop.f32.mrb[70].mxu1 }
 0x2c7   : > { %v5068_v30 = vpop.f32.mrb[71].mxu1 }
 0x2c8   : > { %v6950_v42 = vadd.f32 %v8500_v3, %v6949_v36  ;;  %v7211_v34 = vadd.f32 %v7210_v31, %v7084_v26  ;;  %v8246_v20 = vpop.f32.mrb[68].mxu0 }
 0x2c9   : > { %v8512_v59 = vadd.f32 %v8246_v20, %v8116_v22  ;;  %v6262_v27 = vpop.f32.mrb[69].mxu0 }
 0x2ca   : > { %v7212_v23 = vadd.f32 %v7211_v34, %v7085_v62  ;;  %v8515_v44 = vadd.f32 %v6262_v27, %v5065_v53  ;;  %v6951_v24 = vadd.f32 %v8506_v46, %v6950_v42  ;;  %v8247_v40 = vpop.f32.mrb[70].mxu0 }
 0x2cb   : > { %6699 = vst [vmem:[%s10687_s16 + $0x230] sm:$0xff] %v8512_v59  ;;  %v8518_v29 = vadd.f32 %v8247_v40, %v8117_v9  ;;  %v6265_v13 = vpop.f32.mrb[71].mxu0  ;;  %v7089_v4 = vmul.f32 %v8512_v59, %v8512_v59 }
 0x2cc   : > { %6697 = vst [vmem:[%s10687_s16 + $0x220] sm:$0xff] %v8515_v44  ;;  %v6952_v5 = vadd.f32 %v8515_v44, %v6951_v24  ;;  %v7087_v28 = vmul.f32 %v8515_v44, %v8515_v44  ;;  %v7213_v25 = vadd.f32 %v7212_v23, %v7086_v19  ;;  %v8521_v37 = vadd.f32 %v6265_v13, %v5068_v30  ;;  %v8120_v0 = vpop.f32.mrb[72].mxu1 }
 0x2cd   : > { %6700 = vst [vmem:[%s10687_s16 + $0x238] sm:$0xff] %v8518_v29  ;;  %v5081_v12 = vpop.f32.mrb[73].mxu1  ;;  %v7090_v11 = vmul.f32 %v8518_v29, %v8518_v29 }
 0x2ce   : > { %v7214_v51 = vadd.f32 %v7213_v25, %v7087_v28  ;;  %6698 = vst [vmem:[%s10687_s16 + $0x228] sm:$0xff] %v8521_v37  ;;  %v6953_v16 = vadd.f32 %v8521_v37, %v6952_v5  ;;  %v7088_v47 = vmul.f32 %v8521_v37, %v8521_v37  ;;  %v8121_v17 = vpop.f32.mrb[74].mxu1 }
 0x2cf   : > { %v5084_v35 = vpop.f32.mrb[75].mxu1 }
 0x2d0   : > { %v6954_v55 = vadd.f32 %v8512_v59, %v6953_v16  ;;  %v7215_v1 = vadd.f32 %v7214_v51, %v7088_v47  ;;  %v8250_v49 = vpop.f32.mrb[72].mxu0 }
 0x2d1   : > { %v8524_v33 = vadd.f32 %v8250_v49, %v8120_v0  ;;  %v6278_v2 = vpop.f32.mrb[73].mxu0 }
 0x2d2   : > { %v7216_v58 = vadd.f32 %v7215_v1, %v7089_v4  ;;  %v8527_v52 = vadd.f32 %v6278_v2, %v5081_v12  ;;  %v6955_v38 = vadd.f32 %v8518_v29, %v6954_v55  ;;  %v8251_v50 = vpop.f32.mrb[74].mxu0 }
 0x2d3   : > { %6703 = vst [vmem:[%s10687_s16 + $0x250] sm:$0xff] %v8524_v33  ;;  %v8530_v57 = vadd.f32 %v8251_v50, %v8121_v17  ;;  %v6281_v61 = vpop.f32.mrb[75].mxu0  ;;  %v7093_v7 = vmul.f32 %v8524_v33, %v8524_v33 }
 0x2d4   : > { %6701 = vst [vmem:[%s10687_s16 + $0x240] sm:$0xff] %v8527_v52  ;;  %v6956_v43 = vadd.f32 %v8527_v52, %v6955_v38  ;;  %v7091_v41 = vmul.f32 %v8527_v52, %v8527_v52  ;;  %v7217_v21 = vadd.f32 %v7216_v58, %v7090_v11  ;;  %v8533_v15 = vadd.f32 %v6281_v61, %v5084_v35  ;;  %v8124_v32 = vpop.f32.mrb[76].mxu1 }
 0x2d5   : > { %6704 = vst [vmem:[%s10687_s16 + $0x258] sm:$0xff] %v8530_v57  ;;  %v5097_v63 = vpop.f32.mrb[77].mxu1  ;;  %v7094_v60 = vmul.f32 %v8530_v57, %v8530_v57 }
 0x2d6   : > { %v7218_v6 = vadd.f32 %v7217_v21, %v7091_v41  ;;  %6702 = vst [vmem:[%s10687_s16 + $0x248] sm:$0xff] %v8533_v15  ;;  %v6957_v3 = vadd.f32 %v8533_v15, %v6956_v43  ;;  %v7092_v56 = vmul.f32 %v8533_v15, %v8533_v15  ;;  %v8125_v48 = vpop.f32.mrb[78].mxu1 }
 0x2d7   : > { %v5100_v39 = vpop.f32.mrb[79].mxu1 }
 0x2d8   : > { %v6958_v18 = vadd.f32 %v8524_v33, %v6957_v3  ;;  %v7219_v10 = vadd.f32 %v7218_v6, %v7092_v56  ;;  %v8254_v46 = vpop.f32.mrb[76].mxu0 }
 0x2d9   : > { %v8536_v45 = vadd.f32 %v8254_v46, %v8124_v32  ;;  %v6294_v8 = vpop.f32.mrb[77].mxu0 }
 0x2da   : > { %v7220_v14 = vadd.f32 %v7219_v10, %v7093_v7  ;;  %v8539_v54 = vadd.f32 %v6294_v8, %v5097_v63  ;;  %v6959_v22 = vadd.f32 %v8530_v57, %v6958_v18  ;;  %v8255_v53 = vpop.f32.mrb[78].mxu0 }
 0x2db   : > { %6707 = vst [vmem:[%s10687_s16 + $0x270] sm:$0xff] %v8536_v45  ;;  %v8542_v31 = vadd.f32 %v8255_v53, %v8125_v48  ;;  %v6297_v36 = vpop.f32.mrb[79].mxu0  ;;  %v7097_v44 = vmul.f32 %v8536_v45, %v8536_v45 }
 0x2dc   : > { %6705 = vst [vmem:[%s10687_s16 + $0x260] sm:$0xff] %v8539_v54  ;;  %v6960_v26 = vadd.f32 %v8539_v54, %v6959_v22  ;;  %v7095_v9 = vmul.f32 %v8539_v54, %v8539_v54  ;;  %v7221_v30 = vadd.f32 %v7220_v14, %v7094_v60  ;;  %v8545_v62 = vadd.f32 %v6297_v36, %v5100_v39  ;;  %v8128_v42 = vpop.f32.mrb[80].mxu1 }
 0x2dd   : > { %6708 = vst [vmem:[%s10687_s16 + $0x278] sm:$0xff] %v8542_v31  ;;  %v5113_v34 = vpop.f32.mrb[81].mxu1  ;;  %v7098_v28 = vmul.f32 %v8542_v31, %v8542_v31 }
 0x2de   : > { %v7222_v20 = vadd.f32 %v7221_v30, %v7095_v9  ;;  %6706 = vst [vmem:[%s10687_s16 + $0x268] sm:$0xff] %v8545_v62  ;;  %v6961_v59 = vadd.f32 %v8545_v62, %v6960_v26  ;;  %v7096_v27 = vmul.f32 %v8545_v62, %v8545_v62  ;;  %v8129_v19 = vpop.f32.mrb[82].mxu1 }
 0x2df   : > { %v5116_v23 = vpop.f32.mrb[83].mxu1 }
 0x2e0   : > { %v6962_v24 = vadd.f32 %v8536_v45, %v6961_v59  ;;  %v7223_v40 = vadd.f32 %v7222_v20, %v7096_v27  ;;  %v8258_v29 = vpop.f32.mrb[80].mxu0 }
 0x2e1   : > { %v8548_v13 = vadd.f32 %v8258_v29, %v8128_v42  ;;  %v6310_v5 = vpop.f32.mrb[81].mxu0 }
 0x2e2   : > { %v7224_v25 = vadd.f32 %v7223_v40, %v7097_v44  ;;  %v8551_v37 = vadd.f32 %v6310_v5, %v5113_v34  ;;  %v6963_v0 = vadd.f32 %v8542_v31, %v6962_v24  ;;  %v8259_v12 = vpop.f32.mrb[82].mxu0 }
 0x2e3   : > { %6711 = vst [vmem:[%s10687_s16 + $0x290] sm:$0xff] %v8548_v13  ;;  %v8554_v51 = vadd.f32 %v8259_v12, %v8129_v19  ;;  %v6313_v16 = vpop.f32.mrb[83].mxu0  ;;  %v7101_v52 = vmul.f32 %v8548_v13, %v8548_v13 }
 0x2e4   : > { %6709 = vst [vmem:[%s10687_s16 + $0x280] sm:$0xff] %v8551_v37  ;;  %v6964_v47 = vadd.f32 %v8551_v37, %v6963_v0  ;;  %v7099_v17 = vmul.f32 %v8551_v37, %v8551_v37  ;;  %v7225_v35 = vadd.f32 %v7224_v25, %v7098_v28  ;;  %v8557_v4 = vadd.f32 %v6313_v16, %v5116_v23  ;;  %v8132_v55 = vpop.f32.mrb[84].mxu1 }
 0x2e5   : > { %6712 = vst [vmem:[%s10687_s16 + $0x298] sm:$0xff] %v8554_v51  ;;  %v5129_v1 = vpop.f32.mrb[85].mxu1  ;;  %v7102_v41 = vmul.f32 %v8554_v51, %v8554_v51 }
 0x2e6   : > { %v7226_v49 = vadd.f32 %v7225_v35, %v7099_v17  ;;  %6710 = vst [vmem:[%s10687_s16 + $0x288] sm:$0xff] %v8557_v4  ;;  %v6965_v33 = vadd.f32 %v8557_v4, %v6964_v47  ;;  %v7100_v2 = vmul.f32 %v8557_v4, %v8557_v4  ;;  %v8133_v11 = vpop.f32.mrb[86].mxu1 }
 0x2e7   : > { %v5132_v58 = vpop.f32.mrb[87].mxu1 }
 0x2e8   : > { %v6966_v38 = vadd.f32 %v8548_v13, %v6965_v33  ;;  %v7227_v50 = vadd.f32 %v7226_v49, %v7100_v2  ;;  %v8262_v57 = vpop.f32.mrb[84].mxu0 }
 0x2e9   : > { %v8560_v61 = vadd.f32 %v8262_v57, %v8132_v55  ;;  %v6326_v43 = vpop.f32.mrb[85].mxu0 }
 0x2ea   : > { %v7228_v21 = vadd.f32 %v7227_v50, %v7101_v52  ;;  %v8563_v15 = vadd.f32 %v6326_v43, %v5129_v1  ;;  %v6967_v32 = vadd.f32 %v8554_v51, %v6966_v38  ;;  %v8263_v63 = vpop.f32.mrb[86].mxu0 }
 0x2eb   : > { %6715 = vst [vmem:[%s10687_s16 + $0x2b0] sm:$0xff] %v8560_v61  ;;  %v8566_v6 = vadd.f32 %v8263_v63, %v8133_v11  ;;  %v6329_v3 = vpop.f32.mrb[87].mxu0  ;;  %v7105_v54 = vmul.f32 %v8560_v61, %v8560_v61 }
 0x2ec   : > { %6713 = vst [vmem:[%s10687_s16 + $0x2a0] sm:$0xff] %v8563_v15  ;;  %v6968_v56 = vadd.f32 %v8563_v15, %v6967_v32  ;;  %v7103_v48 = vmul.f32 %v8563_v15, %v8563_v15  ;;  %v7229_v39 = vadd.f32 %v7228_v21, %v7102_v41  ;;  %v8569_v7 = vadd.f32 %v6329_v3, %v5132_v58  ;;  %v8136_v18 = vpop.f32.mrb[88].mxu1 }
 0x2ed   : > { %6716 = vst [vmem:[%s10687_s16 + $0x2b8] sm:$0xff] %v8566_v6  ;;  %v5145_v10 = vpop.f32.mrb[89].mxu1  ;;  %v7106_v9 = vmul.f32 %v8566_v6, %v8566_v6 }
 0x2ee   : > { %v7230_v46 = vadd.f32 %v7229_v39, %v7103_v48  ;;  %6714 = vst [vmem:[%s10687_s16 + $0x2a8] sm:$0xff] %v8569_v7  ;;  %v6969_v45 = vadd.f32 %v8569_v7, %v6968_v56  ;;  %v7104_v8 = vmul.f32 %v8569_v7, %v8569_v7  ;;  %v8137_v60 = vpop.f32.mrb[90].mxu1 }
 0x2ef   : > { %v5148_v14 = vpop.f32.mrb[91].mxu1 }
 0x2f0   : > { %v6970_v22 = vadd.f32 %v8560_v61, %v6969_v45  ;;  %v7231_v53 = vadd.f32 %v7230_v46, %v7104_v8  ;;  %v8266_v31 = vpop.f32.mrb[88].mxu0 }
 0x2f1   : > { %v8572_v36 = vadd.f32 %v8266_v31, %v8136_v18  ;;  %v6342_v26 = vpop.f32.mrb[89].mxu0 }
 0x2f2   : > { %v7232_v30 = vadd.f32 %v7231_v53, %v7105_v54  ;;  %v8575_v62 = vadd.f32 %v6342_v26, %v5145_v10  ;;  %v6971_v42 = vadd.f32 %v8566_v6, %v6970_v22  ;;  %v8267_v34 = vpop.f32.mrb[90].mxu0 }
 0x2f3   : > { %6719 = vst [vmem:[%s10687_s16 + $0x2d0] sm:$0xff] %v8572_v36  ;;  %v8578_v20 = vadd.f32 %v8267_v34, %v8137_v60  ;;  %v6345_v59 = vpop.f32.mrb[91].mxu0  ;;  %v7109_v37 = vmul.f32 %v8572_v36, %v8572_v36 }
 0x2f4   : > { %6717 = vst [vmem:[%s10687_s16 + $0x2c0] sm:$0xff] %v8575_v62  ;;  %v6972_v27 = vadd.f32 %v8575_v62, %v6971_v42  ;;  %v7107_v19 = vmul.f32 %v8575_v62, %v8575_v62  ;;  %v7233_v23 = vadd.f32 %v7232_v30, %v7106_v9  ;;  %v8581_v44 = vadd.f32 %v6345_v59, %v5148_v14  ;;  %v8140_v24 = vpop.f32.mrb[92].mxu1 }
 0x2f5   : > { %6720 = vst [vmem:[%s10687_s16 + $0x2d8] sm:$0xff] %v8578_v20  ;;  %v5161_v40 = vpop.f32.mrb[93].mxu1  ;;  %v7110_v17 = vmul.f32 %v8578_v20, %v8578_v20 }
 0x2f6   : > { %v7234_v29 = vadd.f32 %v7233_v23, %v7107_v19  ;;  %6718 = vst [vmem:[%s10687_s16 + $0x2c8] sm:$0xff] %v8581_v44  ;;  %v6973_v13 = vadd.f32 %v8581_v44, %v6972_v27  ;;  %v7108_v5 = vmul.f32 %v8581_v44, %v8581_v44  ;;  %v8141_v28 = vpop.f32.mrb[94].mxu1 }
 0x2f7   : > { %v5164_v25 = vpop.f32.mrb[95].mxu1 }
 0x2f8   : > { %v6974_v0 = vadd.f32 %v8572_v36, %v6973_v13  ;;  %v7235_v12 = vadd.f32 %v7234_v29, %v7108_v5  ;;  %v8270_v51 = vpop.f32.mrb[92].mxu0 }
 0x2f9   : > { %v8584_v16 = vadd.f32 %v8270_v51, %v8140_v24  ;;  %v6358_v47 = vpop.f32.mrb[93].mxu0 }
 0x2fa   : > { %v7236_v35 = vadd.f32 %v7235_v12, %v7109_v37  ;;  %v8587_v4 = vadd.f32 %v6358_v47, %v5161_v40  ;;  %v6975_v55 = vadd.f32 %v8578_v20, %v6974_v0  ;;  %v8271_v1 = vpop.f32.mrb[94].mxu0 }
 0x2fb   : > { %6723 = vst [vmem:[%s10687_s16 + $0x2f0] sm:$0xff] %v8584_v16  ;;  %v8590_v49 = vadd.f32 %v8271_v1, %v8141_v28  ;;  %v6361_v33 = vpop.f32.mrb[95].mxu0  ;;  %v7113_v15 = vmul.f32 %v8584_v16, %v8584_v16 }
 0x2fc   : > { %6721 = vst [vmem:[%s10687_s16 + $0x2e0] sm:$0xff] %v8587_v4  ;;  %v6976_v2 = vadd.f32 %v8587_v4, %v6975_v55  ;;  %v7111_v11 = vmul.f32 %v8587_v4, %v8587_v4  ;;  %v7237_v58 = vadd.f32 %v7236_v35, %v7110_v17  ;;  %v8593_v52 = vadd.f32 %v6361_v33, %v5164_v25  ;;  %v8144_v38 = vpop.f32.mrb[96].mxu1 }
 0x2fd   : > { %6724 = vst [vmem:[%s10687_s16 + $0x2f8] sm:$0xff] %v8590_v49  ;;  %v5177_v50 = vpop.f32.mrb[97].mxu1  ;;  %v7114_v48 = vmul.f32 %v8590_v49, %v8590_v49 }
 0x2fe   : > { %v7238_v57 = vadd.f32 %v7237_v58, %v7111_v11  ;;  %6722 = vst [vmem:[%s10687_s16 + $0x2e8] sm:$0xff] %v8593_v52  ;;  %v6977_v61 = vadd.f32 %v8593_v52, %v6976_v2  ;;  %v7112_v43 = vmul.f32 %v8593_v52, %v8593_v52  ;;  %v8145_v41 = vpop.f32.mrb[98].mxu1 }
 0x2ff   : > { %v5180_v21 = vpop.f32.mrb[99].mxu1 }
 0x300   : > { %v6978_v32 = vadd.f32 %v8584_v16, %v6977_v61  ;;  %v7239_v63 = vadd.f32 %v7238_v57, %v7112_v43  ;;  %v8274_v6 = vpop.f32.mrb[96].mxu0 }
 0x301   : > { %v8596_v3 = vadd.f32 %v8274_v6, %v8144_v38  ;;  %v6374_v56 = vpop.f32.mrb[97].mxu0 }
 0x302   : > { %v7240_v39 = vadd.f32 %v7239_v63, %v7113_v15  ;;  %v8599_v7 = vadd.f32 %v6374_v56, %v5177_v50  ;;  %v6979_v18 = vadd.f32 %v8590_v49, %v6978_v32  ;;  %v8275_v10 = vpop.f32.mrb[98].mxu0 }
 0x303   : > { %6727 = vst [vmem:[%s10687_s16 + $0x310] sm:$0xff] %v8596_v3  ;;  %v8602_v46 = vadd.f32 %v8275_v10, %v8145_v41  ;;  %v6377_v45 = vpop.f32.mrb[99].mxu0  ;;  %v7117_v62 = vmul.f32 %v8596_v3, %v8596_v3 }
 0x304   : > { %6725 = vst [vmem:[%s10687_s16 + $0x300] sm:$0xff] %v8599_v7  ;;  %v6980_v8 = vadd.f32 %v8599_v7, %v6979_v18  ;;  %v7115_v60 = vmul.f32 %v8599_v7, %v8599_v7  ;;  %v7241_v14 = vadd.f32 %v7240_v39, %v7114_v48  ;;  %v8605_v54 = vadd.f32 %v6377_v45, %v5180_v21  ;;  %v8148_v22 = vpop.f32.mrb[100].mxu1 }
 0x305   : > { %6728 = vst [vmem:[%s10687_s16 + $0x318] sm:$0xff] %v8602_v46  ;;  %v5193_v53 = vpop.f32.mrb[101].mxu1  ;;  %v7118_v19 = vmul.f32 %v8602_v46, %v8602_v46 }
 0x306   : > { %v7242_v31 = vadd.f32 %v7241_v14, %v7115_v60  ;;  %6726 = vst [vmem:[%s10687_s16 + $0x308] sm:$0xff] %v8605_v54  ;;  %v6981_v36 = vadd.f32 %v8605_v54, %v6980_v8  ;;  %v7116_v26 = vmul.f32 %v8605_v54, %v8605_v54  ;;  %v8149_v9 = vpop.f32.mrb[102].mxu1 }
 0x307   : > { %v5196_v30 = vpop.f32.mrb[103].mxu1 }
 0x308   : > { %v6982_v42 = vadd.f32 %v8596_v3, %v6981_v36  ;;  %v7243_v34 = vadd.f32 %v7242_v31, %v7116_v26  ;;  %v8278_v20 = vpop.f32.mrb[100].mxu0 }
 0x309   : > { %v8608_v59 = vadd.f32 %v8278_v20, %v8148_v22  ;;  %v6390_v27 = vpop.f32.mrb[101].mxu0 }
 0x30a   : > { %v7244_v23 = vadd.f32 %v7243_v34, %v7117_v62  ;;  %v8611_v44 = vadd.f32 %v6390_v27, %v5193_v53  ;;  %v6983_v24 = vadd.f32 %v8602_v46, %v6982_v42  ;;  %v8279_v40 = vpop.f32.mrb[102].mxu0 }
 0x30b   : > { %6731 = vst [vmem:[%s10687_s16 + $0x330] sm:$0xff] %v8608_v59  ;;  %v8614_v29 = vadd.f32 %v8279_v40, %v8149_v9  ;;  %v6393_v13 = vpop.f32.mrb[103].mxu0  ;;  %v7121_v4 = vmul.f32 %v8608_v59, %v8608_v59 }
 0x30c   : > { %6729 = vst [vmem:[%s10687_s16 + $0x320] sm:$0xff] %v8611_v44  ;;  %v6984_v5 = vadd.f32 %v8611_v44, %v6983_v24  ;;  %v7119_v28 = vmul.f32 %v8611_v44, %v8611_v44  ;;  %v7245_v25 = vadd.f32 %v7244_v23, %v7118_v19  ;;  %v8617_v37 = vadd.f32 %v6393_v13, %v5196_v30  ;;  %v8152_v0 = vpop.f32.mrb[104].mxu1 }
 0x30d   : > { %6732 = vst [vmem:[%s10687_s16 + $0x338] sm:$0xff] %v8614_v29  ;;  %v5209_v12 = vpop.f32.mrb[105].mxu1  ;;  %v7122_v11 = vmul.f32 %v8614_v29, %v8614_v29 }
 0x30e   : > { %v7246_v51 = vadd.f32 %v7245_v25, %v7119_v28  ;;  %6730 = vst [vmem:[%s10687_s16 + $0x328] sm:$0xff] %v8617_v37  ;;  %v6985_v16 = vadd.f32 %v8617_v37, %v6984_v5  ;;  %v7120_v47 = vmul.f32 %v8617_v37, %v8617_v37  ;;  %v8153_v17 = vpop.f32.mrb[106].mxu1 }
 0x30f   : > { %v5212_v35 = vpop.f32.mrb[107].mxu1 }
 0x310   : > { %v6986_v55 = vadd.f32 %v8608_v59, %v6985_v16  ;;  %v7247_v1 = vadd.f32 %v7246_v51, %v7120_v47  ;;  %v8282_v49 = vpop.f32.mrb[104].mxu0 }
 0x311   : > { %v8620_v33 = vadd.f32 %v8282_v49, %v8152_v0  ;;  %v6406_v2 = vpop.f32.mrb[105].mxu0 }
 0x312   : > { %v7248_v58 = vadd.f32 %v7247_v1, %v7121_v4  ;;  %v8623_v52 = vadd.f32 %v6406_v2, %v5209_v12  ;;  %v6987_v38 = vadd.f32 %v8614_v29, %v6986_v55  ;;  %v8283_v50 = vpop.f32.mrb[106].mxu0 }
 0x313   : > { %6735 = vst [vmem:[%s10687_s16 + $0x350] sm:$0xff] %v8620_v33  ;;  %v8626_v57 = vadd.f32 %v8283_v50, %v8153_v17  ;;  %v6409_v61 = vpop.f32.mrb[107].mxu0  ;;  %v7125_v7 = vmul.f32 %v8620_v33, %v8620_v33 }
 0x314   : > { %6733 = vst [vmem:[%s10687_s16 + $0x340] sm:$0xff] %v8623_v52  ;;  %v6988_v43 = vadd.f32 %v8623_v52, %v6987_v38  ;;  %v7123_v41 = vmul.f32 %v8623_v52, %v8623_v52  ;;  %v7249_v21 = vadd.f32 %v7248_v58, %v7122_v11  ;;  %v8629_v15 = vadd.f32 %v6409_v61, %v5212_v35  ;;  %v8156_v32 = vpop.f32.mrb[108].mxu1 }
 0x315   : > { %6736 = vst [vmem:[%s10687_s16 + $0x358] sm:$0xff] %v8626_v57  ;;  %v5225_v63 = vpop.f32.mrb[109].mxu1  ;;  %v7126_v60 = vmul.f32 %v8626_v57, %v8626_v57 }
 0x316   : > { %v7250_v6 = vadd.f32 %v7249_v21, %v7123_v41  ;;  %6734 = vst [vmem:[%s10687_s16 + $0x348] sm:$0xff] %v8629_v15  ;;  %v6989_v3 = vadd.f32 %v8629_v15, %v6988_v43  ;;  %v7124_v56 = vmul.f32 %v8629_v15, %v8629_v15  ;;  %v8157_v48 = vpop.f32.mrb[110].mxu1 }
 0x317   : > { %v5228_v39 = vpop.f32.mrb[111].mxu1 }
 0x318   : > { %v6990_v18 = vadd.f32 %v8620_v33, %v6989_v3  ;;  %v7251_v10 = vadd.f32 %v7250_v6, %v7124_v56  ;;  %v8286_v46 = vpop.f32.mrb[108].mxu0 }
 0x319   : > { %v8632_v45 = vadd.f32 %v8286_v46, %v8156_v32  ;;  %v6422_v8 = vpop.f32.mrb[109].mxu0 }
 0x31a   : > { %v7252_v14 = vadd.f32 %v7251_v10, %v7125_v7  ;;  %v8635_v54 = vadd.f32 %v6422_v8, %v5225_v63  ;;  %v6991_v22 = vadd.f32 %v8626_v57, %v6990_v18  ;;  %v8287_v53 = vpop.f32.mrb[110].mxu0 }
 0x31b   : > { %6739 = vst [vmem:[%s10687_s16 + $0x370] sm:$0xff] %v8632_v45  ;;  %v8638_v31 = vadd.f32 %v8287_v53, %v8157_v48  ;;  %v6425_v36 = vpop.f32.mrb[111].mxu0  ;;  %v7129_v44 = vmul.f32 %v8632_v45, %v8632_v45 }
 0x31c   : > { %6737 = vst [vmem:[%s10687_s16 + $0x360] sm:$0xff] %v8635_v54  ;;  %v6992_v26 = vadd.f32 %v8635_v54, %v6991_v22  ;;  %v7127_v9 = vmul.f32 %v8635_v54, %v8635_v54  ;;  %v7253_v30 = vadd.f32 %v7252_v14, %v7126_v60  ;;  %v8641_v62 = vadd.f32 %v6425_v36, %v5228_v39  ;;  %v8160_v42 = vpop.f32.mrb[112].mxu1 }
 0x31d   : > { %6740 = vst [vmem:[%s10687_s16 + $0x378] sm:$0xff] %v8638_v31  ;;  %v5241_v34 = vpop.f32.mrb[113].mxu1  ;;  %v7130_v28 = vmul.f32 %v8638_v31, %v8638_v31 }
 0x31e   : > { %v7254_v20 = vadd.f32 %v7253_v30, %v7127_v9  ;;  %6738 = vst [vmem:[%s10687_s16 + $0x368] sm:$0xff] %v8641_v62  ;;  %v6993_v59 = vadd.f32 %v8641_v62, %v6992_v26  ;;  %v7128_v27 = vmul.f32 %v8641_v62, %v8641_v62  ;;  %v8161_v19 = vpop.f32.mrb[114].mxu1 }
 0x31f   : > { %v5244_v23 = vpop.f32.mrb[115].mxu1 }
 0x320   : > { %v6994_v24 = vadd.f32 %v8632_v45, %v6993_v59  ;;  %v7255_v40 = vadd.f32 %v7254_v20, %v7128_v27  ;;  %v8290_v29 = vpop.f32.mrb[112].mxu0 }
 0x321   : > { %v8644_v13 = vadd.f32 %v8290_v29, %v8160_v42  ;;  %v6438_v5 = vpop.f32.mrb[113].mxu0 }
 0x322   : > { %v7256_v25 = vadd.f32 %v7255_v40, %v7129_v44  ;;  %v8647_v37 = vadd.f32 %v6438_v5, %v5241_v34  ;;  %v6995_v0 = vadd.f32 %v8638_v31, %v6994_v24  ;;  %v8291_v12 = vpop.f32.mrb[114].mxu0 }
 0x323   : > { %6743 = vst [vmem:[%s10687_s16 + $0x390] sm:$0xff] %v8644_v13  ;;  %v8650_v51 = vadd.f32 %v8291_v12, %v8161_v19  ;;  %v6441_v16 = vpop.f32.mrb[115].mxu0  ;;  %v7133_v52 = vmul.f32 %v8644_v13, %v8644_v13 }
 0x324   : > { %6741 = vst [vmem:[%s10687_s16 + $0x380] sm:$0xff] %v8647_v37  ;;  %v6996_v47 = vadd.f32 %v8647_v37, %v6995_v0  ;;  %v7131_v17 = vmul.f32 %v8647_v37, %v8647_v37  ;;  %v7257_v35 = vadd.f32 %v7256_v25, %v7130_v28  ;;  %v8653_v4 = vadd.f32 %v6441_v16, %v5244_v23  ;;  %v8164_v55 = vpop.f32.mrb[116].mxu1 }
 0x325   : > { %6744 = vst [vmem:[%s10687_s16 + $0x398] sm:$0xff] %v8650_v51  ;;  %v5257_v1 = vpop.f32.mrb[117].mxu1  ;;  %v7134_v41 = vmul.f32 %v8650_v51, %v8650_v51 }
 0x326   : > { %v7258_v49 = vadd.f32 %v7257_v35, %v7131_v17  ;;  %6742 = vst [vmem:[%s10687_s16 + $0x388] sm:$0xff] %v8653_v4  ;;  %v6997_v33 = vadd.f32 %v8653_v4, %v6996_v47  ;;  %v7132_v2 = vmul.f32 %v8653_v4, %v8653_v4  ;;  %v8165_v11 = vpop.f32.mrb[118].mxu1 }
 0x327   : > { %v5260_v58 = vpop.f32.mrb[119].mxu1 }
 0x328   : > { %v7259_v38 = vadd.f32 %v7258_v49, %v7132_v2  ;;  %v8294_v50 = vpop.f32.mrb[116].mxu0  ;;  %v6998_v57 = vadd.f32 %v8644_v13, %v6997_v33 }
 0x329   : > { %v8656_v61 = vadd.f32 %v8294_v50, %v8164_v55  ;;  %v6454_v43 = vpop.f32.mrb[117].mxu0 }
 0x32a   : > { %v8659_v21 = vadd.f32 %v6454_v43, %v5257_v1  ;;  %v8295_v15 = vpop.f32.mrb[118].mxu0  ;;  %v6999_v32 = vadd.f32 %v8650_v51, %v6998_v57  ;;  %v7260_v63 = vadd.f32 %v7259_v38, %v7133_v52 }
 0x32b   : > { %6747 = vst [vmem:[%s10687_s16 + $0x3b0] sm:$0xff] %v8656_v61  ;;  %v8662_v6 = vadd.f32 %v8295_v15, %v8165_v11  ;;  %v6457_v3 = vpop.f32.mrb[119].mxu0 }
 0x32c   : > { %6745 = vst [vmem:[%s10687_s16 + $0x3a0] sm:$0xff] %v8659_v21  ;;  %v8665_v56 = vadd.f32 %v6457_v3, %v5260_v58  ;;  %v8168_v48 = vpop.f32.mrb[120].mxu1  ;;  %v7261_v39 = vadd.f32 %v7260_v63, %v7134_v41 }
 0x32d   : > { %6748 = vst [vmem:[%s10687_s16 + $0x3b8] sm:$0xff] %v8662_v6  ;;  %v5273_v7 = vpop.f32.mrb[121].mxu1 }
 0x32e   : > { %6746 = vst [vmem:[%s10687_s16 + $0x3a8] sm:$0xff] %v8665_v56  ;;  %v8169_v18 = vpop.f32.mrb[122].mxu1 }
 0x32f   : > { %v5276_v10 = vpop.f32.mrb[123].mxu1 }
 0x330   : > { %v8298_v46 = vpop.f32.mrb[120].mxu0 }
 0x331   : > { %v8668_v45 = vadd.f32 %v8298_v46, %v8168_v48  ;;  %v6470_v8 = vpop.f32.mrb[121].mxu0 }
 0x332   : > { %v8671_v60 = vadd.f32 %v6470_v8, %v5273_v7  ;;  %v8299_v14 = vpop.f32.mrb[122].mxu0  ;;  %v6875_v42 = vld [vmem:[%s10687_s16 + $0x3b0] sm:$0xff] }
 0x333   : > { %6751 = vst [vmem:[%s10687_s16 + $0x3d0] sm:$0xff] %v8668_v45  ;;  %v8674_v54 = vadd.f32 %v8299_v14, %v8169_v18  ;;  %v6473_v22 = vpop.f32.mrb[123].mxu0  ;;  %v6873_v53 = vld [vmem:[%s10687_s16 + $0x3a0] sm:$0xff]  ;;  %v7137_v40 = vmul.f32 %v6875_v42, %v6875_v42 }
 0x334   : > { %6749 = vst [vmem:[%s10687_s16 + $0x3c0] sm:$0xff] %v8671_v60  ;;  %v8677_v31 = vadd.f32 %v6473_v22, %v5276_v10  ;;  %v8172_v36 = vpop.f32.mrb[124].mxu1  ;;  %v7000_v26 = vadd.f32 %v6999_v32, %v6873_v53  ;;  %v7135_v9 = vmul.f32 %v6873_v53, %v6873_v53  ;;  %v6876_v23 = vld [vmem:[%s10687_s16 + $0x3b8] sm:$0xff] }
 0x335   : > { %6752 = vst [vmem:[%s10687_s16 + $0x3d8] sm:$0xff] %v8674_v54  ;;  %v5289_v30 = vpop.f32.mrb[125].mxu1  ;;  %v6874_v62 = vld [vmem:[%s10687_s16 + $0x3a8] sm:$0xff]  ;;  %v7138_v0 = vmul.f32 %v6876_v23, %v6876_v23 }
 0x336   : > { %6750 = vst [vmem:[%s10687_s16 + $0x3c8] sm:$0xff] %v8677_v31  ;;  %v8173_v34 = vpop.f32.mrb[126].mxu1  ;;  %v7001_v20 = vadd.f32 %v7000_v26, %v6874_v62  ;;  %v7136_v59 = vmul.f32 %v6874_v62, %v6874_v62  ;;  %v7262_v27 = vadd.f32 %v7261_v39, %v7135_v9 }
 0x337   : > { %v5292_v19 = vpop.f32.mrb[127].mxu1 }
 0x338   : > { %v8302_v44 = vpop.f32.mrb[124].mxu0  ;;  %v7002_v24 = vadd.f32 %v7001_v20, %v6875_v42  ;;  %v7263_v29 = vadd.f32 %v7262_v27, %v7136_v59 }
 0x339   : > { %v8680_v13 = vadd.f32 %v8302_v44, %v8172_v36  ;;  %v6486_v5 = vpop.f32.mrb[125].mxu0 }
 0x33a   : > { %v8683_v28 = vadd.f32 %v6486_v5, %v5289_v30  ;;  %v8303_v25 = vpop.f32.mrb[126].mxu0  ;;  %v7003_v37 = vadd.f32 %v7002_v24, %v6876_v23  ;;  %v7264_v12 = vadd.f32 %v7263_v29, %v7137_v40  ;;  %v6879_v49 = vld [vmem:[%s10687_s16 + $0x3d0] sm:$0xff] }
 0x33b   : > { %6755 = vst [vmem:[%s10687_s16 + $0x3f0] sm:$0xff] %v8680_v13  ;;  %v8686_v51 = vadd.f32 %v8303_v25, %v8173_v34  ;;  %v6489_v16 = vpop.f32.mrb[127].mxu0  ;;  %v6877_v47 = vld [vmem:[%s10687_s16 + $0x3c0] sm:$0xff] }
 0x33c   : > { %6753 = vst [vmem:[%s10687_s16 + $0x3e0] sm:$0xff] %v8683_v28  ;;  %v8689_v17 = vadd.f32 %v6489_v16, %v5292_v19  ;;  %v7004_v35 = vadd.f32 %v7003_v37, %v6877_v47  ;;  %v7139_v4 = vmul.f32 %v6877_v47, %v6877_v47  ;;  %v7265_v55 = vadd.f32 %v7264_v12, %v7138_v0  ;;  %v6880_v33 = vld [vmem:[%s10687_s16 + $0x3d8] sm:$0xff] }
 0x33d   : > { %6756 = vst [vmem:[%s10687_s16 + $0x3f8] sm:$0xff] %v8686_v51  ;;  %v6878_v1 = vld [vmem:[%s10687_s16 + $0x3c8] sm:$0xff] }
 0x33e   : > { %6754 = vst [vmem:[%s10687_s16 + $0x3e8] sm:$0xff] %v8689_v17  ;;  %v7005_v2 = vadd.f32 %v7004_v35, %v6878_v1  ;;  %v7140_v11 = vmul.f32 %v6878_v1, %v6878_v1  ;;  %v7266_v58 = vadd.f32 %v7265_v55, %v7139_v4 }
 0x33f   : > { %8899 = shalt.err (!%p8896_p5)
}
 0x340   : > { %s8900_s10 = scalar_lea.hbm %s11545_s25, 16384  ;;  %s8904_s12 = scalar_lea.hbm %s11641_s4, 32768 }
 0x341   : > { %p8901_p6 = scmp.ne.s32.totalorder %s11545_s25, %s8900_s10  ;;  %p8905_p10 = scmp.lt.u32.totalorder %s11545_s25, %s11641_s4 }
 0x342   : > { %p8906_p11 = scmp.lt.u32.totalorder %s8904_s12, %s8900_s10  ;;  %p8908_p13 = scmp.lt.u32.totalorder %s8900_s10, %s11545_s25 }
 0x343   : > { %p8902_p7 = pnand %p8901_p6, %p9075_p4 }
 0x344   : > { %p8907_p12 = por %p8906_p11, %p8905_p10 }
 0x345   : > { %p8903_p9 = pneg %p8902_p7 }
 0x346   : > { %p8909_p0 = por %p8908_p13, %p8907_p12 }
 0x348   : > { %p8910_p1 = pnand %p8909_p0, %p8903_p9 }
 0x34a   : > { %8913 = shalt.err (!%p8910_p1)
}
 0x34b   : > { %s9002_s29 = smov 128   ;;  %s9003_s7 = smov 8   ;;  %v7006_v52 = vadd.f32 %v7005_v2, %v6879_v49  ;;  %v7141_v38 = vmul.f32 %v6879_v49, %v6879_v49  ;;  %v7267_v50 = vadd.f32 %v7266_v58, %v7140_v11  ;;  %v7142_v61 = vmul.f32 %v6880_v33, %v6880_v33  ;;  %v6881_v41 = vld [vmem:[%s10687_s16 + $0x3e0] sm:$0xff]  ;;  %v6882_v63 = vld [vmem:[%s10687_s16 + $0x3e8] sm:$0xff]  ;;  %v6883_v6 = vld [vmem:[%s10687_s16 + $0x3f0] sm:$0xff] }
 0x34c   : > { %8818 = dma.vmem_to_hbm [thread:$0]  (%p9075_p4), %s11547_s13, 16384, %s11545_s25, %s7282_s27, %s9002_s29, %s9002_s29, %s9003_s7   ;;  %v7143_v15 = vmul.f32 %v6881_v41, %v6881_v41  ;;  %v7144_v56 = vmul.f32 %v6882_v63, %v6882_v63  ;;  %v7145_v18 = vmul.f32 %v6883_v6, %v6883_v6 }
 0x34d   : > { %v7007_v57 = vadd.f32 %v7006_v52, %v6880_v33  ;;  %v7268_v43 = vadd.f32 %v7267_v50, %v7141_v38  ;;  %v6884_v39 = vld [vmem:[%s10687_s16 + $0x3f8] sm:$0xff]  ;;  %s7500_s13 = sshll.u32 %s10638_s11, 1  ;;  %s7710_s16 = sshll.u32 %s8988_s21, 5 }
 0x34e   : > { %v7146_v45 = vmul.f32 %v6884_v39, %v6884_v39  ;;  %s371_s25 = scalar_lea.vmem [#allocation5], %s7500_s13  ;;  %s11589_s10 = scalar_lea.hbm %s11642_s5, %s7710_s16 }
 0x34f   : > { %v7008_v21 = vadd.f32 %v7007_v57, %v6881_v41  ;;  %v7269_v32 = vadd.f32 %v7268_v43, %v7142_v61  ;;  %s7320_s27 = sshll.u32 %s371_s25, 4  ;;  %s7287_s14 = scalar_lea.sflag [#allocation6], %s10638_s11  ;;  %s11591_s27 = int_to_ptr.vmem [resolvable:$true] %s7320_s27 }
 0x350   : > { %s8914_s15 = scalar_lea.vmem %s11591_s27, 32  ;;  %s9004_s21 = smov [#allocation5]  }
 0x351   : > { %v7009_v3 = vadd.f32 %v7008_v21, %v6882_v63  ;;  %v7270_v48 = vadd.f32 %v7269_v32, %v7143_v15  ;;  %p8915_p2 = scmp.ne.s32.totalorder %s11591_s27, %s8914_s15  ;;  %s8918_s12 = sshll.u32 %s9004_s21, 4  ;;  %s8919_s12 = int_to_ptr.vmem [resolvable:$false] %s8918_s12 }
 0x352   : > { %s8920_s17 = scalar_lea.vmem %s8919_s12, 64  ;;  %p8921_p6 = scmp.lt.s32.totalorder %s11591_s27, %s8919_s12 }
 0x353   : > { %v7010_v7 = vadd.f32 %v7009_v3, %v6883_v6  ;;  %v7271_v10 = vadd.f32 %v7270_v48, %v7144_v56  ;;  %p8916_p3 = pnand %p8915_p2, %p9075_p4  ;;  %p8922_p7 = scmp.lt.s32.totalorder %s8920_s17, %s8914_s15 }
 0x355   : > { %v7011_v46 = vadd.f32 %v7010_v7, %v6884_v39  ;;  %v7272_v8 = vadd.f32 %v7271_v10, %v7145_v18  ;;  %p8917_p5 = pneg %p8916_p3  ;;  %p8923_p9 = por %p8922_p7, %p8921_p6 }
 0x357   : > { %v7012_v60 = vrot.slane %v7011_v46, 4  ;;  %v7273_v14 = vadd.f32 %v7272_v8, %v7146_v45  ;;  %p8924_p10 = pnand %p8923_p9, %p8917_p5 }
 0x359   : > { %v7013_v54 = vadd.f32 %v7012_v60, %v7011_v46  ;;  %v7274_v22 = vrot.slane %v7273_v14, 4 }
 0x35b   : > { %v7014_v53 = vrot.slane %v7013_v54, 2  ;;  %v7275_v31 = vadd.f32 %v7274_v22, %v7273_v14 }
 0x35d   : > { %v7015_v36 = vadd.f32 %v7014_v53, %v7013_v54  ;;  %v7276_v26 = vrot.slane %v7275_v31, 2 }
 0x35f   : > { %v7016_v9 = vrot.slane %v7015_v36, 1  ;;  %v7277_v30 = vadd.f32 %v7276_v26, %v7275_v31 }
 0x361   : > { %v7017_v62 = vadd.f32 %v7016_v9, %v7015_v36  ;;  %v7278_v42 = vrot.slane %v7277_v30, 1 }
 0x363   : > { %7018 = vst [vmem:[%s371_s25] sm:$0x1] %v7017_v62  ;;  %v7279_v34 = vadd.f32 %v7278_v42, %v7277_v30 }
 0x365   : > { %7280 = vst [vmem:[%s371_s25 + $0x1] sm:$0x1] %v7279_v34 }
 0x366   : > { %8927 = shalt.err (!%p8924_p10)
}
 0x367   : > { %s8928_s11 = scalar_lea.hbm %s11589_s10, 32  ;;  %s8932_s7 = scalar_lea.hbm %s11642_s5, 64 }
 0x368   : > { %p8929_p11 = scmp.ne.s32.totalorder %s11589_s10, %s8928_s11  ;;  %p8933_p0 = scmp.lt.u32.totalorder %s11589_s10, %s11642_s5 }
 0x369   : > { %p8934_p1 = scmp.lt.u32.totalorder %s8932_s7, %s8928_s11  ;;  %p8936_p3 = scmp.lt.u32.totalorder %s8928_s11, %s11589_s10 }
 0x36a   : > { %p8930_p12 = pnand %p8929_p11, %p9075_p4 }
 0x36b   : > { %p8935_p2 = por %p8934_p1, %p8933_p0 }
 0x36c   : > { %p8931_p13 = pneg %p8930_p12 }
 0x36d   : > { %p8937_p5 = por %p8936_p3, %p8935_p2 }
 0x36f   : > { %p8938_p6 = pnand %p8937_p5, %p8931_p13 }
 0x371   : > { %8941 = shalt.err (!%p8938_p6)
}
 0x372   : > { %8819 = dma.vmem_to_hbm [thread:$0]  (%p9075_p4), %s11591_s27, 32, %s11589_s10, %s7287_s14  }
 0x373 PF: > { %p8829_p7 = scmp.ge.s32.totalorder %s8996_s23, 2  ;;  %s7332_s25 = sand.u32 1, %s8976_s18  }
 0x374   : > { %s7333_s9 = scalar_lea.sflag [#allocation4], %s7332_s25 }
 0x375   : > { %p8823_p9 = pnand %p8829_p7, %p9082_p8 }
 0x377   : > { %8967 = dma.done.wait (!%p8823_p9), %s7333_s9, 16384  }
 0x378   : > { %8969 = vsyncadd (!%p8823_p9), %s7333_s9, 4294950912  ;;  %s7342_s8 = scalar_lea.sflag [#allocation6], %s7332_s25 }
 0x379   : > { %8971 = dma.done.wait (!%p8823_p9), %s7342_s8, 32  }
 0x37a   : > { %8973 = vsyncadd (!%p8823_p9), %s7342_s8, 4294967264  ;;  %s22_s23 = sadd.s32 1, %s8996_s23   ;;  %s11730_s18 = smov %s8980_s19 }
 0x37b   : > { %p19_p10 = scmp.ge.s32.totalorder %s22_s23, 4   ;;  %s11731_s19 = smov %s8984_s20 }
 0x37c   : > { %s11732_s20 = smov %s9088_s6  ;;  %s11733_s21 = smov %s8992_s22 }
 0x37d   : > { %s11734_s22 = smov %s11736_s26  ;;  %21 = sbr.rel (!%p19_p10) target bundleno = 6 (0x6), region = 107 }
 0x384   :  { %7347 = vsyncpa [#allocation4], 1 }
 0x385   :  { %7349 = vsyncpa [#allocation4 + $0x1], 1 }
 0x386   :  { %7350 = vsyncpa [#allocation6], 1 }
 0x387   :  { %7352 = vsyncpa [#allocation6 + $0x1], 1 }

</bundles_post_ra>
